<compile_context>
chip_gen: v5e
topology: v5e:2x2
jax: 0.10.0
libtpu: 0.0.40
codegen_flags: <defaults>
</compile_context>

<pallas_src>
import jax
import jax.numpy as jnp
from jax.experimental import pallas as pl
from jax.experimental.pallas import tpu as pltpu

IMG_SIZE = 28
D_IN = IMG_SIZE * IMG_SIZE       # 784 (multiple of 8 -> legal sublane extent for w1)
H1 = 1024
H2 = 512
D_OUT = 10
D_OUT_PAD = 128                  # lane-dense logits (unmasked vst); sliced to 10 in wrapper

TB_MAX = 512                     # batch tile cap: per-grid-step overhead << tile MXU time
SUBLANE = 8


def _cdiv(a, b):
    return (a + b - 1) // b


def _round_up(x, m):
    return _cdiv(x, m) * m


def mlp_kernel(x_ref, w1_ref, b1_ref, w2_ref, b2_ref, w3_ref, b3_ref, o_ref):
    # x arrives f32 straight from HBM (no wrapper pad/cast pass); cast here.
    x = x_ref[...].astype(jnp.bfloat16)
    # fc1 + relu (bf16 operands, f32 accumulation on the MXU)
    h1 = jnp.dot(x, w1_ref[...], preferred_element_type=jnp.float32)
    h1 = jnp.maximum(h1 + b1_ref[...], 0.0).astype(jnp.bfloat16)
    # fc2 + relu
    h2 = jnp.dot(h1, w2_ref[...], preferred_element_type=jnp.float32)
    h2 = jnp.maximum(h2 + b2_ref[...], 0.0).astype(jnp.bfloat16)
    # fc3 (logits; out lanes padded 10 -> 128 with zero weights, no activation)
    logits = jnp.dot(h2, w3_ref[...], preferred_element_type=jnp.float32)
    o_ref[...] = (logits + b3_ref[...]).astype(o_ref.dtype)


def _pick_batch_tile(B):
    # >= 2 balanced tiles whenever the batch allows (keeps both v7x TensorCores
    # busy; harmless on single-TC v5e/v6e), more tiles when B > TB_MAX, and the
    # tile rounded to 8 sublanes. Balancing tiles also avoids a nearly-empty
    # trailing tile for awkward batch sizes.
    n_tiles = max(_cdiv(B, TB_MAX), 2 if B >= 2 * SUBLANE else 1)
    return _round_up(_cdiv(B, n_tiles), SUBLANE)


def net_forward(x, params):
    """x: (B, 1, 28, 28) float32 (NCHW). Returns (B, 10) float32 logits."""
    w1, b1, w2, b2, w3, b3 = params
    B = x.shape[0]
    x2d = x.reshape(B, D_IN)          # free view, same semantics as torch x.view(-1, 784)

    TB = _pick_batch_tile(B)
    grid = (_cdiv(B, TB),)            # ragged last tile handled by Pallas OOB masking
    resident = lambda shape: pl.BlockSpec(shape, lambda i: (0, 0))
    # TODO(synk): single-buffering the resident weight specs (pl.Buffered(1)) would
    # free ~3 MiB of VMEM; skipped here since TB=512 leaves ample headroom.

    out_pad = pl.pallas_call(
        mlp_kernel,
        out_shape=jax.ShapeDtypeStruct((B, D_OUT_PAD), jnp.float32),
        grid=grid,
        in_specs=[
            pl.BlockSpec((TB, D_IN), lambda i: (i, 0)),        # x: tiled on batch, full 784 last dim
            resident((D_IN, H1)), resident((1, H1)),           # weights/biases VMEM-resident
            resident((H1, H2)),   resident((1, H2)),
            resident((H2, D_OUT_PAD)), resident((1, D_OUT_PAD)),
        ],
        out_specs=pl.BlockSpec((TB, D_OUT_PAD), lambda i: (i, 0)),
        compiler_params=pltpu.CompilerParams(
            dimension_semantics=("parallel",),     # independent batch tiles (megacore sharding)
            vmem_limit_bytes=32 << 20,             # headroom on v7x's 64 MiB physical VMEM
        ),
    )(x2d, w1, b1, w2, b2, w3, b3)

    return out_pad[:, :D_OUT]


def init_params(key):
    """Deterministic init, mimicking torch.nn.Linear default (U[-1/sqrt(fan_in), +]).

    Weights stored (in, out), cast to bf16; only fc3's output dim is zero-padded
    (10 -> 128) for a lane-dense store. Biases stay f32.
    """
    def linear(k, fan_in, fan_out, pad_out):
        kw, kb = jax.random.split(k)
        bound = 1.0 / (fan_in ** 0.5)
        w = jax.random.uniform(kw, (fan_in, fan_out), jnp.float32, -bound, bound)
        b = jax.random.uniform(kb, (1, fan_out), jnp.float32, -bound, bound)
        w_p = jnp.zeros((fan_in, pad_out), jnp.bfloat16).at[:, :fan_out].set(
            w.astype(jnp.bfloat16))
        b_p = jnp.zeros((1, pad_out), jnp.float32).at[:, :fan_out].set(b)
        return w_p, b_p

    k1, k2, k3 = jax.random.split(key, 3)
    w1, b1 = linear(k1, D_IN, H1, H1)
    w2, b2 = linear(k2, H1, H2, H2)
    w3, b3 = linear(k3, H2, D_OUT, D_OUT_PAD)
    return (w1, b1, w2, b2, w3, b3)


if __name__ == "__main__":
    key = jax.random.PRNGKey(0)
    k_params, k_x = jax.random.split(key)
    params = init_params(k_params)

    B = 8
    x = jax.random.normal(k_x, (B, 1, IMG_SIZE, IMG_SIZE), jnp.float32)

    out = net_forward(x, params)
    out = jax.block_until_ready(out)

    # sanity: plain-JAX reference of the same (bf16-weight) forward pass
    w1, b1, w2, b2, w3, b3 = params
    xr = x.reshape(B, D_IN).astype(jnp.bfloat16)
    h = jnp.maximum(jnp.dot(xr, w1, preferred_element_type=jnp.float32) + b1, 0.0)
    h = h.astype(jnp.bfloat16)
    h = jnp.maximum(jnp.dot(h, w2, preferred_element_type=jnp.float32) + b2, 0.0)
    h = h.astype(jnp.bfloat16)
    ref = (jnp.dot(h, w3, preferred_element_type=jnp.float32) + b3)[:, :D_OUT]

    assert out.shape == (B, D_OUT)
    assert jnp.allclose(out, ref, atol=2e-2, rtol=2e-2), (
        float(jnp.max(jnp.abs(out - ref))))

    print("KERNEL_OK")
</pallas_src>

<mosaic_0001>
module attributes {stable_mosaic.version = 11 : i64} {
  func.func @mlp_kernel(%arg0: i32, %arg1: memref<8x784xf32, #tpu.memory_space<vmem>>, %arg2: memref<784x1024xbf16, #tpu.memory_space<vmem>>, %arg3: memref<1x1024xf32, #tpu.memory_space<vmem>>, %arg4: memref<1024x512xbf16, #tpu.memory_space<vmem>>, %arg5: memref<1x512xf32, #tpu.memory_space<vmem>>, %arg6: memref<512x128xbf16, #tpu.memory_space<vmem>>, %arg7: memref<1x128xf32, #tpu.memory_space<vmem>>, %arg8: memref<8x128xf32, #tpu.memory_space<vmem>>) attributes {dimension_semantics = [#tpu.dimension_semantics<parallel>], iteration_bounds = array<i64: 1>, scalar_prefetch = 0 : i64, scratch_operands = 0 : i64, tpu.core_type = #tpu.core_type<tc>, window_params = [{transform_indices = @transform_0, window_bounds = array<i64: 8, 784>}, {pipeline_mode = #tpu.pipeline_mode<synchronous>, transform_indices = @transform_1, window_bounds = array<i64: 784, 1024>}, {pipeline_mode = #tpu.pipeline_mode<synchronous>, transform_indices = @transform_2, window_bounds = array<i64: 1, 1024>}, {pipeline_mode = #tpu.pipeline_mode<synchronous>, transform_indices = @transform_3, window_bounds = array<i64: 1024, 512>}, {pipeline_mode = #tpu.pipeline_mode<synchronous>, transform_indices = @transform_4, window_bounds = array<i64: 1, 512>}, {pipeline_mode = #tpu.pipeline_mode<synchronous>, transform_indices = @transform_5, window_bounds = array<i64: 512, 128>}, {pipeline_mode = #tpu.pipeline_mode<synchronous>, transform_indices = @transform_6, window_bounds = array<i64: 1, 128>}, {transform_indices = @transform_7, window_bounds = array<i64: 8, 128>}]} {
    %c0 = arith.constant 0 : index
    %c0_0 = arith.constant 0 : index
    %0 = vector.load %arg1[%c0, %c0_0] : memref<8x784xf32, #tpu.memory_space<vmem>>, vector<8x784xf32>
    %1 = arith.truncf %0 : vector<8x784xf32> to vector<8x784xbf16>
    %c0_1 = arith.constant 0 : index
    %c0_2 = arith.constant 0 : index
    %2 = vector.load %arg2[%c0_1, %c0_2] : memref<784x1024xbf16, #tpu.memory_space<vmem>>, vector<784x1024xbf16>
    %cst = arith.constant dense<0.000000e+00> : vector<8x1024xf32>
    %3 = tpu.matmul %1, %2, %cst {dimension_numbers = #tpu.dot_dimension_numbers<[1], [0], [0], [1], [0, 0, 1, 1], [], []>} : vector<8x784xbf16>, vector<784x1024xbf16>, vector<8x1024xf32> -> vector<8x1024xf32>
    %c0_3 = arith.constant 0 : index
    %c0_4 = arith.constant 0 : index
    %4 = vector.load %arg3[%c0_3, %c0_4] : memref<1x1024xf32, #tpu.memory_space<vmem>>, vector<1x1024xf32>
    %5 = vector.broadcast %4 : vector<1x1024xf32> to vector<8x1024xf32>
    %6 = arith.addf %3, %5 : vector<8x1024xf32>
    %cst_5 = arith.constant 0.000000e+00 : f32
    %7 = vector.broadcast %cst_5 : f32 to vector<8x1024xf32>
    %8 = arith.maximumf %6, %7 : vector<8x1024xf32>
    %9 = arith.truncf %8 : vector<8x1024xf32> to vector<8x1024xbf16>
    %c0_6 = arith.constant 0 : index
    %c0_7 = arith.constant 0 : index
    %10 = vector.load %arg4[%c0_6, %c0_7] : memref<1024x512xbf16, #tpu.memory_space<vmem>>, vector<1024x512xbf16>
    %cst_8 = arith.constant dense<0.000000e+00> : vector<8x512xf32>
    %11 = tpu.matmul %9, %10, %cst_8 {dimension_numbers = #tpu.dot_dimension_numbers<[1], [0], [0], [1], [0, 0, 1, 1], [], []>} : vector<8x1024xbf16>, vector<1024x512xbf16>, vector<8x512xf32> -> vector<8x512xf32>
    %c0_9 = arith.constant 0 : index
    %c0_10 = arith.constant 0 : index
    %12 = vector.load %arg5[%c0_9, %c0_10] : memref<1x512xf32, #tpu.memory_space<vmem>>, vector<1x512xf32>
    %13 = vector.broadcast %12 : vector<1x512xf32> to vector<8x512xf32>
    %14 = arith.addf %11, %13 : vector<8x512xf32>
    %cst_11 = arith.constant 0.000000e+00 : f32
    %15 = vector.broadcast %cst_11 : f32 to vector<8x512xf32>
    %16 = arith.maximumf %14, %15 : vector<8x512xf32>
    %17 = arith.truncf %16 : vector<8x512xf32> to vector<8x512xbf16>
    %c0_12 = arith.constant 0 : index
    %c0_13 = arith.constant 0 : index
    %18 = vector.load %arg6[%c0_12, %c0_13] : memref<512x128xbf16, #tpu.memory_space<vmem>>, vector<512x128xbf16>
    %cst_14 = arith.constant dense<0.000000e+00> : vector<8x128xf32>
    %19 = tpu.matmul %17, %18, %cst_14 {dimension_numbers = #tpu.dot_dimension_numbers<[1], [0], [0], [1], [0, 0, 1, 1], [], []>} : vector<8x512xbf16>, vector<512x128xbf16>, vector<8x128xf32> -> vector<8x128xf32>
    %c0_15 = arith.constant 0 : index
    %c0_16 = arith.constant 0 : index
    %20 = vector.load %arg7[%c0_15, %c0_16] : memref<1x128xf32, #tpu.memory_space<vmem>>, vector<1x128xf32>
    %21 = vector.broadcast %20 : vector<1x128xf32> to vector<8x128xf32>
    %22 = arith.addf %19, %21 : vector<8x128xf32>
    %c0_17 = arith.constant 0 : index
    %c0_18 = arith.constant 0 : index
    %23 = vector.load %arg8[%c0_17, %c0_18] : memref<8x128xf32, #tpu.memory_space<vmem>>, vector<8x128xf32>
    tpu.vector_store %arg8[%c0_17, %c0_18], %22 {strides = array<i32>} : memref<8x128xf32, #tpu.memory_space<vmem>>, vector<8x128xf32>,
    return
  }
  func.func @transform_0(%arg0: i32) -> (i32, i32) {
    %c0_i32 = arith.constant 0 : i32
    %c0_i32_0 = arith.constant 0 : i32
    return %arg0, %c0_i32 : i32, i32
  }
  func.func @transform_1(%arg0: i32) -> (i32, i32) {
    %c0_i32 = arith.constant 0 : i32
    %c0_i32_0 = arith.constant 0 : i32
    %c0_i32_1 = arith.constant 0 : i32
    return %c0_i32, %c0_i32_0 : i32, i32
  }
  func.func @transform_2(%arg0: i32) -> (i32, i32) {
    %c0_i32 = arith.constant 0 : i32
    %c0_i32_0 = arith.constant 0 : i32
    %c0_i32_1 = arith.constant 0 : i32
    return %c0_i32, %c0_i32_0 : i32, i32
  }
  func.func @transform_3(%arg0: i32) -> (i32, i32) {
    %c0_i32 = arith.constant 0 : i32
    %c0_i32_0 = arith.constant 0 : i32
    %c0_i32_1 = arith.constant 0 : i32
    return %c0_i32, %c0_i32_0 : i32, i32
  }
  func.func @transform_4(%arg0: i32) -> (i32, i32) {
    %c0_i32 = arith.constant 0 : i32
    %c0_i32_0 = arith.constant 0 : i32
    %c0_i32_1 = arith.constant 0 : i32
    return %c0_i32, %c0_i32_0 : i32, i32
  }
  func.func @transform_5(%arg0: i32) -> (i32, i32) {
    %c0_i32 = arith.constant 0 : i32
    %c0_i32_0 = arith.constant 0 : i32
    %c0_i32_1 = arith.constant 0 : i32
    return %c0_i32, %c0_i32_0 : i32, i32
  }
  func.func @transform_6(%arg0: i32) -> (i32, i32) {
    %c0_i32 = arith.constant 0 : i32
    %c0_i32_0 = arith.constant 0 : i32
    %c0_i32_1 = arith.constant 0 : i32
    return %c0_i32, %c0_i32_0 : i32, i32
  }
  func.func @transform_7(%arg0: i32) -> (i32, i32) {
    %c0_i32 = arith.constant 0 : i32
    %c0_i32_0 = arith.constant 0 : i32
    return %arg0, %c0_i32 : i32, i32
  }
}

</mosaic_0001>

<bundles_post_ra>
// kernel: tpu_custom_call.1
= control target key start
LH: loop header
LB: loop body
LE: loop exit
PB: predicated region body
PF: predicated region fallthrough
CT: control target
= control target key end

     0   :  { %12 = vsyncpa [#allocation3], 0  ;;  %s9508_s0 = inlined_call_operand.hbm [shape: f32[8,784], index: 0, kind: input, shape index: {}]   ;;  %s9509_s1 = inlined_call_operand.hbm [shape: bf16[784,1024], index: 1, kind: input, shape index: {}]   ;;  %s9510_s2 = inlined_call_operand.hbm [shape: f32[1,1024], index: 2, kind: input, shape index: {}]   ;;  %s9511_s3 = inlined_call_operand.hbm [shape: bf16[1024,512], index: 3, kind: input, shape index: {}]   ;;  %s9512_s4 = inlined_call_operand.hbm [shape: f32[1,512], index: 4, kind: input, shape index: {}]   ;;  %s9513_s5 = inlined_call_operand.hbm [shape: bf16[512,128], index: 5, kind: input, shape index: {}]   ;;  %s9514_s6 = inlined_call_operand.hbm [shape: f32[1,128], index: 6, kind: input, shape index: {}]   ;;  %s9515_s7 = inlined_call_operand.hbm [shape: f32[8,128], index: 7, kind: output, shape index: {}]  }
   0x1   :  { %13 = vsyncpa [#allocation6], 0 }
   0x2   :  { %14 = vsyncpa [#allocation9], 0 }
   0x3   :  { %15 = vsyncpa [#allocation12], 0  ;;  %s32_s26 = sshll.u32 %s9509_s1, 4  ;;  %s33_s26 = int_to_ptr.hbm [resolvable:$true] %s32_s26 }
   0x4   :  { %16 = vsyncpa [#allocation4], 0  ;;  %s9192_s27 = smov [#allocation5]   ;;  %s56_s8 = sshll.u32 %s9511_s3, 4  ;;  %s57_s8 = int_to_ptr.hbm [resolvable:$true] %s56_s8 }
   0x5   :  { %s34_s28 = sshll.u32 %s9192_s27, 4  ;;  %s9193_s9 = smov 512   ;;  %s35_s28 = int_to_ptr.vmem [resolvable:$true] %s34_s28 }
   0x6   :  { %s9194_s10 = smov 32   ;;  %s9195_s11 = smov [#allocation8]  }
   0x7   :  { %40 = dma.hbm_to_vmem [thread:$0]  %s33_s26, 50176, %s35_s28, [#allocation6], %s9193_s9, %s9193_s9, %s9194_s10  }
   0x8   :  { %s58_s12 = sshll.u32 %s9195_s11, 4  ;;  %s9196_s13 = smov 256   ;;  %s59_s12 = int_to_ptr.vmem [resolvable:$true] %s58_s12 }
   0x9   :  { %s9197_s14 = smov 16   ;;  %s80_s16 = sshll.u32 %s9513_s5, 4  ;;  %s81_s16 = int_to_ptr.hbm [resolvable:$true] %s80_s16 }
   0xa   :  { %64 = dma.hbm_to_vmem [thread:$0]  %s57_s8, 32768, %s59_s12, [#allocation9], %s9196_s13, %s9196_s13, %s9197_s14  }
   0xb   :  { %s9198_s17 = smov [#allocation11]   ;;  %s22_s20 = sshll.u32 %s9508_s0, 4  ;;  %s23_s20 = int_to_ptr.hbm [resolvable:$true] %s22_s20 }
   0xc   :  { %s82_s18 = sshll.u32 %s9198_s17, 4  ;;  %s9199_s21 = smov 64   ;;  %s83_s18 = int_to_ptr.vmem [resolvable:$true] %s82_s18 }
   0xd   :  { %s9200_s22 = smov 4   ;;  %s9201_s23 = smov [#allocation2]  }
   0xe   :  { %88 = dma.hbm_to_vmem [thread:$0]  %s81_s16, 4096, %s83_s18, [#allocation12], %s9199_s21, %s9199_s21, %s9200_s22  }
   0xf   :  { %s24_s24 = sshll.u32 %s9201_s23, 4  ;;  %s46_s27 = sshll.u32 %s9510_s2, 4  ;;  %s25_s24 = int_to_ptr.vmem [resolvable:$true] %s24_s24  ;;  %s47_s27 = int_to_ptr.hbm [resolvable:$true] %s46_s27 }
  0x10   :  { %27 = dma.hbm_to_vmem [thread:$0]  %s23_s20, 896, %s25_s24, [#allocation3]  }
  0x11   :  { %s70_s29 = sshll.u32 %s9512_s4, 4  ;;  %s9202_s30 = smov [#allocation7]   ;;  %s71_s29 = int_to_ptr.hbm [resolvable:$true] %s70_s29 }
  0x12   :  { %s48_s8 = sshll.u32 %s9202_s30, 4  ;;  %s9203_s0 = smov [#allocation10]   ;;  %s49_s8 = int_to_ptr.vmem [resolvable:$true] %s48_s8 }
  0x13   :  { %51 = dma.hbm_to_vmem [thread:$0]  %s47_s27, 128, %s49_s8, [#allocation6]  }
  0x14   :  { %s72_s9 = sshll.u32 %s9203_s0, 4  ;;  %s94_s12 = sshll.u32 %s9514_s6, 4  ;;  %s73_s9 = int_to_ptr.vmem [resolvable:$true] %s72_s9  ;;  %s95_s12 = int_to_ptr.hbm [resolvable:$true] %s94_s12 }
  0x15   :  { %75 = dma.hbm_to_vmem [thread:$0]  %s71_s29, 64, %s73_s9, [#allocation9]  }
  0x16   :  { %s9204_s2 = smov [#allocation13]  }
  0x17   :  { %s96_s13 = sshll.u32 %s9204_s2, 4  ;;  %s97_s13 = int_to_ptr.vmem [resolvable:$true] %s96_s13 }
  0x18   :  { %99 = dma.hbm_to_vmem [thread:$0]  %s95_s12, 16, %s97_s13, [#allocation12]  }
  0x19   :  { %9182 = dma.done.wait [#allocation3], 896  }
  0x1a   :  { %9183 = vsyncadd [#allocation3], 4294966400 }
  0x1b   :  { %9184 = dma.done.wait [#allocation6], 50304  }
  0x1c   :  { %9185 = vsyncadd [#allocation6], 4294916992 }
  0x1d   :  { %9186 = dma.done.wait [#allocation9], 32832  }
  0x1e   :  { %9187 = vsyncadd [#allocation9], 4294934464 }
  0x1f   :  { %9188 = dma.done.wait [#allocation12], 4112  }
  0x20   :  { %9189 = vsyncadd [#allocation12], 4294963184  ;;  %v5790_v0 = vld [vmem:[#allocation5 + $0x1c0] sm:$0xf]  ;;  %vm2513_vm0 = vcmask 130048   ;;  %s9205_s4 = smov [#allocation14]  }
  0x21   :  { %v8352_v1 = vld [vmem:[#allocation5 + $0x1dc] sm:$0xf0]  ;;  %s5549_s6 = sshll.u32 %s9205_s4, 4  ;;  %s5551_s15 = sshll.u32 %s9515_s7, 4  ;;  %s5550_s6 = int_to_ptr.vmem [resolvable:$true] %s5549_s6  ;;  %s5552_s15 = int_to_ptr.hbm [resolvable:$true] %s5551_s15 }
  0x22   :  { %v6046_v2 = vld [vmem:[#allocation5 + $0x3c0] sm:$0xf]  ;;  %v5791_v3 = vor.u32 %v8352_v1, %v5790_v0 }
  0x23   :  { %v8416_v4 = vld [vmem:[#allocation5 + $0x3dc] sm:$0xf0] }
  0x24   :  { %v6302_v5 = vld [vmem:[#allocation5 + $0x5c0] sm:$0xf]  ;;  %v6047_v7 = vor.u32 %v8416_v4, %v6046_v2  ;;  %2517 = vmatpush.bf16.msra.mxu0 %v5791_v3 }
  0x25   :  { %v8480_v6 = vld [vmem:[#allocation5 + $0x5dc] sm:$0xf0] }
  0x26   :  { %v6303_v8 = vor.u32 %v8480_v6, %v6302_v5  ;;  %v6558_v9 = vld [vmem:[#allocation5 + $0x7c0] sm:$0xf]  ;;  %2530 = vmatpush.bf16.msra.mxu1 %v6047_v7 }
  0x27   :  { %v8544_v10 = vld [vmem:[#allocation5 + $0x7dc] sm:$0xf0] }
  0x28   :  { %v5758_v11 = vld [vmem:[#allocation5 + $0x180] sm:$0xf]  ;;  %v6559_v12 = vor.u32 %v8544_v10, %v6558_v9  ;;  %2543 = vmatpush.bf16.msra.mxu2 %v6303_v8 }
  0x29   :  { %v8344_v13 = vld [vmem:[#allocation5 + $0x19c] sm:$0xf0] }
  0x2a   :  { %v6014_v14 = vld [vmem:[#allocation5 + $0x380] sm:$0xf]  ;;  %v5759_v16 = vor.u32 %v8344_v13, %v5758_v11  ;;  %2556 = vmatpush.bf16.msra.mxu3 %v6559_v12 }
  0x2b   :  { %v8408_v15 = vld [vmem:[#allocation5 + $0x39c] sm:$0xf0] }
  0x2c   :  { %v6015_v17 = vor.u32 %v8408_v15, %v6014_v14  ;;  %v6270_v18 = vld [vmem:[#allocation5 + $0x580] sm:$0xf]  ;;  %2518 = vmatpush.bf16.msra.mxu0 %v5759_v16 }
  0x2d   :  { %v8472_v19 = vld [vmem:[#allocation5 + $0x59c] sm:$0xf0] }
  0x2e   :  { %v6526_v20 = vld [vmem:[#allocation5 + $0x780] sm:$0xf]  ;;  %v6271_v21 = vor.u32 %v8472_v19, %v6270_v18  ;;  %2531 = vmatpush.bf16.msra.mxu1 %v6015_v17 }
  0x2f   :  { %v8536_v22 = vld [vmem:[#allocation5 + $0x79c] sm:$0xf0] }
  0x30   :  { %v5726_v23 = vld [vmem:[#allocation5 + $0x140] sm:$0xf]  ;;  %v6527_v25 = vor.u32 %v8536_v22, %v6526_v20  ;;  %2544 = vmatpush.bf16.msra.mxu2 %v6271_v21 }
  0x31   :  { %v8336_v24 = vld [vmem:[#allocation5 + $0x15c] sm:$0xf0] }
  0x32   :  { %v5982_v26 = vld [vmem:[#allocation5 + $0x340] sm:$0xf]  ;;  %v5727_v29 = vor.u32 %v8336_v24, %v5726_v23  ;;  %2557 = vmatpush.bf16.msra.mxu3 %v6527_v25 }
  0x33   :  { %v8400_v27 = vld [vmem:[#allocation5 + $0x35c] sm:$0xf0] }
  0x34   :  { %v6238_v28 = vld [vmem:[#allocation5 + $0x540] sm:$0xf]  ;;  %v5983_v33 = vor.u32 %v8400_v27, %v5982_v26  ;;  %2519 = vmatpush.bf16.msra.mxu0 %v5727_v29 }
  0x35   :  { %v8464_v30 = vld [vmem:[#allocation5 + $0x55c] sm:$0xf0] }
  0x36   :  { %v6494_v31 = vld [vmem:[#allocation5 + $0x740] sm:$0xf]  ;;  %v6239_v34 = vor.u32 %v8464_v30, %v6238_v28  ;;  %2532 = vmatpush.bf16.msra.mxu1 %v5983_v33  ;;  %v8348_v33 = vld [vmem:[#allocation5 + $0x1c4] sm:$0xf] }
  0x37   :  { %v8528_v32 = vld [vmem:[#allocation5 + $0x75c] sm:$0xf0] }
  0x38   :  { %v5694_v35 = vld [vmem:[#allocation5 + $0x100] sm:$0xf]  ;;  %v6495_v38 = vor.u32 %v8528_v32, %v6494_v31  ;;  %2545 = vmatpush.bf16.msra.mxu2 %v6239_v34  ;;  %v5792_v34 = vld [vmem:[#allocation5 + $0x1e0] sm:$0xf0] }
  0x39   :  { %v8328_v36 = vld [vmem:[#allocation5 + $0x11c] sm:$0xf0] }
  0x3a   :  { %v5950_v37 = vld [vmem:[#allocation5 + $0x300] sm:$0xf]  ;;  %v5695_v44 = vor.u32 %v8328_v36, %v5694_v35  ;;  %2558 = vmatpush.bf16.msra.mxu3 %v6495_v38  ;;  %v131_v35 = vld [vmem:[#allocation2 + $0x10] sm:$0xff] }
  0x3b   :  { %v8392_v39 = vld [vmem:[#allocation5 + $0x31c] sm:$0xf0] }
  0x3c   :  { %v6206_v40 = vld [vmem:[#allocation5 + $0x500] sm:$0xf]  ;;  %v5951_v45 = vor.u32 %v8392_v39, %v5950_v37  ;;  %2520 = vmatpush.bf16.msra.mxu0 %v5695_v44  ;;  %v6048_v44 = vld [vmem:[#allocation5 + $0x3e0] sm:$0xf0] }
  0x3d   :  { %v8456_v41 = vld [vmem:[#allocation5 + $0x51c] sm:$0xf0] }
  0x3e   :  { %v6462_v42 = vld [vmem:[#allocation5 + $0x700] sm:$0xf]  ;;  %v6207_v46 = vor.u32 %v8456_v41, %v6206_v40  ;;  %2533 = vmatpush.bf16.msra.mxu1 %v5951_v45  ;;  %v129_v40 = vld [vmem:[#allocation2] sm:$0xff] }
  0x3f   :  { %v8520_v43 = vld [vmem:[#allocation5 + $0x71c] sm:$0xf0] }
  0x40   :  { %v5662_v47 = vld [vmem:[#allocation5 + $0xc0] sm:$0xf]  ;;  %v6463_v50 = vor.u32 %v8520_v43, %v6462_v42  ;;  %2546 = vmatpush.bf16.msra.mxu2 %v6207_v46  ;;  %v8412_v43 = vld [vmem:[#allocation5 + $0x3c4] sm:$0xf] }
  0x41   :  { %v8320_v48 = vld [vmem:[#allocation5 + $0xdc] sm:$0xf0] }
  0x42   :  { %v5918_v49 = vld [vmem:[#allocation5 + $0x2c0] sm:$0xf]  ;;  %v5663_v56 = vor.u32 %v8320_v48, %v5662_v47  ;;  %2559 = vmatpush.bf16.msra.mxu3 %v6463_v50  ;;  %v5795_v47 = vor.u32 %v8348_v33, %v5792_v34 }
  0x43   :  { %v8384_v51 = vld [vmem:[#allocation5 + $0x2dc] sm:$0xf0] }
  0x44   :  { %v6174_v52 = vld [vmem:[#allocation5 + $0x4c0] sm:$0xf]  ;;  %v5919_v57 = vor.u32 %v8384_v51, %v5918_v49  ;;  %2521 = vmatpush.bf16.msra.mxu0 %v5663_v56  ;;  %v9267_v51 = vpack.c.bf16 %v131_v35, %v131_v35  ;;  %v8380_v35 = vld [vmem:[#allocation5 + $0x2c4] sm:$0xf] }
  0x45   :  { %v8448_v53 = vld [vmem:[#allocation5 + $0x4dc] sm:$0xf0] }
  0x46   :  { %v6430_v54 = vld [vmem:[#allocation5 + $0x6c0] sm:$0xf]  ;;  %v6175_v58 = vor.u32 %v8448_v53, %v6174_v52  ;;  %2534 = vmatpush.bf16.msra.mxu1 %v5919_v57  ;;  %v8340_v53 = vld [vmem:[#allocation5 + $0x184] sm:$0xf] }
  0x47   :  { %v8512_v55 = vld [vmem:[#allocation5 + $0x6dc] sm:$0xf0] }
  0x48   :  { %v5630_v59 = vld [vmem:[#allocation5 + $0x80] sm:$0xf]  ;;  %v6431_v62 = vor.u32 %v8512_v55, %v6430_v54  ;;  %2547 = vmatpush.bf16.msra.mxu2 %v6175_v58  ;;  %v5760_v54 = vld [vmem:[#allocation5 + $0x1a0] sm:$0xf0]  ;;  %v9269_v55 = vpack.c.bf16 %v129_v40, %v129_v40  ;;  %v130_v58 = vld [vmem:[#allocation2 + $0x8] sm:$0xff] }
  0x49   :  { %v8312_v60 = vld [vmem:[#allocation5 + $0x9c] sm:$0xf0] }
  0x4a   :  { %v5886_v61 = vld [vmem:[#allocation5 + $0x280] sm:$0xf]  ;;  %v5631_v4 = vor.u32 %v8312_v60, %v5630_v59  ;;  %2560 = vmatpush.bf16.msra.mxu3 %v6431_v62  ;;  %v6051_v59 = vor.u32 %v8412_v43, %v6048_v44  ;;  %v6016_v62 = vld [vmem:[#allocation5 + $0x3a0] sm:$0xf0] }
  0x4b   :  { %v8376_v63 = vld [vmem:[#allocation5 + $0x29c] sm:$0xf0]  ;;  %v8308_v43 = vld [vmem:[#allocation5 + $0x84] sm:$0xf] }
  0x4c   :  { %v6142_v0 = vld [vmem:[#allocation5 + $0x480] sm:$0xf]  ;;  %v5887_v5 = vor.u32 %v8376_v63, %v5886_v61  ;;  %2522 = vmatpush.bf16.msra.mxu0 %v5631_v4  ;;  %v8404_v61 = vld [vmem:[#allocation5 + $0x384] sm:$0xf] }
  0x4d   :  { %v8440_v1 = vld [vmem:[#allocation5 + $0x49c] sm:$0xf0]  ;;  %v5632_v44 = vld [vmem:[#allocation5 + $0xa0] sm:$0xf0] }
  0x4e   :  { %v6398_v2 = vld [vmem:[#allocation5 + $0x680] sm:$0xf]  ;;  %v6143_v6 = vor.u32 %v8440_v1, %v6142_v0  ;;  %2535 = vmatpush.bf16.msra.mxu1 %v5887_v5  ;;  %v5763_v0 = vor.u32 %v8340_v53, %v5760_v54  ;;  %v8332_v5 = vld [vmem:[#allocation5 + $0x144] sm:$0xf] }
  0x4f   :  { %v8504_v3 = vld [vmem:[#allocation5 + $0x69c] sm:$0xf0] }
  0x50   :  { %v5598_v7 = vld [vmem:[#allocation5 + $0x40] sm:$0xf]  ;;  %v6399_v10 = vor.u32 %v8504_v3, %v6398_v2  ;;  %2548 = vmatpush.bf16.msra.mxu2 %v6143_v6  ;;  %v5728_v6 = vld [vmem:[#allocation5 + $0x160] sm:$0xf0] }
  0x51   :  { %v8304_v8 = vld [vmem:[#allocation5 + $0x5c] sm:$0xf0] }
  0x52   :  { %v5854_v9 = vld [vmem:[#allocation5 + $0x240] sm:$0xf]  ;;  %v5599_v16 = vor.u32 %v8304_v8, %v5598_v7  ;;  %2561 = vmatpush.bf16.msra.mxu3 %v6399_v10  ;;  %v9275_v7 = vpack.c.bf16 %v130_v58, %v130_v58  ;;  %v6019_v8 = vor.u32 %v8404_v61, %v6016_v62  ;;  %v8396_v10 = vld [vmem:[#allocation5 + $0x344] sm:$0xf] }
  0x53   :  { %v8368_v11 = vld [vmem:[#allocation5 + $0x25c] sm:$0xf0] }
  0x54   :  { %v6110_v12 = vld [vmem:[#allocation5 + $0x440] sm:$0xf]  ;;  %v5855_v20 = vor.u32 %v8368_v11, %v5854_v9  ;;  %2523 = vmatpush.bf16.msra.mxu0 %v5599_v16  ;;  %v5984_v11 = vld [vmem:[#allocation5 + $0x360] sm:$0xf0] }
  0x55   :  { %v8432_v13 = vld [vmem:[#allocation5 + $0x45c] sm:$0xf0] }
  0x56   :  { %v6366_v14 = vld [vmem:[#allocation5 + $0x640] sm:$0xf]  ;;  %v6111_v21 = vor.u32 %v8432_v13, %v6110_v12  ;;  %2536 = vmatpush.bf16.msra.mxu1 %v5855_v20  ;;  %v5731_v13 = vor.u32 %v8332_v5, %v5728_v6  ;;  %v5987_v20 = vor.u32 %v8396_v10, %v5984_v11  ;;  %v8476_v10 = vld [vmem:[#allocation5 + $0x5c4] sm:$0xf] }
  0x57   :  { %v8496_v15 = vld [vmem:[#allocation5 + $0x65c] sm:$0xf0]  ;;  %v6304_v11 = vld [vmem:[#allocation5 + $0x5e0] sm:$0xf0] }
  0x58   :  { %v5566_v17 = vld [vmem:[#allocation5] sm:$0xf]  ;;  %v6367_v25 = vor.u32 %v8496_v15, %v6366_v14  ;;  %2549 = vmatpush.bf16.msra.mxu2 %v6111_v21 }
  0x59   :  { %v8296_v18 = vld [vmem:[#allocation5 + $0x1c] sm:$0xf0] }
  0x5a   :  { %v5822_v19 = vld [vmem:[#allocation5 + $0x200] sm:$0xf]  ;;  %v5567_v32 = vor.u32 %v8296_v18, %v5566_v17  ;;  %2562 = vmatpush.bf16.msra.mxu3 %v6367_v25  ;;  %v8324_v18 = vld [vmem:[#allocation5 + $0x104] sm:$0xf] }
  0x5b   :  { %v8360_v22 = vld [vmem:[#allocation5 + $0x21c] sm:$0xf0] }
  0x5c   :  { %v6078_v23 = vld [vmem:[#allocation5 + $0x400] sm:$0xf]  ;;  %v5823_v36 = vor.u32 %v8360_v22, %v5822_v19  ;;  %2524 = vmatpush.bf16.msra.mxu0 %v5567_v32  ;;  %v5696_v19 = vld [vmem:[#allocation5 + $0x120] sm:$0xf0]  ;;  %v135_v32 = vld [vmem:[#allocation2 + $0x30] sm:$0xff] }
  0x5d   :  { %v8424_v24 = vld [vmem:[#allocation5 + $0x41c] sm:$0xf0]  ;;  %v8388_v22 = vld [vmem:[#allocation5 + $0x304] sm:$0xf]  ;;  %v5699_v25 = vor.u32 %v8324_v18, %v5696_v19  ;;  %v133_v18 = vld [vmem:[#allocation2 + $0x20] sm:$0xff] }
  0x5e   :  { %v6334_v26 = vld [vmem:[#allocation5 + $0x600] sm:$0xf]  ;;  %v6079_v37 = vor.u32 %v8424_v24, %v6078_v23  ;;  %2537 = vmatpush.bf16.msra.mxu1 %v5823_v36  ;;  %v5952_v23 = vld [vmem:[#allocation5 + $0x320] sm:$0xf0] }
  0x5f   :  { %v8488_v27 = vld [vmem:[#allocation5 + $0x61c] sm:$0xf0]  ;;  %2525 = vmatmul.bf16.vlgmr.msra.gmra.mxu0 %v9269_v55  ;;  %v5955_v33 = vor.u32 %v8388_v22, %v5952_v23  ;;  %v5920_v36 = vld [vmem:[#allocation5 + $0x2e0] sm:$0xf0]  ;;  %v134_v23 = vld [vmem:[#allocation2 + $0x28] sm:$0xff] }
  0x60   :  { %v6814_v28 = vld [vmem:[#allocation5 + $0x9c0] sm:$0xf]  ;;  %v6335_v41 = vor.u32 %v8488_v27, %v6334_v26  ;;  %2550 = vmatpush.bf16.msra.mxu2 %v6079_v37  ;;  %v5824_v22 = vld [vmem:[#allocation5 + $0x220] sm:$0xf0] }
  0x61   :  { %v8608_v29 = vld [vmem:[#allocation5 + $0x9dc] sm:$0xf0]  ;;  %2538 = vmatmul.bf16.vlgmr.msra.gmra.mxu1 %v9275_v7 }
  0x62   :  { %v7070_v30 = vld [vmem:[#allocation5 + $0xbc0] sm:$0xf]  ;;  %v6815_v42 = vor.u32 %v8608_v29, %v6814_v28  ;;  %2563 = vmatpush.bf16.msra.mxu3 %v6335_v41 }
  0x63   :  { %v8672_v31 = vld [vmem:[#allocation5 + $0xbdc] sm:$0xf0]  ;;  %2551 = vmatmul.bf16.vlgmr.msra.gmra.mxu2 %v9267_v51 }
  0x64   :  { %v7102_v38 = vld [vmem:[#allocation5 + $0xc00] sm:$0xf]  ;;  %v7071_v46 = vor.u32 %v8672_v31, %v7070_v30  ;;  %2569 = vmatpush.bf16.msrb.mxu0 %v6815_v42  ;;  %v8316_v30 = vld [vmem:[#allocation5 + $0xc4] sm:$0xf] }
  0x65   :  { %v8680_v39 = vld [vmem:[#allocation5 + $0xc1c] sm:$0xf0]  ;;  %v5664_v31 = vld [vmem:[#allocation5 + $0xe0] sm:$0xf0] }
  0x66   :  { %v132_v45 = vld [vmem:[#allocation2 + $0x18] sm:$0xff]  ;;  %v7103_v56 = vor.u32 %v8680_v39, %v7102_v38  ;;  %2582 = vmatpush.bf16.msrb.mxu1 %v7071_v46  ;;  %2608 = vmatpush.bf16.msrb.mxu3 %v5795_v47  ;;  %v5667_v38 = vor.u32 %v8316_v30, %v5664_v31  ;;  %v5923_v46 = vor.u32 %v8380_v35, %v5920_v36 }
  0x67   :  { %v6782_v48 = vld [vmem:[#allocation5 + $0x980] sm:$0xf]  ;;  %v9271_v57 = vpack.c.bf16 %v132_v45, %v132_v45  ;;  %v9279_v45 = vpack.c.bf16 %v135_v32, %v135_v32  ;;  %v9283_v30 = vpack.c.bf16 %v133_v18, %v133_v18  ;;  %v6272_v31 = vld [vmem:[#allocation5 + $0x5a0] sm:$0xf0]  ;;  %v9285_v35 = vpack.c.bf16 %v134_v23, %v134_v23 }
  0x68   :  { %v8600_v49 = vld [vmem:[#allocation5 + $0x99c] sm:$0xf0]  ;;  %2602 = vmatpush.bf16.msrb.mxu2 %v7103_v56  ;;  %v8532_v32 = vld [vmem:[#allocation5 + $0x784] sm:$0xf] }
  0x69   :  { %v7038_v50 = vld [vmem:[#allocation5 + $0xb80] sm:$0xf]  ;;  %v6783_v60 = vor.u32 %v8600_v49, %v6782_v48  ;;  %2564 = vmatmul.bf16.vlgmr.msra.gmra.mxu3 %v9271_v57  ;;  %v8372_v48 = vld [vmem:[#allocation5 + $0x284] sm:$0xf] }
  0x6a   :  { %v8664_v52 = vld [vmem:[#allocation5 + $0xb9c] sm:$0xf0]  ;;  %2609 = vmatpush.bf16.msrb.mxu3 %v5763_v0  ;;  %v5888_v49 = vld [vmem:[#allocation5 + $0x2a0] sm:$0xf0] }
  0x6b   :  { %v7039_v63 = vor.u32 %v8664_v52, %v7038_v50  ;;  %v6750_v1 = vld [vmem:[#allocation5 + $0x940] sm:$0xf]  ;;  %2570 = vmatpush.bf16.msrb.mxu0 %v6783_v60  ;;  %v5635_v52 = vor.u32 %v8308_v43, %v5632_v44  ;;  %v5600_v60 = vld [vmem:[#allocation5 + $0x60] sm:$0xf0]  ;;  %v5891_v61 = vor.u32 %v8372_v48, %v5888_v49 }
  0x6c   :  { %v8592_v2 = vld [vmem:[#allocation5 + $0x95c] sm:$0xf0]  ;;  %2621 = vmatpush.bf16.msra.mxu2 %v6051_v59  ;;  %v8300_v59 = vld [vmem:[#allocation5 + $0x44] sm:$0xf] }
  0x6d   :  { %v7006_v3 = vld [vmem:[#allocation5 + $0xb40] sm:$0xf]  ;;  %v6751_v9 = vor.u32 %v8592_v2, %v6750_v1  ;;  %2583 = vmatpush.bf16.msrb.mxu1 %v7039_v63  ;;  %v8364_v63 = vld [vmem:[#allocation5 + $0x244] sm:$0xf] }
  0x6e   :  { %v8656_v4 = vld [vmem:[#allocation5 + $0xb5c] sm:$0xf0]  ;;  %2610 = vmatpush.bf16.msrb.mxu3 %v5731_v13  ;;  %v5856_v0 = vld [vmem:[#allocation5 + $0x260] sm:$0xf0] }
  0x6f   :  { %v7007_v12 = vor.u32 %v8656_v4, %v7006_v3  ;;  %v6718_v14 = vld [vmem:[#allocation5 + $0x900] sm:$0xf]  ;;  %2571 = vmatpush.bf16.msrb.mxu0 %v6751_v9  ;;  %v5603_v3 = vor.u32 %v8300_v59, %v5600_v60  ;;  %v5568_v9 = vld [vmem:[#allocation5 + $0x20] sm:$0xf0] }
  0x70   :  { %v8584_v15 = vld [vmem:[#allocation5 + $0x91c] sm:$0xf0]  ;;  %2622 = vmatpush.bf16.msra.mxu2 %v6019_v8  ;;  %v8292_v8 = vld [vmem:[#allocation5 + $0x4] sm:$0xf] }
  0x71   :  { %v6974_v16 = vld [vmem:[#allocation5 + $0xb00] sm:$0xf]  ;;  %v6719_v21 = vor.u32 %v8584_v15, %v6718_v14  ;;  %2584 = vmatpush.bf16.msrb.mxu1 %v7007_v12  ;;  %v8540_v12 = vld [vmem:[#allocation5 + $0x7c4] sm:$0xf]  ;;  %v5859_v14 = vor.u32 %v8364_v63, %v5856_v0 }
  0x72   :  { %v8648_v17 = vld [vmem:[#allocation5 + $0xb1c] sm:$0xf0]  ;;  %2611 = vmatpush.bf16.msrb.mxu3 %v5699_v25  ;;  %v6560_v13 = vld [vmem:[#allocation5 + $0x7e0] sm:$0xf0] }
  0x73   :  { %v6975_v24 = vor.u32 %v8648_v17, %v6974_v16  ;;  %v6686_v26 = vld [vmem:[#allocation5 + $0x8c0] sm:$0xf]  ;;  %2572 = vmatpush.bf16.msrb.mxu0 %v6719_v21  ;;  %7132 = vmatmul.msk.bf16.vlgmr.msrb.gmra.mxu2 %vm2513_vm0, %v9279_v45  ;;  %v8604_v16 = vld [vmem:[#allocation5 + $0x9c4] sm:$0xf]  ;;  %v6563_v25 = vor.u32 %v8540_v12, %v6560_v13 }
  0x74   :  { %v8576_v27 = vld [vmem:[#allocation5 + $0x8dc] sm:$0xf0]  ;;  %2623 = vmatpush.bf16.msra.mxu2 %v5987_v20  ;;  %v6816_v17 = vld [vmem:[#allocation5 + $0x9e0] sm:$0xf0]  ;;  %v5571_v20 = vor.u32 %v8292_v8, %v5568_v9 }
  0x75   :  { %v6942_v28 = vld [vmem:[#allocation5 + $0xac0] sm:$0xf]  ;;  %v6687_v34 = vor.u32 %v8576_v27, %v6686_v26  ;;  %2585 = vmatpush.bf16.msrb.mxu1 %v6975_v24  ;;  %v8356_v21 = vld [vmem:[#allocation5 + $0x204] sm:$0xf]  ;;  %v6307_v24 = vor.u32 %v8476_v10, %v6304_v11 }
  0x76   :  { %v8640_v29 = vld [vmem:[#allocation5 + $0xadc] sm:$0xf0]  ;;  %2612 = vmatpush.bf16.msrb.mxu3 %v5667_v38  ;;  %v8668_v26 = vld [vmem:[#allocation5 + $0xbc4] sm:$0xf] }
  0x77   :  { %v6943_v37 = vor.u32 %v8640_v29, %v6942_v28  ;;  %v6654_v39 = vld [vmem:[#allocation5 + $0x880] sm:$0xf]  ;;  %2573 = vmatpush.bf16.msrb.mxu0 %v6687_v34  ;;  %v7072_v27 = vld [vmem:[#allocation5 + $0xbe0] sm:$0xf0]  ;;  %v6819_v29 = vor.u32 %v8604_v16, %v6816_v17  ;;  %v5827_v34 = vor.u32 %v8356_v21, %v5824_v22 }
  0x78   :  { %v8568_v40 = vld [vmem:[#allocation5 + $0x89c] sm:$0xf0]  ;;  %2624 = vmatpush.bf16.msra.mxu2 %v5955_v33  ;;  %v8468_v28 = vld [vmem:[#allocation5 + $0x584] sm:$0xf]  ;;  %v7075_v38 = vor.u32 %v8668_v26, %v7072_v27 }
  0x79   :  { %v6910_v41 = vld [vmem:[#allocation5 + $0xa80] sm:$0xf]  ;;  %v6655_v47 = vor.u32 %v8568_v40, %v6654_v39  ;;  %2586 = vmatpush.bf16.msrb.mxu1 %v6943_v37  ;;  %v6528_v33 = vld [vmem:[#allocation5 + $0x7a0] sm:$0xf0]  ;;  %v6275_v39 = vor.u32 %v8468_v28, %v6272_v31 }
  0x7a   :  { %v8632_v42 = vld [vmem:[#allocation5 + $0xa9c] sm:$0xf0]  ;;  %2613 = vmatpush.bf16.msrb.mxu3 %v5635_v52  ;;  %v8596_v36 = vld [vmem:[#allocation5 + $0x984] sm:$0xf]  ;;  %v6531_v40 = vor.u32 %v8532_v32, %v6528_v33 }
  0x7b   :  { %v6911_v50 = vor.u32 %v8632_v42, %v6910_v41  ;;  %v6622_v53 = vld [vmem:[#allocation5 + $0x840] sm:$0xf]  ;;  %2574 = vmatpush.bf16.msrb.mxu0 %v6655_v47  ;;  %v6784_v37 = vld [vmem:[#allocation5 + $0x9a0] sm:$0xf0] }
  0x7c   :  { %v8560_v54 = vld [vmem:[#allocation5 + $0x85c] sm:$0xf0]  ;;  %2625 = vmatpush.bf16.msra.mxu2 %v5923_v46  ;;  %v8660_v41 = vld [vmem:[#allocation5 + $0xb84] sm:$0xf]  ;;  %v6787_v44 = vor.u32 %v8596_v36, %v6784_v37 }
  0x7d   :  { %v6878_v56 = vld [vmem:[#allocation5 + $0xa40] sm:$0xf]  ;;  %v6623_v62 = vor.u32 %v8560_v54, %v6622_v53  ;;  %2587 = vmatpush.bf16.msrb.mxu1 %v6911_v50  ;;  %v7040_v42 = vld [vmem:[#allocation5 + $0xba0] sm:$0xf0] }
  0x7e   :  { %v8624_v58 = vld [vmem:[#allocation5 + $0xa5c] sm:$0xf0]  ;;  %2614 = vmatpush.bf16.msrb.mxu3 %v5603_v3  ;;  %v8460_v43 = vld [vmem:[#allocation5 + $0x544] sm:$0xf]  ;;  %v7043_v52 = vor.u32 %v8660_v41, %v7040_v42 }
  0x7f   :  { %v6590_v1 = vld [vmem:[#allocation5 + $0x800] sm:$0xf]  ;;  %v6879_v2 = vor.u32 %v8624_v58, %v6878_v56  ;;  %2575 = vmatpush.bf16.msrb.mxu0 %v6623_v62  ;;  %v6240_v46 = vld [vmem:[#allocation5 + $0x560] sm:$0xf0] }
  0x80   :  { %v8552_v4 = vld [vmem:[#allocation5 + $0x81c] sm:$0xf0]  ;;  %2626 = vmatpush.bf16.msra.mxu2 %v5891_v61  ;;  %v8524_v47 = vld [vmem:[#allocation5 + $0x744] sm:$0xf]  ;;  %v6243_v53 = vor.u32 %v8460_v43, %v6240_v46 }
  0x81   :  { %v6846_v5 = vld [vmem:[#allocation5 + $0xa00] sm:$0xf]  ;;  %v6591_v15 = vor.u32 %v8552_v4, %v6590_v1  ;;  %2588 = vmatpush.bf16.msrb.mxu1 %v6879_v2  ;;  %v6496_v48 = vld [vmem:[#allocation5 + $0x760] sm:$0xf0] }
  0x82   :  { %v8616_v6 = vld [vmem:[#allocation5 + $0xa1c] sm:$0xf0]  ;;  %2615 = vmatpush.bf16.msrb.mxu3 %v5571_v20  ;;  %v8588_v49 = vld [vmem:[#allocation5 + $0x944] sm:$0xf]  ;;  %v6499_v54 = vor.u32 %v8524_v47, %v6496_v48 }
  0x83   :  { %v6847_v19 = vor.u32 %v8616_v6, %v6846_v5  ;;  %2576 = vmatpush.bf16.msrb.mxu0 %v6591_v15  ;;  %v6752_v50 = vld [vmem:[#allocation5 + $0x960] sm:$0xf0] }
  0x84   :  { %2627 = vmatpush.bf16.msra.mxu2 %v5859_v14  ;;  %v8652_v56 = vld [vmem:[#allocation5 + $0xb44] sm:$0xf]  ;;  %v6755_v60 = vor.u32 %v8588_v49, %v6752_v50 }
  0x85   :  { %2589 = vmatpush.bf16.msrb.mxu1 %v6847_v19  ;;  %2616 = vmatmul.bf16.vlgmr.msrb.gmra.mxu3 %v9269_v55  ;;  %v7008_v58 = vld [vmem:[#allocation5 + $0xb60] sm:$0xf0] }
  0x86   :  { %2660 = vmatpush.bf16.msra.mxu3 %v6819_v29  ;;  %2577 = vmatmul.bf16.vlgmr.msrb.gmra.mxu0 %v9283_v30  ;;  %v8452_v59 = vld [vmem:[#allocation5 + $0x504] sm:$0xf]  ;;  %v7011_v2 = vor.u32 %v8652_v56, %v7008_v58  ;;  %v5798_v56 = vld [vmem:[#allocation5 + $0x1c8] sm:$0xf] }
  0x87   :  { %2634 = vmatpush.bf16.msra.mxu0 %v6307_v24  ;;  %v6208_v61 = vld [vmem:[#allocation5 + $0x520] sm:$0xf0]  ;;  %v8353_v58 = vld [vmem:[#allocation5 + $0x1e4] sm:$0xf0] }
  0x88   :  { %2628 = vmatpush.bf16.msra.mxu2 %v5827_v34  ;;  %2590 = vmatmul.bf16.vlgmr.msrb.gmra.mxu1 %v9285_v35  ;;  %v8516_v62 = vld [vmem:[#allocation5 + $0x704] sm:$0xf]  ;;  %v6211_v3 = vor.u32 %v8452_v59, %v6208_v61  ;;  %v6310_v59 = vld [vmem:[#allocation5 + $0x5c8] sm:$0xf] }
  0x89   :  { %2647 = vmatpush.bf16.msra.mxu1 %v6563_v25  ;;  %v6464_v63 = vld [vmem:[#allocation5 + $0x720] sm:$0xf0]  ;;  %v8481_v61 = vld [vmem:[#allocation5 + $0x5e4] sm:$0xf0] }
  0x8a   :  { %2661 = vmatpush.bf16.msra.mxu3 %v6787_v44  ;;  %v8580_v0 = vld [vmem:[#allocation5 + $0x904] sm:$0xf]  ;;  %v6467_v4 = vor.u32 %v8516_v62, %v6464_v63 }
  0x8b   :  { %2635 = vmatpush.bf16.msra.mxu0 %v6275_v39  ;;  %2629 = vmatmul.bf16.vlgmr.msra.gmra.mxu2 %v9275_v7  ;;  %v6720_v1 = vld [vmem:[#allocation5 + $0x920] sm:$0xf0] }
  0x8c   :  { %2673 = vmatpush.bf16.msrb.mxu2 %v7075_v38  ;;  %v8644_v5 = vld [vmem:[#allocation5 + $0xb04] sm:$0xf]  ;;  %v6723_v9 = vor.u32 %v8580_v0, %v6720_v1 }
  0x8d   :  { %2648 = vmatpush.bf16.msra.mxu1 %v6531_v40  ;;  %v6976_v6 = vld [vmem:[#allocation5 + $0xb20] sm:$0xf0] }
  0x8e   :  { %v8444_v8 = vld [vmem:[#allocation5 + $0x4c4] sm:$0xf]  ;;  %2662 = vmatpush.bf16.msra.mxu3 %v6755_v60  ;;  %v6979_v15 = vor.u32 %v8644_v5, %v6976_v6  ;;  %v5799_v5 = vor.u32 %v8353_v58, %v5798_v56  ;;  %v6566_v6 = vld [vmem:[#allocation5 + $0x7c8] sm:$0xf] }
  0x8f   :  { %2636 = vmatpush.bf16.msra.mxu0 %v6243_v53  ;;  %v6176_v10 = vld [vmem:[#allocation5 + $0x4e0] sm:$0xf0]  ;;  %v8321_v56 = vld [vmem:[#allocation5 + $0xe4] sm:$0xf0] }
  0x90   :  { %2674 = vmatpush.bf16.msrb.mxu2 %v7043_v52  ;;  %v8508_v11 = vld [vmem:[#allocation5 + $0x6c4] sm:$0xf]  ;;  %v6179_v16 = vor.u32 %v8444_v8, %v6176_v10  ;;  %v8545_v8 = vld [vmem:[#allocation5 + $0x7e4] sm:$0xf0] }
  0x91   :  { %2649 = vmatpush.bf16.msra.mxu1 %v6499_v54  ;;  %v6432_v12 = vld [vmem:[#allocation5 + $0x6e0] sm:$0xf0]  ;;  %v6182_v58 = vld [vmem:[#allocation5 + $0x4c8] sm:$0xf] }
  0x92   :  { %v8572_v13 = vld [vmem:[#allocation5 + $0x8c4] sm:$0xf]  ;;  %v6435_v17 = vor.u32 %v8508_v11, %v6432_v12  ;;  %2663 = vmatpush.bf16.msra.mxu3 %v6723_v9  ;;  %v6311_v9 = vor.u32 %v8481_v61, %v6310_v59  ;;  %v6054_v11 = vld [vmem:[#allocation5 + $0x3c8] sm:$0xf] }
  0x93   :  { %v6688_v14 = vld [vmem:[#allocation5 + $0x8e0] sm:$0xf0]  ;;  %2637 = vmatpush.bf16.msra.mxu0 %v6211_v3  ;;  %v8417_v12 = vld [vmem:[#allocation5 + $0x3e4] sm:$0xf0] }
  0x94   :  { %2675 = vmatpush.bf16.msrb.mxu2 %v7011_v2  ;;  %v8636_v18 = vld [vmem:[#allocation5 + $0xac4] sm:$0xf]  ;;  %v6691_v21 = vor.u32 %v8572_v13, %v6688_v14  ;;  %v5766_v13 = vld [vmem:[#allocation5 + $0x188] sm:$0xf] }
  0x95   :  { %2650 = vmatpush.bf16.msra.mxu1 %v6467_v4  ;;  %v6944_v19 = vld [vmem:[#allocation5 + $0xae0] sm:$0xf0]  ;;  %v8449_v59 = vld [vmem:[#allocation5 + $0x4e4] sm:$0xf0] }
  0x96   :  { %v8436_v20 = vld [vmem:[#allocation5 + $0x484] sm:$0xf]  ;;  %v6947_v27 = vor.u32 %v8636_v18, %v6944_v19  ;;  %2664 = vmatpush.bf16.msra.mxu3 %v6691_v21  ;;  %v6567_v18 = vor.u32 %v8545_v8, %v6566_v6  ;;  %v6055_v19 = vor.u32 %v8417_v12, %v6054_v11  ;;  %v8537_v21 = vld [vmem:[#allocation5 + $0x7a4] sm:$0xf0] }
  0x97   :  { %v6144_v22 = vld [vmem:[#allocation5 + $0x4a0] sm:$0xf0]  ;;  %2638 = vmatpush.bf16.msra.mxu0 %v6179_v16  ;;  %v6278_v16 = vld [vmem:[#allocation5 + $0x588] sm:$0xf] }
  0x98   :  { %v8500_v23 = vld [vmem:[#allocation5 + $0x684] sm:$0xf]  ;;  %2676 = vmatpush.bf16.msrb.mxu2 %v6979_v15  ;;  %v6147_v28 = vor.u32 %v8436_v20, %v6144_v22  ;;  %v8345_v15 = vld [vmem:[#allocation5 + $0x1a4] sm:$0xf0] }
  0x99   :  { %v6400_v24 = vld [vmem:[#allocation5 + $0x6a0] sm:$0xf0]  ;;  %2651 = vmatpush.bf16.msra.mxu1 %v6435_v17  ;;  %v8473_v17 = vld [vmem:[#allocation5 + $0x5a4] sm:$0xf0]  ;;  %v5767_v22 = vor.u32 %v8345_v15, %v5766_v13 }
  0x9a   :  { %v8564_v25 = vld [vmem:[#allocation5 + $0x884] sm:$0xf]  ;;  %v6403_v29 = vor.u32 %v8500_v23, %v6400_v24  ;;  %v6534_v20 = vld [vmem:[#allocation5 + $0x788] sm:$0xf]  ;;  %v6279_v23 = vor.u32 %v8473_v17, %v6278_v16 }
  0x9b   :  { %v6656_v26 = vld [vmem:[#allocation5 + $0x8a0] sm:$0xf0]  ;;  %2639 = vmatpush.bf16.msra.mxu0 %v6147_v28  ;;  %v6022_v24 = vld [vmem:[#allocation5 + $0x388] sm:$0xf] }
  0x9c   :  { %v8628_v31 = vld [vmem:[#allocation5 + $0xa84] sm:$0xf]  ;;  %v6659_v34 = vor.u32 %v8564_v25, %v6656_v26  ;;  %2677 = vmatpush.bf16.msrb.mxu2 %v6947_v27  ;;  %v8409_v25 = vld [vmem:[#allocation5 + $0x3a4] sm:$0xf0] }
  0x9d   :  { %v6912_v32 = vld [vmem:[#allocation5 + $0xaa0] sm:$0xf0]  ;;  %2652 = vmatpush.bf16.msra.mxu1 %v6403_v29  ;;  %v5734_v26 = vld [vmem:[#allocation5 + $0x148] sm:$0xf] }
  0x9e   :  { %v8428_v33 = vld [vmem:[#allocation5 + $0x444] sm:$0xf]  ;;  %v6915_v41 = vor.u32 %v8628_v31, %v6912_v32  ;;  %2665 = vmatpush.bf16.msra.mxu3 %v6659_v34  ;;  %v8337_v27 = vld [vmem:[#allocation5 + $0x164] sm:$0xf0]  ;;  %v6535_v31 = vor.u32 %v8537_v21, %v6534_v20  ;;  %v6023_v32 = vor.u32 %v8409_v25, %v6022_v24 }
  0x9f   :  { %v6112_v36 = vld [vmem:[#allocation5 + $0x460] sm:$0xf0]  ;;  %v6246_v28 = vld [vmem:[#allocation5 + $0x548] sm:$0xf] }
  0xa0   :  { %v8492_v37 = vld [vmem:[#allocation5 + $0x644] sm:$0xf]  ;;  %v6115_v44 = vor.u32 %v8428_v33, %v6112_v36  ;;  %2678 = vmatpush.bf16.msrb.mxu2 %v6915_v41  ;;  %v8465_v29 = vld [vmem:[#allocation5 + $0x564] sm:$0xf0]  ;;  %v5735_v36 = vor.u32 %v8337_v27, %v5734_v26 }
  0xa1   :  { %v6368_v38 = vld [vmem:[#allocation5 + $0x660] sm:$0xf0]  ;;  %v6502_v33 = vld [vmem:[#allocation5 + $0x748] sm:$0xf] }
  0xa2   :  { %v8556_v39 = vld [vmem:[#allocation5 + $0x844] sm:$0xf]  ;;  %v6371_v46 = vor.u32 %v8492_v37, %v6368_v38  ;;  %2640 = vmatpush.bf16.msra.mxu0 %v6115_v44  ;;  %v8529_v34 = vld [vmem:[#allocation5 + $0x764] sm:$0xf0]  ;;  %v6247_v37 = vor.u32 %v8465_v29, %v6246_v28 }
  0xa3   :  { %v6624_v40 = vld [vmem:[#allocation5 + $0x860] sm:$0xf0]  ;;  %v5990_v38 = vld [vmem:[#allocation5 + $0x348] sm:$0xf]  ;;  %v6503_v44 = vor.u32 %v8529_v34, %v6502_v33 }
  0xa4   :  { %v8620_v42 = vld [vmem:[#allocation5 + $0xa44] sm:$0xf]  ;;  %v6627_v50 = vor.u32 %v8556_v39, %v6624_v40  ;;  %2653 = vmatpush.bf16.msra.mxu1 %v6371_v46  ;;  %v8401_v39 = vld [vmem:[#allocation5 + $0x364] sm:$0xf0] }
  0xa5   :  { %v6880_v43 = vld [vmem:[#allocation5 + $0xa60] sm:$0xf0]  ;;  %v5702_v40 = vld [vmem:[#allocation5 + $0x108] sm:$0xf]  ;;  %v5991_v46 = vor.u32 %v8401_v39, %v5990_v38 }
  0xa6   :  { %v8420_v47 = vld [vmem:[#allocation5 + $0x404] sm:$0xf]  ;;  %v6883_v60 = vor.u32 %v8620_v42, %v6880_v43  ;;  %2666 = vmatpush.bf16.msra.mxu3 %v6627_v50  ;;  %v8329_v41 = vld [vmem:[#allocation5 + $0x124] sm:$0xf0] }
  0xa7   :  { %v6080_v48 = vld [vmem:[#allocation5 + $0x420] sm:$0xf0]  ;;  %v6214_v42 = vld [vmem:[#allocation5 + $0x508] sm:$0xf] }
  0xa8   :  { %v8484_v49 = vld [vmem:[#allocation5 + $0x604] sm:$0xf]  ;;  %v6083_v0 = vor.u32 %v8420_v47, %v6080_v48  ;;  %2679 = vmatpush.bf16.msrb.mxu2 %v6883_v60  ;;  %v8457_v43 = vld [vmem:[#allocation5 + $0x524] sm:$0xf0] }
  0xa9   :  { %v6336_v52 = vld [vmem:[#allocation5 + $0x620] sm:$0xf0]  ;;  %v6470_v47 = vld [vmem:[#allocation5 + $0x708] sm:$0xf]  ;;  %v6215_v50 = vor.u32 %v8457_v43, %v6214_v42 }
  0xaa   :  { %v8548_v53 = vld [vmem:[#allocation5 + $0x804] sm:$0xf]  ;;  %v6339_v1 = vor.u32 %v8484_v49, %v6336_v52  ;;  %2641 = vmatpush.bf16.msra.mxu0 %v6083_v0  ;;  %v8521_v48 = vld [vmem:[#allocation5 + $0x724] sm:$0xf0]  ;;  %v5703_v49 = vor.u32 %v8329_v41, %v5702_v40 }
  0xab   :  { %v6592_v54 = vld [vmem:[#allocation5 + $0x820] sm:$0xf0]  ;;  %v5958_v52 = vld [vmem:[#allocation5 + $0x308] sm:$0xf]  ;;  %v6471_v60 = vor.u32 %v8521_v48, %v6470_v47 }
  0xac   :  { %v8676_v62 = vld [vmem:[#allocation5 + $0xc04] sm:$0xf]  ;;  %v6595_v4 = vor.u32 %v8548_v53, %v6592_v54  ;;  %2654 = vmatpush.bf16.msra.mxu1 %v6339_v1  ;;  %v8393_v53 = vld [vmem:[#allocation5 + $0x324] sm:$0xf0]  ;;  %v6183_v1 = vor.u32 %v8449_v59, %v6182_v58  ;;  %v6056_v59 = vld [vmem:[#allocation5 + $0x3e8] sm:$0xf0] }
  0xad   :  { %v7104_v63 = vld [vmem:[#allocation5 + $0xc20] sm:$0xf0]  ;;  %2642 = vmatmul.bf16.vlgmr.msra.gmra.mxu0 %v9267_v51  ;;  %v5670_v54 = vld [vmem:[#allocation5 + $0xc8] sm:$0xf]  ;;  %v5959_v61 = vor.u32 %v8393_v53, %v5958_v52  ;;  %v8349_v53 = vld [vmem:[#allocation5 + $0x1cc] sm:$0xf] }
  0xae   :  { %v8612_v2 = vld [vmem:[#allocation5 + $0xa04] sm:$0xf]  ;;  %v7107_v10 = vor.u32 %v8676_v62, %v7104_v63  ;;  %2667 = vmatpush.bf16.msra.mxu3 %v6595_v4  ;;  %2725 = vmatpush.bf16.msrb.mxu0 %v6311_v9  ;;  %v6438_v62 = vld [vmem:[#allocation5 + $0x6c8] sm:$0xf]  ;;  %v5671_v0 = vor.u32 %v8321_v56, %v5670_v54  ;;  %v5800_v54 = vld [vmem:[#allocation5 + $0x1e8] sm:$0xf0] }
  0xaf   :  { %v6848_v3 = vld [vmem:[#allocation5 + $0xa20] sm:$0xf0]  ;;  %2655 = vmatmul.bf16.vlgmr.msra.gmra.mxu1 %v9271_v57  ;;  %v8513_v63 = vld [vmem:[#allocation5 + $0x6e4] sm:$0xf0]  ;;  %v8413_v56 = vld [vmem:[#allocation5 + $0x3cc] sm:$0xf] }
  0xb0   :  { %v6851_v14 = vor.u32 %v8612_v2, %v6848_v3  ;;  %2699 = vmatpush.bf16.msrb.mxu1 %v5799_v5  ;;  %v5926_v2 = vld [vmem:[#allocation5 + $0x2c8] sm:$0xf]  ;;  %v6439_v9 = vor.u32 %v8513_v63, %v6438_v62 }
  0xb1   :  { %2668 = vmatmul.bf16.vlgmr.msra.gmra.mxu3 %v9283_v30  ;;  %v8385_v3 = vld [vmem:[#allocation5 + $0x2e4] sm:$0xf0] }
  0xb2   :  { %2693 = vmatpush.bf16.msrb.mxu3 %v7107_v10  ;;  %2680 = vmatpush.bf16.msrb.mxu2 %v6851_v14  ;;  %v5638_v4 = vld [vmem:[#allocation5 + $0x88] sm:$0xf]  ;;  %v5927_v10 = vor.u32 %v8385_v3, %v5926_v2  ;;  %v6059_v3 = vor.u32 %v8413_v56, %v6056_v59 }
  0xb3   :  { %2726 = vmatpush.bf16.msrb.mxu0 %v6279_v23  ;;  %v8313_v5 = vld [vmem:[#allocation5 + $0xa4] sm:$0xf0] }
  0xb4   :  { %2700 = vmatpush.bf16.msrb.mxu1 %v5767_v22  ;;  %v6150_v6 = vld [vmem:[#allocation5 + $0x488] sm:$0xf]  ;;  %v5639_v13 = vor.u32 %v8313_v5, %v5638_v4  ;;  %v8341_v5 = vld [vmem:[#allocation5 + $0x18c] sm:$0xf] }
  0xb5   :  { %2681 = vmatmul.bf16.vlgmr.msrb.gmra.mxu2 %v9285_v35  ;;  %v8441_v8 = vld [vmem:[#allocation5 + $0x4a4] sm:$0xf0] }
  0xb6   :  { %2738 = vmatpush.bf16.msra.mxu2 %v6567_v18  ;;  %2712 = vmatpush.bf16.msra.mxu3 %v6055_v19  ;;  %v6406_v11 = vld [vmem:[#allocation5 + $0x688] sm:$0xf]  ;;  %v6151_v14 = vor.u32 %v8441_v8, %v6150_v6  ;;  %v5768_v6 = vld [vmem:[#allocation5 + $0x1a8] sm:$0xf0] }
  0xb7   :  { %2727 = vmatpush.bf16.msrb.mxu0 %v6247_v37  ;;  %v8505_v12 = vld [vmem:[#allocation5 + $0x6a4] sm:$0xf0]  ;;  %v8405_v8 = vld [vmem:[#allocation5 + $0x38c] sm:$0xf] }
  0xb8   :  { %2701 = vmatpush.bf16.msrb.mxu1 %v5735_v36  ;;  %v5894_v15 = vld [vmem:[#allocation5 + $0x288] sm:$0xf]  ;;  %v6407_v21 = vor.u32 %v8505_v12, %v6406_v11 }
  0xb9   :  { %v8377_v16 = vld [vmem:[#allocation5 + $0x2a4] sm:$0xf0] }
  0xba   :  { %2739 = vmatpush.bf16.msra.mxu2 %v6535_v31  ;;  %2713 = vmatpush.bf16.msra.mxu3 %v6023_v32  ;;  %v5606_v17 = vld [vmem:[#allocation5 + $0x48] sm:$0xf]  ;;  %v5895_v22 = vor.u32 %v8377_v16, %v5894_v15 }
  0xbb   :  { %2728 = vmatpush.bf16.msrb.mxu0 %v6215_v50  ;;  %v8305_v18 = vld [vmem:[#allocation5 + $0x64] sm:$0xf0] }
  0xbc   :  { %2702 = vmatpush.bf16.msrb.mxu1 %v5703_v49  ;;  %v6118_v19 = vld [vmem:[#allocation5 + $0x448] sm:$0xf]  ;;  %v5607_v26 = vor.u32 %v8305_v18, %v5606_v17  ;;  %v8333_v18 = vld [vmem:[#allocation5 + $0x14c] sm:$0xf] }
  0xbd   :  { %v8433_v20 = vld [vmem:[#allocation5 + $0x464] sm:$0xf0] }
  0xbe   :  { %2740 = vmatpush.bf16.msra.mxu2 %v6503_v44  ;;  %2714 = vmatpush.bf16.msra.mxu3 %v5991_v46  ;;  %v5862_v23 = vld [vmem:[#allocation5 + $0x248] sm:$0xf]  ;;  %v6119_v27 = vor.u32 %v8433_v20, %v6118_v19  ;;  %v5736_v19 = vld [vmem:[#allocation5 + $0x168] sm:$0xf0] }
  0xbf   :  { %2729 = vmatpush.bf16.msrb.mxu0 %v6183_v1  ;;  %v6374_v24 = vld [vmem:[#allocation5 + $0x648] sm:$0xf]  ;;  %v8397_v20 = vld [vmem:[#allocation5 + $0x34c] sm:$0xf] }
  0xc0   :  { %2703 = vmatpush.bf16.msrb.mxu1 %v5671_v0  ;;  %v8497_v25 = vld [vmem:[#allocation5 + $0x664] sm:$0xf0]  ;;  %v5803_v0 = vor.u32 %v8349_v53, %v5800_v54 }
  0xc1   :  { %7133 = vmatmul.msk.bf16.vlgmr.msrb.gmra.mxu3 %vm2513_vm0, %v9279_v45  ;;  %v8369_v28 = vld [vmem:[#allocation5 + $0x264] sm:$0xf0]  ;;  %v6375_v36 = vor.u32 %v8497_v25, %v6374_v24  ;;  %v5739_v25 = vor.u32 %v8333_v18, %v5736_v19 }
  0xc2   :  { %2741 = vmatpush.bf16.msra.mxu2 %v6471_v60  ;;  %2715 = vmatpush.bf16.msra.mxu3 %v5959_v61  ;;  %v5574_v29 = vld [vmem:[#allocation5 + $0x8] sm:$0xf]  ;;  %v5863_v40 = vor.u32 %v8369_v28, %v5862_v23 }
  0xc3   :  { %2730 = vmatpush.bf16.msrb.mxu0 %v6151_v14  ;;  %v8297_v31 = vld [vmem:[#allocation5 + $0x24] sm:$0xf0] }
  0xc4   :  { %2704 = vmatpush.bf16.msrb.mxu1 %v5639_v13  ;;  %v6086_v32 = vld [vmem:[#allocation5 + $0x408] sm:$0xf]  ;;  %v5575_v44 = vor.u32 %v8297_v31, %v5574_v29  ;;  %v5771_v13 = vor.u32 %v8341_v5, %v5768_v6  ;;  %v8325_v31 = vld [vmem:[#allocation5 + $0x10c] sm:$0xf] }
  0xc5   :  { %v8425_v33 = vld [vmem:[#allocation5 + $0x424] sm:$0xf0] }
  0xc6   :  { %2742 = vmatpush.bf16.msra.mxu2 %v6439_v9  ;;  %2716 = vmatpush.bf16.msra.mxu3 %v5927_v10  ;;  %v6822_v34 = vld [vmem:[#allocation5 + $0x9c8] sm:$0xf]  ;;  %v6087_v46 = vor.u32 %v8425_v33, %v6086_v32  ;;  %v6024_v9 = vld [vmem:[#allocation5 + $0x3a8] sm:$0xf0] }
  0xc7   :  { %v8609_v37 = vld [vmem:[#allocation5 + $0x9e4] sm:$0xf0]  ;;  %2731 = vmatpush.bf16.msrb.mxu0 %v6119_v27  ;;  %v6027_v16 = vor.u32 %v8405_v8, %v6024_v9  ;;  %v5704_v32 = vld [vmem:[#allocation5 + $0x128] sm:$0xf0] }
  0xc8   :  { %v7110_v38 = vld [vmem:[#allocation5 + $0xc08] sm:$0xf]  ;;  %2705 = vmatpush.bf16.msrb.mxu1 %v5607_v26  ;;  %v6823_v50 = vor.u32 %v8609_v37, %v6822_v34  ;;  %v8389_v33 = vld [vmem:[#allocation5 + $0x30c] sm:$0xf] }
  0xc9   :  { %v8681_v39 = vld [vmem:[#allocation5 + $0xc24] sm:$0xf0]  ;;  %v5960_v34 = vld [vmem:[#allocation5 + $0x328] sm:$0xf0] }
  0xca   :  { %2743 = vmatpush.bf16.msra.mxu2 %v6407_v21  ;;  %2717 = vmatpush.bf16.msra.mxu3 %v5895_v22  ;;  %v5830_v41 = vld [vmem:[#allocation5 + $0x208] sm:$0xf]  ;;  %v7111_v52 = vor.u32 %v8681_v39, %v7110_v38  ;;  %v5992_v21 = vld [vmem:[#allocation5 + $0x368] sm:$0xf0]  ;;  %v5707_v39 = vor.u32 %v8325_v31, %v5704_v32 }
  0xcb   :  { %v6342_v42 = vld [vmem:[#allocation5 + $0x608] sm:$0xf]  ;;  %2732 = vmatpush.bf16.msrb.mxu0 %v6087_v46  ;;  %v5995_v28 = vor.u32 %v8397_v20, %v5992_v21  ;;  %v5672_v46 = vld [vmem:[#allocation5 + $0xe8] sm:$0xf0] }
  0xcc   :  { %v8489_v43 = vld [vmem:[#allocation5 + $0x624] sm:$0xf0]  ;;  %2706 = vmatpush.bf16.msrb.mxu1 %v5575_v44  ;;  %v8317_v44 = vld [vmem:[#allocation5 + $0xcc] sm:$0xf] }
  0xcd   :  { %v8361_v47 = vld [vmem:[#allocation5 + $0x224] sm:$0xf0]  ;;  %v6343_v58 = vor.u32 %v8489_v43, %v6342_v42  ;;  %v5963_v42 = vor.u32 %v8389_v33, %v5960_v34  ;;  %v5675_v53 = vor.u32 %v8317_v44, %v5672_v46  ;;  %v8301_v9 = vld [vmem:[#allocation5 + $0x4c] sm:$0xf] }
  0xce   :  { %v7078_v48 = vld [vmem:[#allocation5 + $0xbc8] sm:$0xf]  ;;  %2744 = vmatpush.bf16.msra.mxu2 %v6375_v36  ;;  %2718 = vmatpush.bf16.msra.mxu3 %v5863_v40  ;;  %v5831_v62 = vor.u32 %v8361_v47, %v5830_v41  ;;  %v8381_v47 = vld [vmem:[#allocation5 + $0x2cc] sm:$0xf] }
  0xcf   :  { %v8673_v49 = vld [vmem:[#allocation5 + $0xbe4] sm:$0xf0]  ;;  %2784 = vmatpush.bf16.msra.mxu0 %v7111_v52  ;;  %2707 = vmatmul.bf16.vlgmr.msrb.gmra.mxu1 %v9269_v55  ;;  %v8605_v31 = vld [vmem:[#allocation5 + $0x9cc] sm:$0xf] }
  0xd0   :  { %v6790_v60 = vld [vmem:[#allocation5 + $0x988] sm:$0xf]  ;;  %v7079_v63 = vor.u32 %v8673_v49, %v7078_v48  ;;  %2751 = vmatpush.bf16.msra.mxu1 %v6823_v50  ;;  %2733 = vmatmul.bf16.vlgmr.msrb.gmra.mxu0 %v9267_v51  ;;  %v5928_v48 = vld [vmem:[#allocation5 + $0x2e8] sm:$0xf0] }
  0xd1   :  { %v8601_v61 = vld [vmem:[#allocation5 + $0x9a4] sm:$0xf0]  ;;  %v6824_v32 = vld [vmem:[#allocation5 + $0x9e8] sm:$0xf0] }
  0xd2   :  { %v7046_v1 = vld [vmem:[#allocation5 + $0xb88] sm:$0xf]  ;;  %v6791_v4 = vor.u32 %v8601_v61, %v6790_v60  ;;  %2745 = vmatpush.bf16.msra.mxu2 %v6343_v58  ;;  %2719 = vmatpush.bf16.msra.mxu3 %v5831_v62  ;;  %v5931_v58 = vor.u32 %v8381_v47, %v5928_v48  ;;  %v8309_v60 = vld [vmem:[#allocation5 + $0x8c] sm:$0xf] }
  0xd3   :  { %v8665_v2 = vld [vmem:[#allocation5 + $0xba4] sm:$0xf0]  ;;  %2803 = vmatpush.bf16.msrb.mxu0 %v6059_v3  ;;  %v5640_v61 = vld [vmem:[#allocation5 + $0xa8] sm:$0xf0] }
  0xd4   :  { %v6758_v10 = vld [vmem:[#allocation5 + $0x948] sm:$0xf]  ;;  %v7047_v12 = vor.u32 %v8665_v2, %v7046_v1  ;;  %2752 = vmatpush.bf16.msra.mxu1 %v6791_v4  ;;  %v8373_v62 = vld [vmem:[#allocation5 + $0x28c] sm:$0xf]  ;;  %v5643_v3 = vor.u32 %v8309_v60, %v5640_v61 }
  0xd5   :  { %v8593_v11 = vld [vmem:[#allocation5 + $0x964] sm:$0xf0]  ;;  %2720 = vmatmul.bf16.vlgmr.msra.gmra.mxu3 %v9275_v7  ;;  %2746 = vmatmul.bf16.vlgmr.msra.gmra.mxu2 %v9271_v57  ;;  %v8669_v33 = vld [vmem:[#allocation5 + $0xbcc] sm:$0xf] }
  0xd6   :  { %2764 = vmatpush.bf16.msrb.mxu3 %v7079_v63  ;;  %2790 = vmatpush.bf16.msrb.mxu2 %v5803_v0  ;;  %v7014_v14 = vld [vmem:[#allocation5 + $0xb48] sm:$0xf]  ;;  %v6759_v17 = vor.u32 %v8593_v11, %v6758_v10  ;;  %v5896_v63 = vld [vmem:[#allocation5 + $0x2a8] sm:$0xf0] }
  0xd7   :  { %v8657_v15 = vld [vmem:[#allocation5 + $0xb64] sm:$0xf0]  ;;  %2804 = vmatpush.bf16.msrb.mxu0 %v6027_v16  ;;  %v5899_v6 = vor.u32 %v8373_v62, %v5896_v63  ;;  %v5608_v10 = vld [vmem:[#allocation5 + $0x68] sm:$0xf0] }
  0xd8   :  { %v6726_v22 = vld [vmem:[#allocation5 + $0x908] sm:$0xf]  ;;  %v7015_v24 = vor.u32 %v8657_v15, %v7014_v14  ;;  %2753 = vmatpush.bf16.msra.mxu1 %v6759_v17  ;;  %v8365_v11 = vld [vmem:[#allocation5 + $0x24c] sm:$0xf]  ;;  %v5611_v18 = vor.u32 %v8301_v9, %v5608_v10 }
  0xd9   :  { %v8585_v23 = vld [vmem:[#allocation5 + $0x924] sm:$0xf0]  ;;  %v8477_v15 = vld [vmem:[#allocation5 + $0x5cc] sm:$0xf] }
  0xda   :  { %2765 = vmatpush.bf16.msrb.mxu3 %v7047_v12  ;;  %2791 = vmatpush.bf16.msrb.mxu2 %v5771_v13  ;;  %v6982_v26 = vld [vmem:[#allocation5 + $0xb08] sm:$0xf]  ;;  %v6727_v29 = vor.u32 %v8585_v23, %v6726_v22  ;;  %v5864_v12 = vld [vmem:[#allocation5 + $0x268] sm:$0xf0] }
  0xdb   :  { %v8649_v27 = vld [vmem:[#allocation5 + $0xb24] sm:$0xf0]  ;;  %2805 = vmatpush.bf16.msrb.mxu0 %v5995_v28  ;;  %v6312_v16 = vld [vmem:[#allocation5 + $0x5e8] sm:$0xf0]  ;;  %v5867_v21 = vor.u32 %v8365_v11, %v5864_v12 }
  0xdc   :  { %v6694_v36 = vld [vmem:[#allocation5 + $0x8c8] sm:$0xf]  ;;  %v6983_v38 = vor.u32 %v8649_v27, %v6982_v26  ;;  %2754 = vmatpush.bf16.msra.mxu1 %v6727_v29  ;;  %v8293_v23 = vld [vmem:[#allocation5 + $0xc] sm:$0xf]  ;;  %v6315_v26 = vor.u32 %v8477_v15, %v6312_v16 }
  0xdd   :  { %v8577_v37 = vld [vmem:[#allocation5 + $0x8e4] sm:$0xf0]  ;;  %v5832_v27 = vld [vmem:[#allocation5 + $0x228] sm:$0xf0] }
  0xde   :  { %2766 = vmatpush.bf16.msrb.mxu3 %v7015_v24  ;;  %2792 = vmatpush.bf16.msrb.mxu2 %v5739_v25  ;;  %v6950_v40 = vld [vmem:[#allocation5 + $0xac8] sm:$0xf]  ;;  %v6695_v43 = vor.u32 %v8577_v37, %v6694_v36  ;;  %v5576_v24 = vld [vmem:[#allocation5 + $0x28] sm:$0xf0] }
  0xdf   :  { %v8641_v41 = vld [vmem:[#allocation5 + $0xae4] sm:$0xf0]  ;;  %2806 = vmatpush.bf16.msrb.mxu0 %v5963_v42  ;;  %v8357_v25 = vld [vmem:[#allocation5 + $0x20c] sm:$0xf]  ;;  %v6827_v42 = vor.u32 %v8605_v31, %v6824_v32 }
  0xe0   :  { %v6662_v49 = vld [vmem:[#allocation5 + $0x888] sm:$0xf]  ;;  %v6951_v52 = vor.u32 %v8641_v41, %v6950_v40  ;;  %2755 = vmatpush.bf16.msra.mxu1 %v6695_v43  ;;  %7134 = vmatmul.msk.bf16.vlgmr.msra.gmra.mxu0 %vm2513_vm0, %v9279_v45  ;;  %v8541_v28 = vld [vmem:[#allocation5 + $0x7cc] sm:$0xf]  ;;  %v5835_v40 = vor.u32 %v8357_v25, %v5832_v27 }
  0xe1   :  { %v8569_v50 = vld [vmem:[#allocation5 + $0x8a4] sm:$0xf0]  ;;  %v6568_v29 = vld [vmem:[#allocation5 + $0x7e8] sm:$0xf0] }
  0xe2   :  { %2767 = vmatpush.bf16.msrb.mxu3 %v6983_v38  ;;  %2793 = vmatpush.bf16.msrb.mxu2 %v5707_v39  ;;  %v6918_v54 = vld [vmem:[#allocation5 + $0xa88] sm:$0xf]  ;;  %v6663_v59 = vor.u32 %v8569_v50, %v6662_v49  ;;  %v7080_v36 = vld [vmem:[#allocation5 + $0xbe8] sm:$0xf0]  ;;  %v5579_v39 = vor.u32 %v8293_v23, %v5576_v24  ;;  %v6571_v41 = vor.u32 %v8541_v28, %v6568_v29  ;;  %v2539_v28 = vpop.f32.mrf.mxu1 }
  0xe3   :  { %v8633_v56 = vld [vmem:[#allocation5 + $0xaa4] sm:$0xf0]  ;;  %2807 = vmatpush.bf16.msrb.mxu0 %v5931_v58  ;;  %v8469_v37 = vld [vmem:[#allocation5 + $0x58c] sm:$0xf]  ;;  %v7083_v46 = vor.u32 %v8669_v33, %v7080_v36 }
  0xe4   :  { %v6630_v0 = vld [vmem:[#allocation5 + $0x848] sm:$0xf]  ;;  %v6919_v2 = vor.u32 %v8633_v56, %v6918_v54  ;;  %2756 = vmatpush.bf16.msra.mxu1 %v6663_v59  ;;  %v6280_v38 = vld [vmem:[#allocation5 + $0x5a8] sm:$0xf0]  ;;  %v9304_v56 = vld [vmem:[#allocation7] sm:$0xff] }
  0xe5   :  { %v8561_v1 = vld [vmem:[#allocation5 + $0x864] sm:$0xf0]  ;;  %v8533_v43 = vld [vmem:[#allocation5 + $0x78c] sm:$0xf]  ;;  %v6283_v47 = vor.u32 %v8469_v37, %v6280_v38 }
  0xe6   :  { %2768 = vmatpush.bf16.msrb.mxu3 %v6951_v52  ;;  %2794 = vmatpush.bf16.msrb.mxu2 %v5675_v53  ;;  %v6886_v4 = vld [vmem:[#allocation5 + $0xa48] sm:$0xf]  ;;  %v6631_v8 = vor.u32 %v8561_v1, %v6630_v0  ;;  %v6536_v44 = vld [vmem:[#allocation5 + $0x7a8] sm:$0xf0]  ;;  %v2552_v38 = vpop.f32.mrf.mxu2 }
  0xe7   :  { %v8625_v5 = vld [vmem:[#allocation5 + $0xa64] sm:$0xf0]  ;;  %2808 = vmatpush.bf16.msrb.mxu0 %v5899_v6  ;;  %v8597_v48 = vld [vmem:[#allocation5 + $0x98c] sm:$0xf]  ;;  %v6539_v58 = vor.u32 %v8533_v43, %v6536_v44  ;;  %v537_v6 = vperm.slane %v9304_v56, 0 }
  0xe8   :  { %v6598_v13 = vld [vmem:[#allocation5 + $0x808] sm:$0xf]  ;;  %v6887_v17 = vor.u32 %v8625_v5, %v6886_v4  ;;  %2757 = vmatpush.bf16.msra.mxu1 %v6631_v8  ;;  %v6792_v49 = vld [vmem:[#allocation5 + $0x9a8] sm:$0xf0] }
  0xe9   :  { %v8553_v14 = vld [vmem:[#allocation5 + $0x824] sm:$0xf0]  ;;  %v8661_v50 = vld [vmem:[#allocation5 + $0xb8c] sm:$0xf]  ;;  %v6795_v59 = vor.u32 %v8597_v48, %v6792_v49 }
  0xea   :  { %2769 = vmatpush.bf16.msrb.mxu3 %v6919_v2  ;;  %2795 = vmatpush.bf16.msrb.mxu2 %v5643_v3  ;;  %v6854_v19 = vld [vmem:[#allocation5 + $0xa08] sm:$0xf]  ;;  %v6599_v22 = vor.u32 %v8553_v14, %v6598_v13  ;;  %v7048_v52 = vld [vmem:[#allocation5 + $0xba8] sm:$0xf0] }
  0xeb   :  { %v8617_v20 = vld [vmem:[#allocation5 + $0xa24] sm:$0xf0]  ;;  %2809 = vmatpush.bf16.msrb.mxu0 %v5867_v21  ;;  %v8461_v53 = vld [vmem:[#allocation5 + $0x54c] sm:$0xf]  ;;  %v7051_v63 = vor.u32 %v8661_v50, %v7048_v52 }
  0xec   :  { %v6855_v34 = vor.u32 %v8617_v20, %v6854_v19  ;;  %2758 = vmatpush.bf16.msra.mxu1 %v6599_v22  ;;  %v6248_v54 = vld [vmem:[#allocation5 + $0x568] sm:$0xf0] }
  0xed   :  { %v8525_v60 = vld [vmem:[#allocation5 + $0x74c] sm:$0xf]  ;;  %v6251_v0 = vor.u32 %v8461_v53, %v6248_v54 }
  0xee   :  { %2770 = vmatpush.bf16.msrb.mxu3 %v6887_v17  ;;  %2796 = vmatpush.bf16.msrb.mxu2 %v5611_v18  ;;  %v6504_v61 = vld [vmem:[#allocation5 + $0x768] sm:$0xf0]  ;;  %v2526_v17 = vpop.f32.mrf.mxu0 }
  0xef   :  { %2759 = vmatmul.bf16.vlgmr.msra.gmra.mxu1 %v9283_v30  ;;  %2810 = vmatpush.bf16.msrb.mxu0 %v5835_v40  ;;  %v8589_v62 = vld [vmem:[#allocation5 + $0x94c] sm:$0xf]  ;;  %v6507_v8 = vor.u32 %v8525_v60, %v6504_v61  ;;  %v2527_v21 = vadd.f32 %v2526_v17, %v537_v6 }
  0xf0   :  { %2816 = vmatpush.bf16.msrb.mxu1 %v6315_v26  ;;  %v6760_v1 = vld [vmem:[#allocation5 + $0x968] sm:$0xf0] }
  0xf1   :  { %v8653_v2 = vld [vmem:[#allocation5 + $0xb4c] sm:$0xf]  ;;  %v6763_v9 = vor.u32 %v8589_v62, %v6760_v1  ;;  %v2540_v33 = vadd.f32 %v2539_v28, %v2527_v21  ;;  %v8418_v28 = vld [vmem:[#allocation5 + $0x3ec] sm:$0xf0] }
  0xf2   :  { %2771 = vmatpush.bf16.msrb.mxu3 %v6855_v34  ;;  %2797 = vmatpush.bf16.msrb.mxu2 %v5579_v39  ;;  %v7016_v3 = vld [vmem:[#allocation5 + $0xb68] sm:$0xf0] }
  0xf3   :  { %2855 = vmatpush.bf16.msra.mxu0 %v7083_v46  ;;  %v8453_v4 = vld [vmem:[#allocation5 + $0x50c] sm:$0xf]  ;;  %v7019_v12 = vor.u32 %v8653_v2, %v7016_v3 }
  0xf4   :  { %2817 = vmatpush.bf16.msrb.mxu1 %v6283_v47  ;;  %v6216_v5 = vld [vmem:[#allocation5 + $0x528] sm:$0xf0]  ;;  %2811 = vmatmul.bf16.vlgmr.msrb.gmra.mxu0 %v9275_v7 }
  0xf5   :  { %2772 = vmatmul.bf16.vlgmr.msrb.gmra.mxu3 %v9285_v35  ;;  %2798 = vmatmul.bf16.vlgmr.msrb.gmra.mxu2 %v9269_v55  ;;  %v8517_v10 = vld [vmem:[#allocation5 + $0x70c] sm:$0xf]  ;;  %v6219_v13 = vor.u32 %v8453_v4, %v6216_v5  ;;  %v2541_v5 = vpop.f32.mrf.mxu1 }
  0xf6   :  { %2829 = vmatpush.bf16.msra.mxu3 %v6571_v41  ;;  %2842 = vmatpush.bf16.msra.mxu2 %v6827_v42  ;;  %v6472_v11 = vld [vmem:[#allocation5 + $0x728] sm:$0xf0]  ;;  %v2553_v41 = vadd.f32 %v2552_v38, %v2540_v33  ;;  %v2565_v42 = vpop.f32.mrf.mxu3  ;;  %v2528_v52 = vpop.f32.mrf.mxu0  ;;  %v6574_v33 = vld [vmem:[#allocation5 + $0x7d0] sm:$0xf] }
  0xf7   :  { %2856 = vmatpush.bf16.msra.mxu0 %v7051_v63  ;;  %v8581_v14 = vld [vmem:[#allocation5 + $0x90c] sm:$0xf]  ;;  %v6475_v22 = vor.u32 %v8517_v10, %v6472_v11  ;;  %v2554_v10 = vpop.f32.mrf.mxu2  ;;  %v8538_v52 = vld [vmem:[#allocation5 + $0x7ac] sm:$0xf0] }
  0xf8   :  { %2818 = vmatpush.bf16.msrb.mxu1 %v6251_v0  ;;  %v6728_v15 = vld [vmem:[#allocation5 + $0x928] sm:$0xf0]  ;;  %v9310_v53 = vadd.f32 %v2565_v42, %v2553_v41  ;;  %v8346_v41 = vld [vmem:[#allocation5 + $0x1ac] sm:$0xf0] }
  0xf9   :  { %v8645_v16 = vld [vmem:[#allocation5 + $0xb0c] sm:$0xf]  ;;  %v6731_v23 = vor.u32 %v8581_v14, %v6728_v15  ;;  %v8330_v10 = vld [vmem:[#allocation5 + $0x12c] sm:$0xf0] }
  0xfa   :  { %2830 = vmatpush.bf16.msra.mxu3 %v6539_v58  ;;  %2843 = vmatpush.bf16.msra.mxu2 %v6795_v59  ;;  %v6984_v18 = vld [vmem:[#allocation5 + $0xb28] sm:$0xf0] }
  0xfb   :  { %v8445_v19 = vld [vmem:[#allocation5 + $0x4cc] sm:$0xf]  ;;  %2857 = vmatpush.bf16.msra.mxu0 %v7019_v12  ;;  %v6987_v26 = vor.u32 %v8645_v16, %v6984_v18 }
  0xfc   :  { %v6184_v20 = vld [vmem:[#allocation5 + $0x4e8] sm:$0xf0]  ;;  %2819 = vmatpush.bf16.msrb.mxu1 %v6219_v13 }
  0xfd   :  { %v8509_v24 = vld [vmem:[#allocation5 + $0x6cc] sm:$0xf]  ;;  %v6187_v27 = vor.u32 %v8445_v19, %v6184_v20 }
  0xfe   :  { %2831 = vmatpush.bf16.msra.mxu3 %v6507_v8  ;;  %2844 = vmatpush.bf16.msra.mxu2 %v6763_v9  ;;  %v6440_v25 = vld [vmem:[#allocation5 + $0x6e8] sm:$0xf0]  ;;  %v2567_v17 = vpop.f32.mrf.mxu3 }
  0xff   :  { %v8573_v29 = vld [vmem:[#allocation5 + $0x8cc] sm:$0xf]  ;;  %v6443_v39 = vor.u32 %v8509_v24, %v6440_v25  ;;  %2858 = vmatpush.bf16.msra.mxu0 %v6987_v26  ;;  %v5806_v25 = vld [vmem:[#allocation5 + $0x1d0] sm:$0xf] }
 0x100   :  { %v6696_v31 = vld [vmem:[#allocation5 + $0x8e8] sm:$0xf0]  ;;  %2820 = vmatpush.bf16.msrb.mxu1 %v6187_v27  ;;  %v8354_v26 = vld [vmem:[#allocation5 + $0x1ec] sm:$0xf0] }
 0x101   :  { %v8637_v32 = vld [vmem:[#allocation5 + $0xacc] sm:$0xf]  ;;  %v6699_v40 = vor.u32 %v8573_v29, %v6696_v31  ;;  %v6062_v27 = vld [vmem:[#allocation5 + $0x3d0] sm:$0xf]  ;;  %v5807_v38 = vor.u32 %v8354_v26, %v5806_v25 }
 0x102   :  { %v6952_v34 = vld [vmem:[#allocation5 + $0xae8] sm:$0xf0]  ;;  %2832 = vmatpush.bf16.msra.mxu3 %v6475_v22  ;;  %2845 = vmatpush.bf16.msra.mxu2 %v6731_v23  ;;  %v6318_v29 = vld [vmem:[#allocation5 + $0x5d0] sm:$0xf] }
 0x103   :  { %v8437_v36 = vld [vmem:[#allocation5 + $0x48c] sm:$0xf]  ;;  %v6955_v46 = vor.u32 %v8637_v32, %v6952_v34  ;;  %v8482_v32 = vld [vmem:[#allocation5 + $0x5ec] sm:$0xf0]  ;;  %v2578_v5 = vpop.f32.mrf.mxu0 }
 0x104   :  { %v6152_v37 = vld [vmem:[#allocation5 + $0x4a8] sm:$0xf0]  ;;  %v8546_v34 = vld [vmem:[#allocation5 + $0x7ec] sm:$0xf0]  ;;  %v6319_v42 = vor.u32 %v8482_v32, %v6318_v29 }
 0x105   :  { %v8501_v43 = vld [vmem:[#allocation5 + $0x68c] sm:$0xf]  ;;  %v6155_v47 = vor.u32 %v8437_v36, %v6152_v37  ;;  %2859 = vmatpush.bf16.msra.mxu0 %v6955_v46  ;;  %v8410_v46 = vld [vmem:[#allocation5 + $0x3ac] sm:$0xf0] }
 0x106   :  { %v6408_v44 = vld [vmem:[#allocation5 + $0x6a8] sm:$0xf0]  ;;  %2833 = vmatpush.bf16.msra.mxu3 %v6443_v39  ;;  %2846 = vmatpush.bf16.msra.mxu2 %v6699_v40  ;;  %v6063_v39 = vor.u32 %v8418_v28, %v6062_v27  ;;  %v5774_v40 = vld [vmem:[#allocation5 + $0x190] sm:$0xf] }
 0x107   :  { %v8565_v48 = vld [vmem:[#allocation5 + $0x88c] sm:$0xf]  ;;  %v6411_v60 = vor.u32 %v8501_v43, %v6408_v44  ;;  %2821 = vmatpush.bf16.msrb.mxu1 %v6155_v47  ;;  %v6575_v43 = vor.u32 %v8546_v34, %v6574_v33  ;;  %v6030_v44 = vld [vmem:[#allocation5 + $0x390] sm:$0xf]  ;;  %v538_v33 = vperm.slane %v9304_v56, 1 }
 0x108   :  { %v6664_v49 = vld [vmem:[#allocation5 + $0x8a8] sm:$0xf0]  ;;  %v6286_v47 = vld [vmem:[#allocation5 + $0x590] sm:$0xf] }
 0x109   :  { %v8629_v50 = vld [vmem:[#allocation5 + $0xa8c] sm:$0xf]  ;;  %v6667_v61 = vor.u32 %v8565_v48, %v6664_v49  ;;  %v2604_v48 = vpop.f32.mrf.mxu2  ;;  %v8474_v49 = vld [vmem:[#allocation5 + $0x5ac] sm:$0xf0] }
 0x10a   :  { %v6920_v54 = vld [vmem:[#allocation5 + $0xaa8] sm:$0xf0]  ;;  %2834 = vmatpush.bf16.msra.mxu3 %v6411_v60  ;;  %v8338_v60 = vld [vmem:[#allocation5 + $0x16c] sm:$0xf0] }
 0x10b   :  { %v8429_v58 = vld [vmem:[#allocation5 + $0x44c] sm:$0xf]  ;;  %v6923_v0 = vor.u32 %v8629_v50, %v6920_v54  ;;  %2847 = vmatpush.bf16.msra.mxu2 %v6667_v61  ;;  %v6542_v50 = vld [vmem:[#allocation5 + $0x790] sm:$0xf]  ;;  %v5775_v54 = vor.u32 %v8346_v41, %v5774_v40  ;;  %v6287_v61 = vor.u32 %v8474_v49, %v6286_v47 }
 0x10c   :  { %v6120_v59 = vld [vmem:[#allocation5 + $0x468] sm:$0xf0]  ;;  %v6222_v17 = vld [vmem:[#allocation5 + $0x510] sm:$0xf] }
 0x10d   :  { %v8493_v62 = vld [vmem:[#allocation5 + $0x64c] sm:$0xf]  ;;  %v6123_v1 = vor.u32 %v8429_v58, %v6120_v59  ;;  %2860 = vmatpush.bf16.msra.mxu0 %v6923_v0  ;;  %v6031_v58 = vor.u32 %v8410_v46, %v6030_v44  ;;  %v5742_v59 = vld [vmem:[#allocation5 + $0x150] sm:$0xf] }
 0x10e   :  { %v6376_v63 = vld [vmem:[#allocation5 + $0x668] sm:$0xf0]  ;;  %v8402_v0 = vld [vmem:[#allocation5 + $0x36c] sm:$0xf0] }
 0x10f   :  { %v8557_v2 = vld [vmem:[#allocation5 + $0x84c] sm:$0xf]  ;;  %v6379_v13 = vor.u32 %v8493_v62, %v6376_v63  ;;  %2822 = vmatpush.bf16.msrb.mxu1 %v6123_v1  ;;  %v6543_v62 = vor.u32 %v8538_v52, %v6542_v50  ;;  %v5998_v63 = vld [vmem:[#allocation5 + $0x350] sm:$0xf] }
 0x110   :  { %v6632_v3 = vld [vmem:[#allocation5 + $0x868] sm:$0xf0]  ;;  %v6254_v1 = vld [vmem:[#allocation5 + $0x550] sm:$0xf] }
 0x111   :  { %v8621_v4 = vld [vmem:[#allocation5 + $0xa4c] sm:$0xf]  ;;  %v6635_v14 = vor.u32 %v8557_v2, %v6632_v3  ;;  %2835 = vmatpush.bf16.msra.mxu3 %v6379_v13  ;;  %v8466_v2 = vld [vmem:[#allocation5 + $0x56c] sm:$0xf0] }
 0x112   :  { %v6888_v6 = vld [vmem:[#allocation5 + $0xa68] sm:$0xf0]  ;;  %v6510_v3 = vld [vmem:[#allocation5 + $0x750] sm:$0xf] }
 0x113   :  { %v8421_v8 = vld [vmem:[#allocation5 + $0x40c] sm:$0xf]  ;;  %v6891_v18 = vor.u32 %v8621_v4, %v6888_v6  ;;  %2848 = vmatpush.bf16.msra.mxu2 %v6635_v14  ;;  %v8530_v4 = vld [vmem:[#allocation5 + $0x76c] sm:$0xf0]  ;;  %v5743_v6 = vor.u32 %v8338_v60, %v5742_v59  ;;  %v2591_v14 = vpop.f32.mrf.mxu1 }
 0x114   :  { %v6088_v9 = vld [vmem:[#allocation5 + $0x428] sm:$0xf0]  ;;  %v6511_v13 = vor.u32 %v8530_v4, %v6510_v3  ;;  %v5678_v25 = vld [vmem:[#allocation5 + $0xd0] sm:$0xf] }
 0x115   :  { %v8677_v11 = vld [vmem:[#allocation5 + $0xc0c] sm:$0xf]  ;;  %v6091_v19 = vor.u32 %v8421_v8, %v6088_v9  ;;  %2861 = vmatpush.bf16.msra.mxu0 %v6891_v18  ;;  %v5999_v8 = vor.u32 %v8402_v0, %v5998_v63  ;;  %v5710_v9 = vld [vmem:[#allocation5 + $0x110] sm:$0xf]  ;;  %v2606_v18 = vpop.f32.mrf.mxu2 }
 0x116   :  { %v7112_v12 = vld [vmem:[#allocation5 + $0xc28] sm:$0xf0]  ;;  %v8322_v26 = vld [vmem:[#allocation5 + $0xec] sm:$0xf0] }
 0x117   :  { %v8485_v15 = vld [vmem:[#allocation5 + $0x60c] sm:$0xf]  ;;  %v7115_v24 = vor.u32 %v8677_v11, %v7112_v12  ;;  %2823 = vmatpush.bf16.msrb.mxu1 %v6091_v19  ;;  %v2579_v11 = vadd.f32 %v2578_v5, %v9310_v53  ;;  %v6255_v12 = vor.u32 %v8466_v2, %v6254_v1  ;;  %v8458_v19 = vld [vmem:[#allocation5 + $0x52c] sm:$0xf0] }
 0x118   :  { %v6344_v16 = vld [vmem:[#allocation5 + $0x628] sm:$0xf0]  ;;  %v5934_v27 = vld [vmem:[#allocation5 + $0x2d0] sm:$0xf]  ;;  %v6223_v28 = vor.u32 %v8458_v19, %v6222_v17 }
 0x119   :  { %v8549_v20 = vld [vmem:[#allocation5 + $0x80c] sm:$0xf]  ;;  %v6347_v31 = vor.u32 %v8485_v15, %v6344_v16  ;;  %v5966_v15 = vld [vmem:[#allocation5 + $0x310] sm:$0xf] }
 0x11a   :  { %v6600_v21 = vld [vmem:[#allocation5 + $0x828] sm:$0xf0]  ;;  %2824 = vmatmul.bf16.vlgmr.msrb.gmra.mxu1 %v9267_v51  ;;  %v8394_v16 = vld [vmem:[#allocation5 + $0x32c] sm:$0xf0] }
 0x11b   :  { %v8613_v22 = vld [vmem:[#allocation5 + $0xa0c] sm:$0xf]  ;;  %v6603_v36 = vor.u32 %v8549_v20, %v6600_v21  ;;  %2875 = vmatpush.bf16.msra.mxu1 %v7115_v24  ;;  %2836 = vmatpush.bf16.msra.mxu3 %v6347_v31  ;;  %v6478_v20 = vld [vmem:[#allocation5 + $0x710] sm:$0xf]  ;;  %v5967_v24 = vor.u32 %v8394_v16, %v5966_v15  ;;  %v2593_v52 = vpop.f32.mrf.mxu1 }
 0x11c   :  { %v6856_v23 = vld [vmem:[#allocation5 + $0xa28] sm:$0xf0]  ;;  %v8522_v21 = vld [vmem:[#allocation5 + $0x72c] sm:$0xf0] }
 0x11d   :  { %v6859_v37 = vor.u32 %v8613_v22, %v6856_v23  ;;  %2849 = vmatpush.bf16.msra.mxu2 %v6603_v36  ;;  %v2592_v22 = vadd.f32 %v2591_v14, %v2579_v11  ;;  %v5711_v23 = vor.u32 %v8330_v10, %v5710_v9  ;;  %v6479_v29 = vor.u32 %v8522_v21, %v6478_v20  ;;  %v8386_v31 = vld [vmem:[#allocation5 + $0x2ec] sm:$0xf0]  ;;  %v2630_v60 = vpop.f32.mrf.mxu2 }
 0x11e   :  { %2837 = vmatmul.bf16.vlgmr.msra.gmra.mxu3 %v9271_v57  ;;  %v6190_v32 = vld [vmem:[#allocation5 + $0x4d0] sm:$0xf] }
 0x11f   :  { %2862 = vmatpush.bf16.msra.mxu0 %v6859_v37  ;;  %2881 = vmatpush.bf16.msrb.mxu3 %v5807_v38  ;;  %v9317_v53 = vadd.f32 %v2604_v48, %v2592_v22  ;;  %v8450_v34 = vld [vmem:[#allocation5 + $0x4ec] sm:$0xf0]  ;;  %v5679_v38 = vor.u32 %v8322_v26, %v5678_v25 }
 0x120   :  { %2894 = vmatpush.bf16.msrb.mxu1 %v6063_v39  ;;  %2850 = vmatmul.bf16.vlgmr.msra.gmra.mxu2 %v9283_v30  ;;  %v6446_v36 = vld [vmem:[#allocation5 + $0x6d0] sm:$0xf]  ;;  %v5935_v39 = vor.u32 %v8386_v31, %v5934_v27  ;;  %v6191_v44 = vor.u32 %v8450_v34, %v6190_v32  ;;  %v8350_v32 = vld [vmem:[#allocation5 + $0x1d4] sm:$0xf] }
 0x121   :  { %2907 = vmatpush.bf16.msrb.mxu2 %v6319_v42  ;;  %v8514_v37 = vld [vmem:[#allocation5 + $0x6ec] sm:$0xf0]  ;;  %v2617_v42 = vpop.f32.mrf.mxu3 }
 0x122   :  { %2863 = vmatmul.bf16.vlgmr.msra.gmra.mxu0 %v9285_v35  ;;  %v5646_v40 = vld [vmem:[#allocation5 + $0x90] sm:$0xf]  ;;  %v6447_v46 = vor.u32 %v8514_v37, %v6446_v36  ;;  %v2618_v50 = vadd.f32 %v2617_v42, %v538_v33  ;;  %v5808_v33 = vld [vmem:[#allocation5 + $0x1f0] sm:$0xf0] }
 0x123   :  { %2920 = vmatpush.bf16.msrb.mxu0 %v6575_v43  ;;  %2882 = vmatpush.bf16.msrb.mxu3 %v5775_v54  ;;  %v8314_v41 = vld [vmem:[#allocation5 + $0xac] sm:$0xf0]  ;;  %v2580_v43 = vpop.f32.mrf.mxu0  ;;  %v6064_v42 = vld [vmem:[#allocation5 + $0x3f0] sm:$0xf0] }
 0x124   :  { %2895 = vmatpush.bf16.msrb.mxu1 %v6031_v58  ;;  %v5902_v47 = vld [vmem:[#allocation5 + $0x290] sm:$0xf]  ;;  %v5811_v43 = vor.u32 %v8350_v32, %v5808_v33  ;;  %v8318_v33 = vld [vmem:[#allocation5 + $0xd4] sm:$0xf] }
 0x125   :  { %2908 = vmatpush.bf16.msrb.mxu2 %v6287_v61  ;;  %v8378_v48 = vld [vmem:[#allocation5 + $0x2ac] sm:$0xf0]  ;;  %v9322_v61 = vadd.f32 %v2630_v60, %v2618_v50  ;;  %v2632_v25 = vpop.f32.mrf.mxu2  ;;  %v5776_v50 = vld [vmem:[#allocation5 + $0x1b0] sm:$0xf0] }
 0x126   :  { %v6158_v49 = vld [vmem:[#allocation5 + $0x490] sm:$0xf]  ;;  %v5903_v63 = vor.u32 %v8378_v48, %v5902_v47  ;;  %v6032_v60 = vld [vmem:[#allocation5 + $0x3b0] sm:$0xf0] }
 0x127   :  { %2921 = vmatpush.bf16.msrb.mxu0 %v6543_v62  ;;  %2883 = vmatpush.bf16.msrb.mxu3 %v5743_v6  ;;  %v8442_v54 = vld [vmem:[#allocation5 + $0x4ac] sm:$0xf0]  ;;  %v5647_v62 = vor.u32 %v8314_v41, %v5646_v40  ;;  %v8414_v41 = vld [vmem:[#allocation5 + $0x3d4] sm:$0xf] }
 0x128   :  { %2896 = vmatpush.bf16.msrb.mxu1 %v5999_v8  ;;  %v6414_v58 = vld [vmem:[#allocation5 + $0x690] sm:$0xf]  ;;  %v6159_v2 = vor.u32 %v8442_v54, %v6158_v49  ;;  %v8342_v49 = vld [vmem:[#allocation5 + $0x194] sm:$0xf]  ;;  %v6067_v54 = vor.u32 %v8414_v41, %v6064_v42 }
 0x129   :  { %2909 = vmatpush.bf16.msrb.mxu2 %v6255_v12  ;;  %v8506_v59 = vld [vmem:[#allocation5 + $0x6ac] sm:$0xf0]  ;;  %v2619_v16 = vpop.f32.mrf.mxu3  ;;  %v8390_v25 = vld [vmem:[#allocation5 + $0x314] sm:$0xf] }
 0x12a   :  { %7135 = vmatmul.msk.bf16.vlgmr.msra.gmra.mxu1 %vm2513_vm0, %v9279_v45  ;;  %v5614_v0 = vld [vmem:[#allocation5 + $0x50] sm:$0xf]  ;;  %v6415_v3 = vor.u32 %v8506_v59, %v6414_v58  ;;  %v8406_v59 = vld [vmem:[#allocation5 + $0x394] sm:$0xf] }
 0x12b   :  { %2922 = vmatpush.bf16.msrb.mxu0 %v6511_v13  ;;  %2884 = vmatpush.bf16.msrb.mxu3 %v5711_v23  ;;  %v8306_v1 = vld [vmem:[#allocation5 + $0x6c] sm:$0xf0]  ;;  %v5936_v41 = vld [vmem:[#allocation5 + $0x2f0] sm:$0xf0] }
 0x12c   :  { %2897 = vmatpush.bf16.msrb.mxu1 %v5967_v24  ;;  %v5870_v4 = vld [vmem:[#allocation5 + $0x250] sm:$0xf]  ;;  %v5615_v11 = vor.u32 %v8306_v1, %v5614_v0 }
 0x12d   :  { %2910 = vmatpush.bf16.msrb.mxu2 %v6223_v28  ;;  %v8370_v5 = vld [vmem:[#allocation5 + $0x26c] sm:$0xf0] }
 0x12e   :  { %v6126_v6 = vld [vmem:[#allocation5 + $0x450] sm:$0xf]  ;;  %v5871_v12 = vor.u32 %v8370_v5, %v5870_v4  ;;  %v8334_v4 = vld [vmem:[#allocation5 + $0x154] sm:$0xf] }
 0x12f   :  { %2923 = vmatpush.bf16.msrb.mxu0 %v6479_v29  ;;  %2885 = vmatpush.bf16.msrb.mxu3 %v5679_v38  ;;  %v8434_v8 = vld [vmem:[#allocation5 + $0x46c] sm:$0xf0]  ;;  %v5744_v5 = vld [vmem:[#allocation5 + $0x170] sm:$0xf0] }
 0x130   :  { %2898 = vmatpush.bf16.msrb.mxu1 %v5935_v39  ;;  %v6382_v9 = vld [vmem:[#allocation5 + $0x650] sm:$0xf]  ;;  %v6127_v17 = vor.u32 %v8434_v8, %v6126_v6  ;;  %v6035_v6 = vor.u32 %v8406_v59, %v6032_v60  ;;  %v2643_v8 = vpop.f32.mrf.mxu0 }
 0x131   :  { %2911 = vmatpush.bf16.msrb.mxu2 %v6191_v44  ;;  %v8498_v10 = vld [vmem:[#allocation5 + $0x66c] sm:$0xf0] }
 0x132   :  { %v5582_v13 = vld [vmem:[#allocation5 + $0x10] sm:$0xf]  ;;  %v6383_v18 = vor.u32 %v8498_v10, %v6382_v9  ;;  %v8398_v10 = vld [vmem:[#allocation5 + $0x354] sm:$0xf] }
 0x133   :  { %2924 = vmatpush.bf16.msrb.mxu0 %v6447_v46  ;;  %2886 = vmatpush.bf16.msrb.mxu3 %v5647_v62  ;;  %v8298_v14 = vld [vmem:[#allocation5 + $0x2c] sm:$0xf0] }
 0x134   :  { %2899 = vmatpush.bf16.msrb.mxu1 %v5903_v63  ;;  %v5838_v15 = vld [vmem:[#allocation5 + $0x210] sm:$0xf]  ;;  %v5583_v29 = vor.u32 %v8298_v14, %v5582_v13  ;;  %v5779_v63 = vor.u32 %v8342_v49, %v5776_v50  ;;  %v5747_v14 = vor.u32 %v8334_v4, %v5744_v5 }
 0x135   :  { %2912 = vmatpush.bf16.msrb.mxu2 %v6159_v2  ;;  %v8362_v19 = vld [vmem:[#allocation5 + $0x22c] sm:$0xf0] }
 0x136   :  { %v6094_v20 = vld [vmem:[#allocation5 + $0x410] sm:$0xf]  ;;  %v5839_v31 = vor.u32 %v8362_v19, %v5838_v15 }
 0x137   :  { %2925 = vmatpush.bf16.msrb.mxu0 %v6415_v3  ;;  %v8426_v21 = vld [vmem:[#allocation5 + $0x42c] sm:$0xf0]  ;;  %2887 = vmatpush.bf16.msrb.mxu3 %v5615_v11  ;;  %v6000_v11 = vld [vmem:[#allocation5 + $0x370] sm:$0xf0] }
 0x138   :  { %v6350_v22 = vld [vmem:[#allocation5 + $0x610] sm:$0xf]  ;;  %2900 = vmatpush.bf16.msrb.mxu1 %v5871_v12  ;;  %v6095_v34 = vor.u32 %v8426_v21, %v6094_v20  ;;  %v2644_v12 = vadd.f32 %v2643_v8, %v9322_v61  ;;  %v8326_v20 = vld [vmem:[#allocation5 + $0x114] sm:$0xf]  ;;  %v2645_v42 = vpop.f32.mrf.mxu0  ;;  %v2682_v49 = vpop.f32.mrf.mxu2 }
 0x139   :  { %v8490_v23 = vld [vmem:[#allocation5 + $0x62c] sm:$0xf0]  ;;  %2913 = vmatpush.bf16.msrb.mxu2 %v6127_v17  ;;  %v5712_v21 = vld [vmem:[#allocation5 + $0x130] sm:$0xf0] }
 0x13a   :  { %v6830_v24 = vld [vmem:[#allocation5 + $0x9d0] sm:$0xf]  ;;  %v6351_v36 = vor.u32 %v8490_v23, %v6350_v22  ;;  %v6003_v23 = vor.u32 %v8398_v10, %v6000_v11  ;;  %v5715_v61 = vor.u32 %v8326_v20, %v5712_v21  ;;  %v8302_v8 = vld [vmem:[#allocation5 + $0x54] sm:$0xf] }
 0x13b   :  { %v8610_v26 = vld [vmem:[#allocation5 + $0x9ec] sm:$0xf0]  ;;  %2926 = vmatpush.bf16.msrb.mxu0 %v6383_v18  ;;  %2888 = vmatpush.bf16.msrb.mxu3 %v5583_v29  ;;  %v2656_v18 = vpop.f32.mrf.mxu1  ;;  %v8294_v21 = vld [vmem:[#allocation5 + $0x14] sm:$0xf] }
 0x13c   :  { %v7086_v27 = vld [vmem:[#allocation5 + $0xbd0] sm:$0xf]  ;;  %v6831_v38 = vor.u32 %v8610_v26, %v6830_v24  ;;  %2901 = vmatpush.bf16.msrb.mxu1 %v5839_v31  ;;  %v2657_v22 = vadd.f32 %v2656_v18, %v2644_v12  ;;  %v5968_v26 = vld [vmem:[#allocation5 + $0x330] sm:$0xf0] }
 0x13d   :  { %v8674_v28 = vld [vmem:[#allocation5 + $0xbec] sm:$0xf0]  ;;  %2914 = vmatpush.bf16.msrb.mxu2 %v6095_v34  ;;  %v5680_v34 = vld [vmem:[#allocation5 + $0xf0] sm:$0xf0] }
 0x13e   :  { %v7118_v37 = vld [vmem:[#allocation5 + $0xc10] sm:$0xf]  ;;  %v7087_v39 = vor.u32 %v8674_v28, %v7086_v27  ;;  %2889 = vmatmul.bf16.vlgmr.msrb.gmra.mxu3 %v9269_v55 }
 0x13f   :  { %v8682_v40 = vld [vmem:[#allocation5 + $0xc2c] sm:$0xf0]  ;;  %2927 = vmatpush.bf16.msrb.mxu0 %v6351_v36  ;;  %2933 = vmatpush.bf16.msra.mxu3 %v6831_v38  ;;  %v2669_v36 = vpop.f32.mrf.mxu3  ;;  %v5971_v38 = vor.u32 %v8390_v25, %v5968_v26  ;;  %v6320_v25 = vld [vmem:[#allocation5 + $0x5f0] sm:$0xf0] }
 0x140   :  { %v6798_v44 = vld [vmem:[#allocation5 + $0x990] sm:$0xf]  ;;  %v7119_v52 = vor.u32 %v8682_v40, %v7118_v37  ;;  %2946 = vmatpush.bf16.msra.mxu1 %v7087_v39  ;;  %2915 = vmatmul.bf16.vlgmr.msrb.gmra.mxu2 %v9267_v51  ;;  %v2670_v37 = vadd.f32 %v2669_v36, %v2657_v22  ;;  %v8382_v40 = vld [vmem:[#allocation5 + $0x2d4] sm:$0xf] }
 0x141   :  { %v8602_v46 = vld [vmem:[#allocation5 + $0x9ac] sm:$0xf0]  ;;  %2902 = vmatmul.bf16.vlgmr.msrb.gmra.mxu1 %v9275_v7  ;;  %v5939_v60 = vor.u32 %v8382_v40, %v5936_v41  ;;  %v5584_v22 = vld [vmem:[#allocation5 + $0x30] sm:$0xf0] }
 0x142   :  { %v7054_v47 = vld [vmem:[#allocation5 + $0xb90] sm:$0xf]  ;;  %v6799_v58 = vor.u32 %v8602_v46, %v6798_v44  ;;  %2966 = vmatpush.bf16.msra.mxu2 %v7119_v52  ;;  %2928 = vmatmul.bf16.vlgmr.msrb.gmra.mxu0 %v9271_v57  ;;  %v5683_v44 = vor.u32 %v8318_v33, %v5680_v34  ;;  %v8310_v52 = vld [vmem:[#allocation5 + $0x94] sm:$0xf]  ;;  %v9329_v59 = vadd.f32 %v2682_v49, %v2670_v37 }
 0x143   :  { %v8666_v48 = vld [vmem:[#allocation5 + $0xbac] sm:$0xf0]  ;;  %2972 = vmatpush.bf16.msra.mxu0 %v5811_v43  ;;  %v8542_v26 = vld [vmem:[#allocation5 + $0x7d4] sm:$0xf]  ;;  %v5587_v33 = vor.u32 %v8294_v21, %v5584_v22  ;;  %v539_v21 = vperm.slane %v9304_v56, 2 }
 0x144   :  { %v7055_v62 = vor.u32 %v8666_v48, %v7054_v47  ;;  %v6766_v0 = vld [vmem:[#allocation5 + $0x950] sm:$0xf]  ;;  %2934 = vmatpush.bf16.msra.mxu3 %v6799_v58  ;;  %v2658_v58 = vpop.f32.mrf.mxu1  ;;  %v8358_v34 = vld [vmem:[#allocation5 + $0x214] sm:$0xf] }
 0x145   :  { %v8594_v1 = vld [vmem:[#allocation5 + $0x96c] sm:$0xf0]  ;;  %v5840_v36 = vld [vmem:[#allocation5 + $0x230] sm:$0xf0] }
 0x146   :  { %v7022_v2 = vld [vmem:[#allocation5 + $0xb50] sm:$0xf]  ;;  %2985 = vmatpush.bf16.msrb.mxu2 %v6067_v54  ;;  %v6767_v9 = vor.u32 %v8594_v1, %v6766_v0  ;;  %2947 = vmatpush.bf16.msra.mxu1 %v7055_v62  ;;  %v5648_v54 = vld [vmem:[#allocation5 + $0xb0] sm:$0xf0]  ;;  %v5843_v49 = vor.u32 %v8358_v34, %v5840_v36 }
 0x147   :  { %v8658_v3 = vld [vmem:[#allocation5 + $0xb6c] sm:$0xf0]  ;;  %2973 = vmatpush.bf16.msra.mxu0 %v5779_v63  ;;  %v8374_v63 = vld [vmem:[#allocation5 + $0x294] sm:$0xf]  ;;  %v2671_v10 = vpop.f32.mrf.mxu3 }
 0x148   :  { %v7023_v13 = vor.u32 %v8658_v3, %v7022_v2  ;;  %v6734_v15 = vld [vmem:[#allocation5 + $0x910] sm:$0xf]  ;;  %2935 = vmatpush.bf16.msra.mxu3 %v6767_v9  ;;  %v5904_v0 = vld [vmem:[#allocation5 + $0x2b0] sm:$0xf0]  ;;  %v5651_v2 = vor.u32 %v8310_v52, %v5648_v54 }
 0x149   :  { %v8586_v16 = vld [vmem:[#allocation5 + $0x92c] sm:$0xf0]  ;;  %v5616_v9 = vld [vmem:[#allocation5 + $0x70] sm:$0xf0]  ;;  %v5907_v11 = vor.u32 %v8374_v63, %v5904_v0 }
 0x14a   :  { %v6990_v17 = vld [vmem:[#allocation5 + $0xb10] sm:$0xf]  ;;  %2986 = vmatpush.bf16.msrb.mxu2 %v6035_v6  ;;  %v6735_v24 = vor.u32 %v8586_v16, %v6734_v15  ;;  %2948 = vmatpush.bf16.msra.mxu1 %v7023_v13  ;;  %v8366_v13 = vld [vmem:[#allocation5 + $0x254] sm:$0xf] }
 0x14b   :  { %v8650_v19 = vld [vmem:[#allocation5 + $0xb2c] sm:$0xf0]  ;;  %2974 = vmatpush.bf16.msra.mxu0 %v5747_v14  ;;  %v5872_v14 = vld [vmem:[#allocation5 + $0x270] sm:$0xf0] }
 0x14c   :  { %v6991_v27 = vor.u32 %v8650_v19, %v6990_v17  ;;  %v6702_v28 = vld [vmem:[#allocation5 + $0x8d0] sm:$0xf]  ;;  %2936 = vmatpush.bf16.msra.mxu3 %v6735_v24  ;;  %v5619_v17 = vor.u32 %v8302_v8, %v5616_v9  ;;  %v2684_v24 = vpop.f32.mrf.mxu2  ;;  %v7088_v40 = vld [vmem:[#allocation5 + $0xbf0] sm:$0xf0] }
 0x14d   :  { %v8578_v29 = vld [vmem:[#allocation5 + $0x8ec] sm:$0xf0]  ;;  %v8470_v41 = vld [vmem:[#allocation5 + $0x594] sm:$0xf] }
 0x14e   :  { %v6958_v31 = vld [vmem:[#allocation5 + $0xad0] sm:$0xf]  ;;  %2987 = vmatpush.bf16.msrb.mxu2 %v6003_v23  ;;  %v6703_v39 = vor.u32 %v8578_v29, %v6702_v28  ;;  %2949 = vmatpush.bf16.msra.mxu1 %v6991_v27  ;;  %v8478_v23 = vld [vmem:[#allocation5 + $0x5d4] sm:$0xf] }
 0x14f   :  { %v8642_v32 = vld [vmem:[#allocation5 + $0xaec] sm:$0xf0]  ;;  %2975 = vmatpush.bf16.msra.mxu0 %v5715_v61  ;;  %v6576_v27 = vld [vmem:[#allocation5 + $0x7f0] sm:$0xf0]  ;;  %v5875_v61 = vor.u32 %v8366_v13, %v5872_v14  ;;  %v6323_v37 = vor.u32 %v8478_v23, %v6320_v25  ;;  %v2708_v23 = vpop.f32.mrf.mxu1 }
 0x150   :  { %v6959_v43 = vor.u32 %v8642_v32, %v6958_v31  ;;  %v6670_v46 = vld [vmem:[#allocation5 + $0x890] sm:$0xf]  ;;  %2937 = vmatpush.bf16.msra.mxu3 %v6703_v39  ;;  %7136 = vmatmul.msk.bf16.vlgmr.msra.gmra.mxu2 %vm2513_vm0, %v9279_v45  ;;  %v8606_v29 = vld [vmem:[#allocation5 + $0x9d4] sm:$0xf] }
 0x151   :  { %v8570_v47 = vld [vmem:[#allocation5 + $0x8ac] sm:$0xf0]  ;;  %v6832_v31 = vld [vmem:[#allocation5 + $0x9f0] sm:$0xf0] }
 0x152   :  { %v6926_v48 = vld [vmem:[#allocation5 + $0xa90] sm:$0xf]  ;;  %2988 = vmatpush.bf16.msrb.mxu2 %v5971_v38  ;;  %v6671_v62 = vor.u32 %v8570_v47, %v6670_v46  ;;  %2950 = vmatpush.bf16.msra.mxu1 %v6959_v43  ;;  %v6579_v38 = vor.u32 %v8542_v26, %v6576_v27  ;;  %v8670_v39 = vld [vmem:[#allocation5 + $0xbd4] sm:$0xf]  ;;  %v6835_v42 = vor.u32 %v8606_v29, %v6832_v31  ;;  %v2695_v43 = vpop.f32.mrf.mxu3 }
 0x153   :  { %v8634_v50 = vld [vmem:[#allocation5 + $0xaac] sm:$0xf0]  ;;  %2976 = vmatpush.bf16.msra.mxu0 %v5683_v44  ;;  %v6288_v44 = vld [vmem:[#allocation5 + $0x5b0] sm:$0xf0]  ;;  %v7091_v54 = vor.u32 %v8670_v39, %v7088_v40 }
 0x154   :  { %v6927_v1 = vor.u32 %v8634_v50, %v6926_v48  ;;  %v6638_v3 = vld [vmem:[#allocation5 + $0x850] sm:$0xf]  ;;  %2938 = vmatpush.bf16.msra.mxu3 %v6671_v62  ;;  %v8534_v46 = vld [vmem:[#allocation5 + $0x794] sm:$0xf]  ;;  %v9334_v48 = vadd.f32 %v2695_v43, %v9329_v59  ;;  %v6291_v58 = vor.u32 %v8470_v41, %v6288_v44 }
 0x155   :  { %v8562_v4 = vld [vmem:[#allocation5 + $0x86c] sm:$0xf0]  ;;  %v6544_v47 = vld [vmem:[#allocation5 + $0x7b0] sm:$0xf0] }
 0x156   :  { %v6894_v5 = vld [vmem:[#allocation5 + $0xa50] sm:$0xf]  ;;  %2989 = vmatpush.bf16.msrb.mxu2 %v5939_v60  ;;  %v6639_v12 = vor.u32 %v8562_v4, %v6638_v3  ;;  %2951 = vmatpush.bf16.msra.mxu1 %v6927_v1  ;;  %v8598_v50 = vld [vmem:[#allocation5 + $0x994] sm:$0xf]  ;;  %v6547_v60 = vor.u32 %v8534_v46, %v6544_v47 }
 0x157   :  { %v8626_v6 = vld [vmem:[#allocation5 + $0xa6c] sm:$0xf0]  ;;  %2977 = vmatpush.bf16.msra.mxu0 %v5651_v2  ;;  %v6800_v52 = vld [vmem:[#allocation5 + $0x9b0] sm:$0xf0] }
 0x158   :  { %v6606_v15 = vld [vmem:[#allocation5 + $0x810] sm:$0xf]  ;;  %v6895_v16 = vor.u32 %v8626_v6, %v6894_v5  ;;  %2939 = vmatpush.bf16.msra.mxu3 %v6639_v12  ;;  %v8662_v62 = vld [vmem:[#allocation5 + $0xb94] sm:$0xf]  ;;  %v6803_v1 = vor.u32 %v8598_v50, %v6800_v52  ;;  %v2734_v12 = vpop.f32.mrf.mxu0 }
 0x159   :  { %v8554_v18 = vld [vmem:[#allocation5 + $0x82c] sm:$0xf0]  ;;  %v7056_v63 = vld [vmem:[#allocation5 + $0xbb0] sm:$0xf0] }
 0x15a   :  { %v6862_v19 = vld [vmem:[#allocation5 + $0xa10] sm:$0xf]  ;;  %2990 = vmatpush.bf16.msrb.mxu2 %v5907_v11  ;;  %v6607_v28 = vor.u32 %v8554_v18, %v6606_v15  ;;  %2952 = vmatpush.bf16.msra.mxu1 %v6895_v16  ;;  %v8462_v0 = vld [vmem:[#allocation5 + $0x554] sm:$0xf]  ;;  %v7059_v6 = vor.u32 %v8662_v62, %v7056_v63  ;;  %v2697_v15 = vpop.f32.mrf.mxu3  ;;  %v2710_v62 = vpop.f32.mrf.mxu1 }
 0x15b   :  { %v8618_v20 = vld [vmem:[#allocation5 + $0xa2c] sm:$0xf0]  ;;  %2978 = vmatpush.bf16.msra.mxu0 %v5619_v17  ;;  %v6256_v2 = vld [vmem:[#allocation5 + $0x570] sm:$0xf0]  ;;  %v6038_v62 = vld [vmem:[#allocation5 + $0x398] sm:$0xf] }
 0x15c   :  { %v6863_v32 = vor.u32 %v8618_v20, %v6862_v19  ;;  %2940 = vmatpush.bf16.msra.mxu3 %v6607_v28  ;;  %v8526_v59 = vld [vmem:[#allocation5 + $0x754] sm:$0xf]  ;;  %v6259_v8 = vor.u32 %v8462_v0, %v6256_v2 }
 0x15d   :  { %v6512_v3 = vld [vmem:[#allocation5 + $0x770] sm:$0xf0] }
 0x15e   :  { %2991 = vmatpush.bf16.msrb.mxu2 %v5875_v61  ;;  %2953 = vmatpush.bf16.msra.mxu1 %v6863_v32  ;;  %v8590_v4 = vld [vmem:[#allocation5 + $0x954] sm:$0xf]  ;;  %v6515_v9 = vor.u32 %v8526_v59, %v6512_v3 }
 0x15f   :  { %2979 = vmatpush.bf16.msra.mxu0 %v5587_v33  ;;  %2941 = vmatmul.bf16.vlgmr.msra.gmra.mxu3 %v9283_v30  ;;  %v6768_v5 = vld [vmem:[#allocation5 + $0x970] sm:$0xf0]  ;;  %v2709_v33 = vadd.f32 %v2708_v23, %v539_v21 }
 0x160   :  { %2998 = vmatpush.bf16.msrb.mxu3 %v6323_v37  ;;  %v8654_v10 = vld [vmem:[#allocation5 + $0xb54] sm:$0xf]  ;;  %v6771_v14 = vor.u32 %v8590_v4, %v6768_v5  ;;  %v2736_v41 = vpop.f32.mrf.mxu0 }
 0x161   :  { %2954 = vmatmul.bf16.vlgmr.msra.gmra.mxu1 %v9285_v35  ;;  %v7024_v11 = vld [vmem:[#allocation5 + $0xb70] sm:$0xf0]  ;;  %v8419_v41 = vld [vmem:[#allocation5 + $0x3f4] sm:$0xf0] }
 0x162   :  { %3011 = vmatpush.bf16.msrb.mxu1 %v6579_v38  ;;  %2992 = vmatpush.bf16.msrb.mxu2 %v5843_v49  ;;  %v8454_v13 = vld [vmem:[#allocation5 + $0x514] sm:$0xf]  ;;  %v7027_v22 = vor.u32 %v8654_v10, %v7024_v11  ;;  %v2721_v44 = vpop.f32.mrf.mxu3 }
 0x163   :  { %3024 = vmatpush.bf16.msrb.mxu0 %v6835_v42  ;;  %v6224_v16 = vld [vmem:[#allocation5 + $0x530] sm:$0xf0]  ;;  %v2722_v50 = vadd.f32 %v2721_v44, %v2709_v33 }
 0x164   :  { %2980 = vmatmul.bf16.vlgmr.msra.gmra.mxu0 %v9269_v55  ;;  %2999 = vmatpush.bf16.msrb.mxu3 %v6291_v58  ;;  %v8518_v17 = vld [vmem:[#allocation5 + $0x714] sm:$0xf]  ;;  %v6227_v24 = vor.u32 %v8454_v13, %v6224_v16  ;;  %v2747_v58 = vpop.f32.mrf.mxu2 }
 0x165   :  { %v6480_v18 = vld [vmem:[#allocation5 + $0x730] sm:$0xf0]  ;;  %2993 = vmatmul.bf16.vlgmr.msrb.gmra.mxu2 %v9275_v7 }
 0x166   :  { %3037 = vmatpush.bf16.msra.mxu2 %v7091_v54  ;;  %3012 = vmatpush.bf16.msrb.mxu1 %v6547_v60  ;;  %v8582_v19 = vld [vmem:[#allocation5 + $0x914] sm:$0xf]  ;;  %v6483_v25 = vor.u32 %v8518_v17, %v6480_v18 }
 0x167   :  { %3025 = vmatpush.bf16.msrb.mxu0 %v6803_v1  ;;  %v6736_v20 = vld [vmem:[#allocation5 + $0x930] sm:$0xf0]  ;;  %v2735_v1 = vadd.f32 %v2734_v12, %v2722_v50 }
 0x168   :  { %3000 = vmatpush.bf16.msrb.mxu3 %v6259_v8  ;;  %v8646_v26 = vld [vmem:[#allocation5 + $0xb14] sm:$0xf]  ;;  %v6739_v28 = vor.u32 %v8582_v19, %v6736_v20  ;;  %v9343_v20 = vpop.f32.mrf.mxu0 }
 0x169   :  { %v6992_v27 = vld [vmem:[#allocation5 + $0xb30] sm:$0xf0] }
 0x16a   :  { %3038 = vmatpush.bf16.msra.mxu2 %v7059_v6  ;;  %3013 = vmatpush.bf16.msrb.mxu1 %v6515_v9  ;;  %v8446_v61 = vld [vmem:[#allocation5 + $0x4d4] sm:$0xf]  ;;  %v6995_v56 = vor.u32 %v8646_v26, %v6992_v27  ;;  %v9341_v9 = vadd.f32 %v2747_v58, %v2735_v1  ;;  %v5814_v26 = vld [vmem:[#allocation5 + $0x1d8] sm:$0xf] }
 0x16b   :  { %3026 = vmatpush.bf16.msrb.mxu0 %v6771_v14  ;;  %v6192_v29 = vld [vmem:[#allocation5 + $0x4f0] sm:$0xf0]  ;;  %v8355_v27 = vld [vmem:[#allocation5 + $0x1f4] sm:$0xf0] }
 0x16c   :  { %v8510_v31 = vld [vmem:[#allocation5 + $0x6d4] sm:$0xf]  ;;  %3001 = vmatpush.bf16.msrb.mxu3 %v6227_v24  ;;  %v6195_v37 = vor.u32 %v8446_v61, %v6192_v29  ;;  %v6326_v61 = vld [vmem:[#allocation5 + $0x5d8] sm:$0xf] }
 0x16d   :  { %v6448_v32 = vld [vmem:[#allocation5 + $0x6f0] sm:$0xf0]  ;;  %v8411_v1 = vld [vmem:[#allocation5 + $0x3b4] sm:$0xf0] }
 0x16e   :  { %v8574_v34 = vld [vmem:[#allocation5 + $0x8d4] sm:$0xf]  ;;  %3039 = vmatpush.bf16.msra.mxu2 %v7027_v22  ;;  %3014 = vmatpush.bf16.msrb.mxu1 %v6483_v25  ;;  %v6451_v38 = vor.u32 %v8510_v31, %v6448_v32  ;;  %v2723_v25 = vpop.f32.mrf.mxu3  ;;  %v8483_v31 = vld [vmem:[#allocation5 + $0x5f4] sm:$0xf0] }
 0x16f   :  { %v6704_v36 = vld [vmem:[#allocation5 + $0x8f0] sm:$0xf0]  ;;  %3027 = vmatpush.bf16.msrb.mxu0 %v6739_v28  ;;  %v2749_v28 = vpop.f32.mrf.mxu2  ;;  %v6327_v44 = vor.u32 %v8483_v31, %v6326_v61  ;;  %v8523_v31 = vld [vmem:[#allocation5 + $0x734] sm:$0xf0] }
 0x170   :  { %v8638_v39 = vld [vmem:[#allocation5 + $0xad4] sm:$0xf]  ;;  %v6707_v43 = vor.u32 %v8574_v34, %v6704_v36  ;;  %3002 = vmatpush.bf16.msrb.mxu3 %v6195_v37  ;;  %v8395_v28 = vld [vmem:[#allocation5 + $0x334] sm:$0xf0] }
 0x171   :  { %v6960_v40 = vld [vmem:[#allocation5 + $0xaf0] sm:$0xf0] }
 0x172   :  { %v8438_v42 = vld [vmem:[#allocation5 + $0x494] sm:$0xf]  ;;  %3040 = vmatpush.bf16.msra.mxu2 %v6995_v56  ;;  %v6963_v60 = vor.u32 %v8638_v39, %v6960_v40  ;;  %3015 = vmatpush.bf16.msrb.mxu1 %v6451_v38  ;;  %v6070_v38 = vld [vmem:[#allocation5 + $0x3d8] sm:$0xf]  ;;  %v5815_v40 = vor.u32 %v8355_v27, %v5814_v26 }
 0x173   :  { %v6160_v46 = vld [vmem:[#allocation5 + $0x4b0] sm:$0xf0]  ;;  %3028 = vmatpush.bf16.msrb.mxu0 %v6707_v43  ;;  %v8547_v43 = vld [vmem:[#allocation5 + $0x7f4] sm:$0xf0]  ;;  %v6071_v58 = vor.u32 %v8419_v41, %v6070_v38  ;;  %v9350_v41 = vld [vmem:[#allocation7] sm:$0xff] }
 0x174   :  { %v8502_v47 = vld [vmem:[#allocation5 + $0x694] sm:$0xf]  ;;  %v6163_v63 = vor.u32 %v8438_v42, %v6160_v46  ;;  %v6582_v42 = vld [vmem:[#allocation5 + $0x7d8] sm:$0xf] }
 0x175   :  { %v6416_v49 = vld [vmem:[#allocation5 + $0x6b0] sm:$0xf0]  ;;  %v5974_v27 = vld [vmem:[#allocation5 + $0x318] sm:$0xf] }
 0x176   :  { %v8566_v52 = vld [vmem:[#allocation5 + $0x894] sm:$0xf]  ;;  %v6419_v0 = vor.u32 %v8502_v47, %v6416_v49  ;;  %3041 = vmatpush.bf16.msra.mxu2 %v6963_v60  ;;  %3003 = vmatpush.bf16.msrb.mxu3 %v6163_v63  ;;  %v5782_v47 = vld [vmem:[#allocation5 + $0x198] sm:$0xf]  ;;  %v6583_v60 = vor.u32 %v8547_v43, %v6582_v42  ;;  %v2788_v63 = vpop.f32.mrf.mxu0  ;;  %v540_v42 = vperm.slane %v9350_v41, 3 }
 0x177   :  { %v6672_v54 = vld [vmem:[#allocation5 + $0x8b0] sm:$0xf0]  ;;  %v8347_v49 = vld [vmem:[#allocation5 + $0x1b4] sm:$0xf0] }
 0x178   :  { %v8630_v2 = vld [vmem:[#allocation5 + $0xa94] sm:$0xf]  ;;  %v6675_v4 = vor.u32 %v8566_v52, %v6672_v54  ;;  %3016 = vmatpush.bf16.msrb.mxu1 %v6419_v0  ;;  %v6294_v52 = vld [vmem:[#allocation5 + $0x598] sm:$0xf]  ;;  %v5783_v0 = vor.u32 %v8347_v49, %v5782_v47  ;;  %v2799_v63 = vpop.f32.mrf.mxu2 }
 0x179   :  { %v6928_v59 = vld [vmem:[#allocation5 + $0xab0] sm:$0xf0]  ;;  %v8475_v54 = vld [vmem:[#allocation5 + $0x5b4] sm:$0xf0] }
 0x17a   :  { %v8430_v3 = vld [vmem:[#allocation5 + $0x454] sm:$0xf]  ;;  %v6931_v13 = vor.u32 %v8630_v2, %v6928_v59  ;;  %3029 = vmatpush.bf16.msrb.mxu0 %v6675_v4  ;;  %v6550_v2 = vld [vmem:[#allocation5 + $0x798] sm:$0xf] }
 0x17b   :  { %v6128_v5 = vld [vmem:[#allocation5 + $0x470] sm:$0xf0]  ;;  %v8539_v59 = vld [vmem:[#allocation5 + $0x7b4] sm:$0xf0] }
 0x17c   :  { %v8494_v6 = vld [vmem:[#allocation5 + $0x654] sm:$0xf]  ;;  %v6131_v16 = vor.u32 %v8430_v3, %v6128_v5  ;;  %3042 = vmatpush.bf16.msra.mxu2 %v6931_v13  ;;  %v6295_v3 = vor.u32 %v8475_v54, %v6294_v52  ;;  %v5750_v4 = vld [vmem:[#allocation5 + $0x158] sm:$0xf]  ;;  %v2773_v54 = vpop.f32.mrf.mxu3 }
 0x17d   :  { %v6384_v8 = vld [vmem:[#allocation5 + $0x670] sm:$0xf0]  ;;  %v8339_v5 = vld [vmem:[#allocation5 + $0x174] sm:$0xf0] }
 0x17e   :  { %v8558_v10 = vld [vmem:[#allocation5 + $0x854] sm:$0xf]  ;;  %v6387_v12 = vor.u32 %v8494_v6, %v6384_v8  ;;  %3004 = vmatpush.bf16.msrb.mxu3 %v6131_v16  ;;  %v6262_v6 = vld [vmem:[#allocation5 + $0x558] sm:$0xf] }
 0x17f   :  { %v6640_v11 = vld [vmem:[#allocation5 + $0x870] sm:$0xf0]  ;;  %v8467_v8 = vld [vmem:[#allocation5 + $0x574] sm:$0xf0] }
 0x180   :  { %v8622_v14 = vld [vmem:[#allocation5 + $0xa54] sm:$0xf]  ;;  %v6643_v21 = vor.u32 %v8558_v10, %v6640_v11  ;;  %3017 = vmatpush.bf16.msrb.mxu1 %v6387_v12  ;;  %v6039_v10 = vor.u32 %v8411_v1, %v6038_v62  ;;  %v6551_v11 = vor.u32 %v8539_v59, %v6550_v2  ;;  %v6006_v13 = vld [vmem:[#allocation5 + $0x358] sm:$0xf]  ;;  %v2800_v59 = vadd.f32 %v2799_v63, %v540_v42 }
 0x181   :  { %v6896_v15 = vld [vmem:[#allocation5 + $0xa70] sm:$0xf0]  ;;  %v8403_v16 = vld [vmem:[#allocation5 + $0x374] sm:$0xf0] }
 0x182   :  { %v8422_v17 = vld [vmem:[#allocation5 + $0x414] sm:$0xf]  ;;  %v6899_v29 = vor.u32 %v8622_v14, %v6896_v15  ;;  %3030 = vmatpush.bf16.msrb.mxu0 %v6643_v21  ;;  %v2760_v14 = vpop.f32.mrf.mxu1  ;;  %v5751_v15 = vor.u32 %v8339_v5, %v5750_v4  ;;  %v6518_v12 = vld [vmem:[#allocation5 + $0x758] sm:$0xf]  ;;  %v6007_v25 = vor.u32 %v8403_v16, %v6006_v13 }
 0x183   :  { %v6096_v18 = vld [vmem:[#allocation5 + $0x430] sm:$0xf0]  ;;  %v5718_v21 = vld [vmem:[#allocation5 + $0x118] sm:$0xf] }
 0x184   :  { %v8486_v19 = vld [vmem:[#allocation5 + $0x614] sm:$0xf]  ;;  %v6099_v34 = vor.u32 %v8422_v17, %v6096_v18  ;;  %3043 = vmatpush.bf16.msra.mxu2 %v6899_v29  ;;  %v8531_v17 = vld [vmem:[#allocation5 + $0x774] sm:$0xf0]  ;;  %v2761_v18 = vadd.f32 %v2760_v14, %v9341_v9 }
 0x185   :  { %v6352_v22 = vld [vmem:[#allocation5 + $0x630] sm:$0xf0]  ;;  %v6519_v26 = vor.u32 %v8531_v17, %v6518_v12  ;;  %v6486_v29 = vld [vmem:[#allocation5 + $0x718] sm:$0xf] }
 0x186   :  { %v8550_v23 = vld [vmem:[#allocation5 + $0x814] sm:$0xf]  ;;  %v6355_v36 = vor.u32 %v8486_v19, %v6352_v22  ;;  %3005 = vmatpush.bf16.msrb.mxu3 %v6099_v34  ;;  %v6263_v19 = vor.u32 %v8467_v8, %v6262_v6  ;;  %v8331_v22 = vld [vmem:[#allocation5 + $0x134] sm:$0xf0]  ;;  %v2812_v34 = vpop.f32.mrf.mxu0  ;;  %v6487_v38 = vor.u32 %v8523_v31, %v6486_v29  ;;  %v2775_v31 = vpop.f32.mrf.mxu3 }
 0x187   :  { %v6608_v24 = vld [vmem:[#allocation5 + $0x830] sm:$0xf0]  ;;  %v5719_v61 = vor.u32 %v8331_v22, %v5718_v21  ;;  %v8315_v52 = vld [vmem:[#allocation5 + $0xb4] sm:$0xf0]  ;;  %v9356_v14 = vadd.f32 %v2812_v34, %v2800_v59 }
 0x188   :  { %v8678_v32 = vld [vmem:[#allocation5 + $0xc14] sm:$0xf]  ;;  %v6611_v39 = vor.u32 %v8550_v23, %v6608_v24  ;;  %3018 = vmatpush.bf16.msrb.mxu1 %v6355_v36  ;;  %v6230_v23 = vld [vmem:[#allocation5 + $0x518] sm:$0xf] }
 0x189   :  { %v7120_v33 = vld [vmem:[#allocation5 + $0xc30] sm:$0xf0]  ;;  %3006 = vmatmul.bf16.vlgmr.msrb.gmra.mxu3 %v9267_v51  ;;  %v8459_v24 = vld [vmem:[#allocation5 + $0x534] sm:$0xf0] }
 0x18a   :  { %v8614_v56 = vld [vmem:[#allocation5 + $0xa14] sm:$0xf]  ;;  %v7123_v46 = vor.u32 %v8678_v32, %v7120_v33  ;;  %3031 = vmatpush.bf16.msrb.mxu0 %v6611_v39  ;;  %v6231_v9 = vor.u32 %v8459_v24, %v6230_v23  ;;  %v5686_v32 = vld [vmem:[#allocation5 + $0xd8] sm:$0xf]  ;;  %v2762_v47 = vpop.f32.mrf.mxu1 }
 0x18b   :  { %v6864_v37 = vld [vmem:[#allocation5 + $0xa30] sm:$0xf0]  ;;  %3019 = vmatmul.bf16.vlgmr.msrb.gmra.mxu1 %v9271_v57  ;;  %v8323_v33 = vld [vmem:[#allocation5 + $0xf4] sm:$0xf0]  ;;  %v8351_v47 = vld [vmem:[#allocation5 + $0x1dc] sm:$0xf] }
 0x18c   :  { %v6867_v50 = vor.u32 %v8614_v56, %v6864_v37  ;;  %3063 = vmatpush.bf16.msra.mxu1 %v5815_v40  ;;  %3057 = vmatpush.bf16.msra.mxu3 %v7123_v46  ;;  %v6198_v36 = vld [vmem:[#allocation5 + $0x4d8] sm:$0xf]  ;;  %v5975_v37 = vor.u32 %v8395_v28, %v5974_v27  ;;  %v5687_v43 = vor.u32 %v8323_v33, %v5686_v32 }
 0x18d   :  { %3032 = vmatmul.bf16.vlgmr.msrb.gmra.mxu0 %v9283_v30  ;;  %v8451_v56 = vld [vmem:[#allocation5 + $0x4f4] sm:$0xf0] }
 0x18e   :  { %3089 = vmatpush.bf16.msra.mxu0 %v6327_v44  ;;  %3044 = vmatpush.bf16.msra.mxu2 %v6867_v50  ;;  %v5942_v39 = vld [vmem:[#allocation5 + $0x2d8] sm:$0xf]  ;;  %v6199_v49 = vor.u32 %v8451_v56, %v6198_v36 }
 0x18f   :  { %v8387_v40 = vld [vmem:[#allocation5 + $0x2f4] sm:$0xf0] }
 0x190   :  { %3076 = vmatpush.bf16.msrb.mxu3 %v6071_v58  ;;  %3064 = vmatpush.bf16.msra.mxu1 %v5783_v0  ;;  %v6454_v44 = vld [vmem:[#allocation5 + $0x6d8] sm:$0xf]  ;;  %v5943_v58 = vor.u32 %v8387_v40, %v5942_v39  ;;  %v2774_v0 = vadd.f32 %v2773_v54, %v2761_v18  ;;  %v6072_v54 = vld [vmem:[#allocation5 + $0x3f8] sm:$0xf0] }
 0x191   :  { %3045 = vmatmul.bf16.vlgmr.msra.gmra.mxu2 %v9285_v35  ;;  %v8515_v46 = vld [vmem:[#allocation5 + $0x6f4] sm:$0xf0] }
 0x192   :  { %3102 = vmatpush.bf16.msrb.mxu2 %v6583_v60  ;;  %3090 = vmatpush.bf16.msra.mxu0 %v6295_v3  ;;  %v5654_v50 = vld [vmem:[#allocation5 + $0x98] sm:$0xf]  ;;  %v6455_v1 = vor.u32 %v8515_v46, %v6454_v44  ;;  %v9354_v8 = vadd.f32 %v9343_v20, %v2774_v0 }
 0x193   :  { %v6166_v60 = vld [vmem:[#allocation5 + $0x498] sm:$0xf]  ;;  %v5655_v3 = vor.u32 %v8315_v52, %v5654_v50  ;;  %v5816_v50 = vld [vmem:[#allocation5 + $0x1f8] sm:$0xf0] }
 0x194   :  { %3077 = vmatpush.bf16.msrb.mxu3 %v6039_v10  ;;  %3065 = vmatpush.bf16.msra.mxu1 %v5751_v15  ;;  %v8443_v62 = vld [vmem:[#allocation5 + $0x4b4] sm:$0xf0]  ;;  %v2814_v15 = vpop.f32.mrf.mxu0  ;;  %v8415_v52 = vld [vmem:[#allocation5 + $0x3dc] sm:$0xf] }
 0x195   :  { %v5910_v2 = vld [vmem:[#allocation5 + $0x298] sm:$0xf]  ;;  %v6167_v10 = vor.u32 %v8443_v62, %v6166_v60 }
 0x196   :  { %3103 = vmatpush.bf16.msrb.mxu2 %v6551_v11  ;;  %3091 = vmatpush.bf16.msra.mxu0 %v6263_v19  ;;  %v8379_v4 = vld [vmem:[#allocation5 + $0x2b4] sm:$0xf0] }
 0x197   :  { %v6422_v5 = vld [vmem:[#allocation5 + $0x698] sm:$0xf]  ;;  %v5911_v17 = vor.u32 %v8379_v4, %v5910_v2  ;;  %v6075_v2 = vor.u32 %v8415_v52, %v6072_v54  ;;  %v8343_v4 = vld [vmem:[#allocation5 + $0x19c] sm:$0xf] }
 0x198   :  { %3078 = vmatpush.bf16.msrb.mxu3 %v6007_v25  ;;  %3066 = vmatpush.bf16.msra.mxu1 %v5719_v61  ;;  %v8507_v6 = vld [vmem:[#allocation5 + $0x6b4] sm:$0xf0]  ;;  %v5688_v52 = vld [vmem:[#allocation5 + $0xf8] sm:$0xf0] }
 0x199   :  { %v5622_v11 = vld [vmem:[#allocation5 + $0x58] sm:$0xf]  ;;  %7137 = vmatmul.msk.bf16.vlgmr.msra.gmra.mxu3 %vm2513_vm0, %v9279_v45  ;;  %v6423_v18 = vor.u32 %v8507_v6, %v6422_v5  ;;  %v5784_v6 = vld [vmem:[#allocation5 + $0x1b8] sm:$0xf0] }
 0x19a   :  { %3104 = vmatpush.bf16.msrb.mxu2 %v6519_v26  ;;  %3092 = vmatpush.bf16.msra.mxu0 %v6231_v9  ;;  %v8307_v13 = vld [vmem:[#allocation5 + $0x74] sm:$0xf0]  ;;  %v2801_v9 = vpop.f32.mrf.mxu2  ;;  %v8383_v54 = vld [vmem:[#allocation5 + $0x2dc] sm:$0xf] }
 0x19b   :  { %v6134_v16 = vld [vmem:[#allocation5 + $0x458] sm:$0xf]  ;;  %v5623_v21 = vor.u32 %v8307_v13, %v5622_v11  ;;  %v6040_v11 = vld [vmem:[#allocation5 + $0x3b8] sm:$0xf0] }
 0x19c   :  { %3079 = vmatpush.bf16.msrb.mxu3 %v5975_v37  ;;  %3067 = vmatpush.bf16.msra.mxu1 %v5687_v43  ;;  %v8435_v12 = vld [vmem:[#allocation5 + $0x474] sm:$0xf0] }
 0x19d   :  { %v5878_v19 = vld [vmem:[#allocation5 + $0x258] sm:$0xf]  ;;  %v6135_v24 = vor.u32 %v8435_v12, %v6134_v16  ;;  %v5787_v12 = vor.u32 %v8343_v4, %v5784_v6  ;;  %v8311_v6 = vld [vmem:[#allocation5 + $0x9c] sm:$0xf] }
 0x19e   :  { %3105 = vmatpush.bf16.msrb.mxu2 %v6487_v38  ;;  %3093 = vmatpush.bf16.msra.mxu0 %v6199_v49  ;;  %v8371_v20 = vld [vmem:[#allocation5 + $0x274] sm:$0xf0] }
 0x19f   :  { %v6390_v22 = vld [vmem:[#allocation5 + $0x658] sm:$0xf]  ;;  %v5879_v32 = vor.u32 %v8371_v20, %v5878_v19  ;;  %v2825_v20 = vpop.f32.mrf.mxu1 }
 0x1a0   :  { %3080 = vmatpush.bf16.msrb.mxu3 %v5943_v58  ;;  %3068 = vmatpush.bf16.msra.mxu1 %v5655_v3  ;;  %v8499_v23 = vld [vmem:[#allocation5 + $0x674] sm:$0xf0] }
 0x1a1   :  { %v5590_v25 = vld [vmem:[#allocation5 + $0x18] sm:$0xf]  ;;  %v6391_v33 = vor.u32 %v8499_v23, %v6390_v22  ;;  %v5752_v23 = vld [vmem:[#allocation5 + $0x178] sm:$0xf0] }
 0x1a2   :  { %3106 = vmatpush.bf16.msrb.mxu2 %v6455_v1  ;;  %3094 = vmatpush.bf16.msra.mxu0 %v6167_v10  ;;  %v8299_v26 = vld [vmem:[#allocation5 + $0x34] sm:$0xf0]  ;;  %v5819_v1 = vor.u32 %v8351_v47, %v5816_v50  ;;  %v8407_v10 = vld [vmem:[#allocation5 + $0x39c] sm:$0xf] }
 0x1a3   :  { %v6102_v27 = vld [vmem:[#allocation5 + $0x418] sm:$0xf]  ;;  %v5591_v37 = vor.u32 %v8299_v26, %v5590_v25  ;;  %v6008_v25 = vld [vmem:[#allocation5 + $0x378] sm:$0xf0]  ;;  %v2826_v26 = vadd.f32 %v2825_v20, %v9356_v14 }
 0x1a4   :  { %v8427_v61 = vld [vmem:[#allocation5 + $0x434] sm:$0xf0]  ;;  %3081 = vmatpush.bf16.msrb.mxu3 %v5911_v17  ;;  %3069 = vmatpush.bf16.msra.mxu1 %v5623_v21  ;;  %v6043_v17 = vor.u32 %v8407_v10, %v6040_v11  ;;  %v8335_v21 = vld [vmem:[#allocation5 + $0x15c] sm:$0xf] }
 0x1a5   :  { %v6838_v28 = vld [vmem:[#allocation5 + $0x9d8] sm:$0xf]  ;;  %v6103_v42 = vor.u32 %v8427_v61, %v6102_v27  ;;  %v5976_v14 = vld [vmem:[#allocation5 + $0x338] sm:$0xf0] }
 0x1a6   :  { %v8611_v29 = vld [vmem:[#allocation5 + $0x9f4] sm:$0xf0]  ;;  %3107 = vmatpush.bf16.msrb.mxu2 %v6423_v18  ;;  %3095 = vmatpush.bf16.msra.mxu0 %v6135_v24  ;;  %v8399_v24 = vld [vmem:[#allocation5 + $0x35c] sm:$0xf] }
 0x1a7   :  { %v5846_v34 = vld [vmem:[#allocation5 + $0x218] sm:$0xf]  ;;  %v6839_v43 = vor.u32 %v8611_v29, %v6838_v28  ;;  %v5755_v29 = vor.u32 %v8335_v21, %v5752_v23  ;;  %v6011_v31 = vor.u32 %v8399_v24, %v6008_v25  ;;  %v8319_v47 = vld [vmem:[#allocation5 + $0xdc] sm:$0xf] }
 0x1a8   :  { %v7126_v36 = vld [vmem:[#allocation5 + $0xc18] sm:$0xf]  ;;  %3082 = vmatpush.bf16.msrb.mxu3 %v5879_v32  ;;  %3070 = vmatpush.bf16.msra.mxu1 %v5591_v37  ;;  %v5656_v11 = vld [vmem:[#allocation5 + $0xb8] sm:$0xf0] }
 0x1a9   :  { %v8683_v56 = vld [vmem:[#allocation5 + $0xc34] sm:$0xf0]  ;;  %v5659_v20 = vor.u32 %v8311_v6, %v5656_v11  ;;  %v8303_v25 = vld [vmem:[#allocation5 + $0x5c] sm:$0xf] }
 0x1aa   :  { %v8363_v38 = vld [vmem:[#allocation5 + $0x234] sm:$0xf0]  ;;  %v7127_v49 = vor.u32 %v8683_v56, %v7126_v36  ;;  %3108 = vmatpush.bf16.msrb.mxu2 %v6391_v33  ;;  %3096 = vmatpush.bf16.msra.mxu0 %v6103_v42  ;;  %v8327_v33 = vld [vmem:[#allocation5 + $0x11c] sm:$0xf] }
 0x1ab   :  { %v6358_v39 = vld [vmem:[#allocation5 + $0x618] sm:$0xf]  ;;  %v5847_v58 = vor.u32 %v8363_v38, %v5846_v34  ;;  %3071 = vmatmul.bf16.vlgmr.msra.gmra.mxu1 %v9269_v55  ;;  %v5720_v36 = vld [vmem:[#allocation5 + $0x138] sm:$0xf0] }
 0x1ac   :  { %v8491_v40 = vld [vmem:[#allocation5 + $0x634] sm:$0xf0]  ;;  %3115 = vmatpush.bf16.msrb.mxu1 %v6839_v43  ;;  %v8391_v56 = vld [vmem:[#allocation5 + $0x31c] sm:$0xf]  ;;  %v5723_v42 = vor.u32 %v8327_v33, %v5720_v36 }
 0x1ad   :  { %v7094_v44 = vld [vmem:[#allocation5 + $0xbd8] sm:$0xf]  ;;  %v6359_v60 = vor.u32 %v8491_v40, %v6358_v39  ;;  %3083 = vmatpush.bf16.msrb.mxu3 %v5847_v58  ;;  %3097 = vmatmul.bf16.vlgmr.msra.gmra.mxu0 %v9267_v51  ;;  %v2864_v39 = vpop.f32.mrf.mxu0  ;;  %v5979_v43 = vor.u32 %v8391_v56, %v5976_v14  ;;  %v5944_v58 = vld [vmem:[#allocation5 + $0x2f8] sm:$0xf0] }
 0x1ae   :  { %v8675_v46 = vld [vmem:[#allocation5 + $0xbf4] sm:$0xf0]  ;;  %3148 = vmatpush.bf16.msrb.mxu0 %v7127_v49  ;;  %v2827_v49 = vpop.f32.mrf.mxu1  ;;  %v6328_v36 = vld [vmem:[#allocation5 + $0x5f8] sm:$0xf0] }
 0x1af   :  { %v6806_v62 = vld [vmem:[#allocation5 + $0x998] sm:$0xf]  ;;  %v7095_v0 = vor.u32 %v8675_v46, %v7094_v44  ;;  %3109 = vmatpush.bf16.msrb.mxu2 %v6359_v60  ;;  %v6552_v11 = vld [vmem:[#allocation5 + $0x7b8] sm:$0xf0] }
 0x1b0   :  { %v8603_v63 = vld [vmem:[#allocation5 + $0x9b4] sm:$0xf0]  ;;  %3084 = vmatmul.bf16.vlgmr.msrb.gmra.mxu3 %v9275_v7 }
 0x1b1   :  { %v7062_v59 = vld [vmem:[#allocation5 + $0xb98] sm:$0xf]  ;;  %v6807_v5 = vor.u32 %v8603_v63, %v6806_v62  ;;  %3128 = vmatpush.bf16.msra.mxu3 %v7095_v0  ;;  %v2838_v63 = vpop.f32.mrf.mxu3  ;;  %v2851_v0 = vpop.f32.mrf.mxu2 }
 0x1b2   :  { %v8667_v3 = vld [vmem:[#allocation5 + $0xbb4] sm:$0xf0]  ;;  %3167 = vmatpush.bf16.msra.mxu0 %v6075_v2  ;;  %3110 = vmatmul.bf16.vlgmr.msrb.gmra.mxu2 %v9271_v57  ;;  %v2839_v2 = vadd.f32 %v2838_v63, %v2826_v26  ;;  %v7096_v63 = vld [vmem:[#allocation5 + $0xbf8] sm:$0xf0] }
 0x1b3   :  { %v6774_v13 = vld [vmem:[#allocation5 + $0x958] sm:$0xf]  ;;  %v7063_v16 = vor.u32 %v8667_v3, %v7062_v59  ;;  %3154 = vmatpush.bf16.msra.mxu2 %v5819_v1  ;;  %3116 = vmatpush.bf16.msrb.mxu1 %v6807_v5  ;;  %v5691_v59 = vor.u32 %v8319_v47, %v5688_v52  ;;  %v5947_v3 = vor.u32 %v8383_v54, %v5944_v58  ;;  %v5848_v47 = vld [vmem:[#allocation5 + $0x238] sm:$0xf0] }
 0x1b4   :  { %v8595_v15 = vld [vmem:[#allocation5 + $0x974] sm:$0xf0]  ;;  %v6584_v52 = vld [vmem:[#allocation5 + $0x7f8] sm:$0xf0] }
 0x1b5   :  { %v7030_v18 = vld [vmem:[#allocation5 + $0xb58] sm:$0xf]  ;;  %v6775_v22 = vor.u32 %v8595_v15, %v6774_v13  ;;  %3129 = vmatpush.bf16.msra.mxu3 %v7063_v16  ;;  %v8375_v13 = vld [vmem:[#allocation5 + $0x29c] sm:$0xf]  ;;  %v2852_v16 = vadd.f32 %v2851_v0, %v2839_v2 }
 0x1b6   :  { %v8659_v19 = vld [vmem:[#allocation5 + $0xb74] sm:$0xf0]  ;;  %3168 = vmatpush.bf16.msra.mxu0 %v6043_v17  ;;  %v5912_v15 = vld [vmem:[#allocation5 + $0x2b8] sm:$0xf0]  ;;  %v2877_v26 = vpop.f32.mrf.mxu1 }
 0x1b7   :  { %v6742_v27 = vld [vmem:[#allocation5 + $0x918] sm:$0xf]  ;;  %v7031_v28 = vor.u32 %v8659_v19, %v7030_v18  ;;  %3155 = vmatpush.bf16.msra.mxu2 %v5787_v12  ;;  %3117 = vmatpush.bf16.msrb.mxu1 %v6775_v22  ;;  %v2866_v18 = vpop.f32.mrf.mxu0  ;;  %v2865_v21 = vadd.f32 %v2864_v39, %v2852_v16  ;;  %v5915_v22 = vor.u32 %v8375_v13, %v5912_v15  ;;  %v8607_v54 = vld [vmem:[#allocation5 + $0x9dc] sm:$0xf] }
 0x1b8   :  { %v8587_v61 = vld [vmem:[#allocation5 + $0x934] sm:$0xf0]  ;;  %v6296_v2 = vld [vmem:[#allocation5 + $0x5b8] sm:$0xf0] }
 0x1b9   :  { %v6998_v9 = vld [vmem:[#allocation5 + $0xb18] sm:$0xf]  ;;  %v6743_v34 = vor.u32 %v8587_v61, %v6742_v27  ;;  %3130 = vmatpush.bf16.msra.mxu3 %v7031_v28  ;;  %v5624_v61 = vld [vmem:[#allocation5 + $0x78] sm:$0xf0]  ;;  %v2853_v56 = vpop.f32.mrf.mxu2  ;;  %v2840_v14 = vpop.f32.mrf.mxu3 }
 0x1ba   :  { %v8651_v32 = vld [vmem:[#allocation5 + $0xb34] sm:$0xf0]  ;;  %3169 = vmatpush.bf16.msra.mxu0 %v6011_v31  ;;  %v8367_v28 = vld [vmem:[#allocation5 + $0x25c] sm:$0xf]  ;;  %v9367_v31 = vadd.f32 %v2877_v26, %v2865_v21 }
 0x1bb   :  { %v6710_v37 = vld [vmem:[#allocation5 + $0x8d8] sm:$0xf]  ;;  %v6999_v40 = vor.u32 %v8651_v32, %v6998_v9  ;;  %3156 = vmatpush.bf16.msra.mxu2 %v5755_v29  ;;  %3118 = vmatpush.bf16.msrb.mxu1 %v6743_v34  ;;  %v5880_v29 = vld [vmem:[#allocation5 + $0x278] sm:$0xf0] }
 0x1bc   :  { %v8579_v38 = vld [vmem:[#allocation5 + $0x8f4] sm:$0xf0]  ;;  %v8479_v34 = vld [vmem:[#allocation5 + $0x5dc] sm:$0xf] }
 0x1bd   :  { %v6966_v44 = vld [vmem:[#allocation5 + $0xad8] sm:$0xf]  ;;  %v6711_v50 = vor.u32 %v8579_v38, %v6710_v37  ;;  %3131 = vmatpush.bf16.msra.mxu3 %v6999_v40  ;;  %7138 = vmatmul.msk.bf16.vlgmr.msrb.gmra.mxu0 %vm2513_vm0, %v9279_v45  ;;  %v5627_v37 = vor.u32 %v8303_v25, %v5624_v61  ;;  %v5883_v38 = vor.u32 %v8367_v28, %v5880_v29  ;;  %v8599_v13 = vld [vmem:[#allocation5 + $0x99c] sm:$0xf] }
 0x1be   :  { %v8643_v46 = vld [vmem:[#allocation5 + $0xaf4] sm:$0xf0]  ;;  %3170 = vmatpush.bf16.msra.mxu0 %v5979_v43  ;;  %v6331_v49 = vor.u32 %v8479_v34, %v6328_v36  ;;  %v6808_v16 = vld [vmem:[#allocation5 + $0x9b8] sm:$0xf0] }
 0x1bf   :  { %v6678_v60 = vld [vmem:[#allocation5 + $0x898] sm:$0xf]  ;;  %v6967_v1 = vor.u32 %v8643_v46, %v6966_v44  ;;  %3157 = vmatpush.bf16.msra.mxu2 %v5723_v42  ;;  %3119 = vmatpush.bf16.msrb.mxu1 %v6711_v50  ;;  %v8295_v42 = vld [vmem:[#allocation5 + $0x1c] sm:$0xf] }
 0x1c0   :  { %v8571_v62 = vld [vmem:[#allocation5 + $0x8b4] sm:$0xf0]  ;;  %v5592_v44 = vld [vmem:[#allocation5 + $0x38] sm:$0xf0] }
 0x1c1   :  { %v6934_v4 = vld [vmem:[#allocation5 + $0xa98] sm:$0xf]  ;;  %v6679_v10 = vor.u32 %v8571_v62, %v6678_v60  ;;  %3132 = vmatpush.bf16.msra.mxu3 %v6967_v1  ;;  %v8359_v46 = vld [vmem:[#allocation5 + $0x21c] sm:$0xf]  ;;  %v5595_v0 = vor.u32 %v8295_v42, %v5592_v44 }
 0x1c2   :  { %v8635_v5 = vld [vmem:[#allocation5 + $0xab4] sm:$0xf0]  ;;  %3171 = vmatpush.bf16.msra.mxu0 %v5947_v3  ;;  %v8543_v50 = vld [vmem:[#allocation5 + $0x7dc] sm:$0xf] }
 0x1c3   :  { %v6646_v12 = vld [vmem:[#allocation5 + $0x858] sm:$0xf]  ;;  %v6935_v19 = vor.u32 %v8635_v5, %v6934_v4  ;;  %3158 = vmatpush.bf16.msra.mxu2 %v5691_v59  ;;  %3120 = vmatpush.bf16.msrb.mxu1 %v6679_v10  ;;  %v6840_v60 = vld [vmem:[#allocation5 + $0x9f8] sm:$0xf0]  ;;  %v5851_v59 = vor.u32 %v8359_v46, %v5848_v47  ;;  %v6587_v3 = vor.u32 %v8543_v50, %v6584_v52  ;;  %v2879_v4 = vpop.f32.mrf.mxu1  ;;  %v541_v46 = vperm.slane %v9350_v41, 4 }
 0x1c4   :  { %v8563_v17 = vld [vmem:[#allocation5 + $0x874] sm:$0xf0]  ;;  %v8671_v62 = vld [vmem:[#allocation5 + $0xbdc] sm:$0xf]  ;;  %v6843_v5 = vor.u32 %v8607_v54, %v6840_v60 }
 0x1c5   :  { %v6902_v23 = vld [vmem:[#allocation5 + $0xa58] sm:$0xf]  ;;  %v6647_v27 = vor.u32 %v8563_v17, %v6646_v12  ;;  %3133 = vmatpush.bf16.msra.mxu3 %v6935_v19  ;;  %v8471_v1 = vld [vmem:[#allocation5 + $0x59c] sm:$0xf]  ;;  %v7099_v6 = vor.u32 %v8671_v62, %v7096_v63 }
 0x1c6   :  { %v8627_v24 = vld [vmem:[#allocation5 + $0xa74] sm:$0xf0]  ;;  %3172 = vmatpush.bf16.msra.mxu0 %v5915_v22  ;;  %v8535_v10 = vld [vmem:[#allocation5 + $0x79c] sm:$0xf]  ;;  %v6299_v15 = vor.u32 %v8471_v1, %v6296_v2 }
 0x1c7   :  { %v6614_v9 = vld [vmem:[#allocation5 + $0x818] sm:$0xf]  ;;  %v6903_v33 = vor.u32 %v8627_v24, %v6902_v23  ;;  %3159 = vmatpush.bf16.msra.mxu2 %v5659_v20  ;;  %3121 = vmatpush.bf16.msrb.mxu1 %v6647_v27  ;;  %v8663_v12 = vld [vmem:[#allocation5 + $0xb9c] sm:$0xf]  ;;  %v6555_v21 = vor.u32 %v8535_v10, %v6552_v11  ;;  %v6811_v20 = vor.u32 %v8599_v13, %v6808_v16 }
 0x1c8   :  { %v8555_v32 = vld [vmem:[#allocation5 + $0x834] sm:$0xf0]  ;;  %v7064_v17 = vld [vmem:[#allocation5 + $0xbb8] sm:$0xf0] }
 0x1c9   :  { %v6870_v39 = vld [vmem:[#allocation5 + $0xa18] sm:$0xf]  ;;  %v6615_v43 = vor.u32 %v8555_v32, %v6614_v9  ;;  %3134 = vmatpush.bf16.msra.mxu3 %v6903_v33  ;;  %v8463_v18 = vld [vmem:[#allocation5 + $0x55c] sm:$0xf]  ;;  %v7067_v22 = vor.u32 %v8663_v12, %v7064_v17 }
 0x1ca   :  { %v8619_v40 = vld [vmem:[#allocation5 + $0xa34] sm:$0xf0]  ;;  %3173 = vmatpush.bf16.msra.mxu0 %v5883_v38  ;;  %v6264_v19 = vld [vmem:[#allocation5 + $0x578] sm:$0xf0] }
 0x1cb   :  { %v6871_v58 = vor.u32 %v8619_v40, %v6870_v39  ;;  %3160 = vmatpush.bf16.msra.mxu2 %v5627_v37  ;;  %3122 = vmatpush.bf16.msrb.mxu1 %v6615_v43  ;;  %v8527_v23 = vld [vmem:[#allocation5 + $0x75c] sm:$0xf]  ;;  %v6267_v26 = vor.u32 %v8463_v18, %v6264_v19  ;;  %v2903_v42 = vpop.f32.mrf.mxu1 }
 0x1cc   :  { %v6520_v24 = vld [vmem:[#allocation5 + $0x778] sm:$0xf0] }
 0x1cd   :  { %3135 = vmatpush.bf16.msra.mxu3 %v6871_v58  ;;  %v8591_v25 = vld [vmem:[#allocation5 + $0x95c] sm:$0xf]  ;;  %v6523_v32 = vor.u32 %v8527_v23, %v6520_v24 }
 0x1ce   :  { %3123 = vmatmul.bf16.vlgmr.msrb.gmra.mxu1 %v9283_v30  ;;  %3174 = vmatpush.bf16.msra.mxu0 %v5851_v59  ;;  %v6776_v27 = vld [vmem:[#allocation5 + $0x978] sm:$0xf0] }
 0x1cf   :  { %3180 = vmatpush.bf16.msra.mxu1 %v6331_v49  ;;  %3161 = vmatpush.bf16.msra.mxu2 %v5595_v0  ;;  %v8655_v61 = vld [vmem:[#allocation5 + $0xb5c] sm:$0xf]  ;;  %v6779_v33 = vor.u32 %v8591_v25, %v6776_v27  ;;  %v2890_v0 = vpop.f32.mrf.mxu3 }
 0x1d0   :  { %3136 = vmatmul.bf16.vlgmr.msra.gmra.mxu3 %v9285_v35  ;;  %v7032_v28 = vld [vmem:[#allocation5 + $0xb78] sm:$0xf0]  ;;  %v2891_v59 = vadd.f32 %v2890_v0, %v541_v46  ;;  %v8778_v0 = vld [vmem:[#allocation8 + $0x2ec] sm:$0xf0] }
 0x1d1   :  { %3193 = vmatpush.bf16.msrb.mxu3 %v6587_v3  ;;  %v8455_v29 = vld [vmem:[#allocation5 + $0x51c] sm:$0xf]  ;;  %3175 = vmatmul.bf16.vlgmr.msra.gmra.mxu0 %v9275_v7  ;;  %v7035_v34 = vor.u32 %v8655_v61, %v7032_v28  ;;  %v2916_v3 = vpop.f32.mrf.mxu2 }
 0x1d2   :  { %3219 = vmatpush.bf16.msrb.mxu0 %v7099_v6  ;;  %v6232_v9 = vld [vmem:[#allocation5 + $0x538] sm:$0xf0]  ;;  %3162 = vmatmul.bf16.vlgmr.msra.gmra.mxu2 %v9269_v55  ;;  %v2929_v55 = vpop.f32.mrf.mxu0  ;;  %v2904_v13 = vadd.f32 %v2903_v42, %v2891_v59  ;;  %v8810_v59 = vld [vmem:[#allocation8 + $0x3ec] sm:$0xf0] }
 0x1d3   :  { %3206 = vmatpush.bf16.msrb.mxu2 %v6843_v5  ;;  %3181 = vmatpush.bf16.msra.mxu1 %v6299_v15  ;;  %v8519_v36 = vld [vmem:[#allocation5 + $0x71c] sm:$0xf]  ;;  %v6235_v37 = vor.u32 %v8455_v29, %v6232_v9  ;;  %v2905_v18 = vpop.f32.mrf.mxu1 }
 0x1d4   :  { %v6488_v56 = vld [vmem:[#allocation5 + $0x738] sm:$0xf0]  ;;  %v7622_v18 = vld [vmem:[#allocation8 + $0x3c0] sm:$0xf] }
 0x1d5   :  { %3194 = vmatpush.bf16.msrb.mxu3 %v6555_v21  ;;  %v8583_v14 = vld [vmem:[#allocation5 + $0x91c] sm:$0xf]  ;;  %v6491_v7 = vor.u32 %v8519_v36, %v6488_v56 }
 0x1d6   :  { %3220 = vmatpush.bf16.msrb.mxu0 %v7067_v22  ;;  %v6744_v38 = vld [vmem:[#allocation5 + $0x938] sm:$0xf0]  ;;  %v2917_v22 = vadd.f32 %v2916_v3, %v2904_v13 }
 0x1d7   :  { %3207 = vmatpush.bf16.msrb.mxu2 %v6811_v20  ;;  %3182 = vmatpush.bf16.msra.mxu1 %v6267_v26  ;;  %v8647_v39 = vld [vmem:[#allocation5 + $0xb1c] sm:$0xf]  ;;  %v6747_v47 = vor.u32 %v8583_v14, %v6744_v38  ;;  %v2892_v56 = vpop.f32.mrf.mxu3 }
 0x1d8   :  { %v7000_v40 = vld [vmem:[#allocation5 + $0xb38] sm:$0xf0]  ;;  %v9374_v28 = vadd.f32 %v2929_v55, %v2917_v22  ;;  %v8702_v56 = vld [vmem:[#allocation8 + $0x8c] sm:$0xf0] }
 0x1d9   :  { %v8447_v43 = vld [vmem:[#allocation5 + $0x4dc] sm:$0xf]  ;;  %3195 = vmatpush.bf16.msrb.mxu3 %v6523_v32  ;;  %v7003_v49 = vor.u32 %v8647_v39, %v7000_v40  ;;  %v2918_v14 = vpop.f32.mrf.mxu2 }
 0x1da   :  { %v6200_v44 = vld [vmem:[#allocation5 + $0x4f8] sm:$0xf0]  ;;  %3221 = vmatpush.bf16.msrb.mxu0 %v7035_v34  ;;  %v2931_v20 = vpop.f32.mrf.mxu0  ;;  %v7334_v14 = vld [vmem:[#allocation8 + $0x180] sm:$0xf] }
 0x1db   :  { %3208 = vmatpush.bf16.msrb.mxu2 %v6779_v33  ;;  %v8511_v50 = vld [vmem:[#allocation5 + $0x6dc] sm:$0xf]  ;;  %3183 = vmatpush.bf16.msra.mxu1 %v6235_v37  ;;  %v6203_v58 = vor.u32 %v8447_v43, %v6200_v44 }
 0x1dc   :  { %v6456_v52 = vld [vmem:[#allocation5 + $0x6f8] sm:$0xf0] }
 0x1dd   :  { %v8575_v54 = vld [vmem:[#allocation5 + $0x8dc] sm:$0xf]  ;;  %3196 = vmatpush.bf16.msrb.mxu3 %v6491_v7  ;;  %v6459_v4 = vor.u32 %v8511_v50, %v6456_v52  ;;  %v7254_v52 = vld [vmem:[#allocation8 + $0xe0] sm:$0xf] }
 0x1de   :  { %v6712_v60 = vld [vmem:[#allocation5 + $0x8f8] sm:$0xf0]  ;;  %3222 = vmatpush.bf16.msrb.mxu0 %v7003_v49 }
 0x1df   :  { %v8639_v62 = vld [vmem:[#allocation5 + $0xadc] sm:$0xf]  ;;  %3209 = vmatpush.bf16.msrb.mxu2 %v6747_v47  ;;  %v6715_v41 = vor.u32 %v8575_v54, %v6712_v60  ;;  %3184 = vmatpush.bf16.msra.mxu1 %v6203_v58  ;;  %v8714_v54 = vld [vmem:[#allocation8 + $0xec] sm:$0xf0]  ;;  %v7382_v58 = vld [vmem:[#allocation8 + $0x1e0] sm:$0xf] }
 0x1e0   :  { %v6968_v63 = vld [vmem:[#allocation5 + $0xaf8] sm:$0xf0] }
 0x1e1   :  { %v8439_v1 = vld [vmem:[#allocation5 + $0x49c] sm:$0xf]  ;;  %v6971_v5 = vor.u32 %v8639_v62, %v6968_v63  ;;  %3197 = vmatpush.bf16.msrb.mxu3 %v6459_v4  ;;  %v8746_v62 = vld [vmem:[#allocation8 + $0x1ec] sm:$0xf0]  ;;  %v7510_v63 = vld [vmem:[#allocation8 + $0x2e0] sm:$0xf]  ;;  %v7255_v4 = vor.u32 %v8714_v54, %v7254_v52 }
 0x1e2   :  { %v6168_v2 = vld [vmem:[#allocation5 + $0x4b8] sm:$0xf0]  ;;  %v8730_v52 = vld [vmem:[#allocation8 + $0x16c] sm:$0xf0]  ;;  %v7446_v54 = vld [vmem:[#allocation8 + $0x260] sm:$0xf] }
 0x1e3   :  { %v8503_v6 = vld [vmem:[#allocation5 + $0x69c] sm:$0xf]  ;;  %v6171_v15 = vor.u32 %v8439_v1, %v6168_v2  ;;  %3210 = vmatpush.bf16.msrb.mxu2 %v6715_v41  ;;  %3223 = vmatpush.bf16.msrb.mxu0 %v6971_v5  ;;  %v7638_v2 = vld [vmem:[#allocation8 + $0x3e0] sm:$0xf]  ;;  %v7383_v41 = vor.u32 %v8746_v62, %v7382_v58  ;;  %v7511_v5 = vor.u32 %v8778_v0, %v7510_v63  ;;  %v8762_v58 = vld [vmem:[#allocation8 + $0x26c] sm:$0xf0] }
 0x1e4   :  { %v6424_v10 = vld [vmem:[#allocation5 + $0x6b8] sm:$0xf0]  ;;  %v7639_v13 = vor.u32 %v8810_v59, %v7638_v2  ;;  %v7574_v62 = vld [vmem:[#allocation8 + $0x360] sm:$0xf]  ;;  %v8794_v63 = vld [vmem:[#allocation8 + $0x36c] sm:$0xf0]  ;;  %v7447_v2 = vor.u32 %v8762_v58, %v7446_v54 }
 0x1e5   :  { %v8567_v11 = vld [vmem:[#allocation5 + $0x89c] sm:$0xf]  ;;  %v6427_v23 = vor.u32 %v8503_v6, %v6424_v10  ;;  %3185 = vmatpush.bf16.msra.mxu1 %v6171_v15  ;;  %v7238_v6 = vld [vmem:[#allocation8 + $0xc0] sm:$0xf]  ;;  %v8710_v10 = vld [vmem:[#allocation8 + $0xcc] sm:$0xf0] }
 0x1e6   :  { %v6680_v16 = vld [vmem:[#allocation5 + $0x8b8] sm:$0xf0]  ;;  %v8742_v15 = vld [vmem:[#allocation8 + $0x1cc] sm:$0xf0]  ;;  %v7174_v59 = vld [vmem:[#allocation8 + $0x40] sm:$0xf] }
 0x1e7   :  { %v8631_v12 = vld [vmem:[#allocation5 + $0xa9c] sm:$0xf]  ;;  %v6683_v24 = vor.u32 %v8567_v11, %v6680_v16  ;;  %3198 = vmatpush.bf16.msrb.mxu3 %v6427_v23  ;;  %v7366_v11 = vld [vmem:[#allocation8 + $0x1c0] sm:$0xf] }
 0x1e8   :  { %v6936_v17 = vld [vmem:[#allocation5 + $0xab8] sm:$0xf0]  ;;  %v7494_v16 = vld [vmem:[#allocation8 + $0x2c0] sm:$0xf]  ;;  %v7367_v20 = vor.u32 %v8742_v15, %v7366_v11  ;;  %v8790_v15 = vld [vmem:[#allocation8 + $0x34c] sm:$0xf0] }
 0x1e9   :  { %v8431_v19 = vld [vmem:[#allocation5 + $0x45c] sm:$0xf]  ;;  %v6939_v25 = vor.u32 %v8631_v12, %v6936_v17  ;;  %3211 = vmatpush.bf16.msrb.mxu2 %v6683_v24  ;;  %v8774_v12 = vld [vmem:[#allocation8 + $0x2cc] sm:$0xf0]  ;;  %v9376_v17 = vpop.f32.mrf.mxu2  ;;  %v7222_v23 = vld [vmem:[#allocation8 + $0xa0] sm:$0xf] }
 0x1ea   :  { %v6136_v21 = vld [vmem:[#allocation5 + $0x478] sm:$0xf0]  ;;  %v7495_v22 = vor.u32 %v8774_v12, %v7494_v16  ;;  %v8706_v24 = vld [vmem:[#allocation8 + $0xac] sm:$0xf0] }
 0x1eb   :  { %v8495_v26 = vld [vmem:[#allocation5 + $0x65c] sm:$0xf]  ;;  %v6139_v29 = vor.u32 %v8431_v19, %v6136_v21  ;;  %3224 = vmatpush.bf16.msrb.mxu0 %v6939_v25  ;;  %v8806_v19 = vld [vmem:[#allocation8 + $0x3cc] sm:$0xf0]  ;;  %v7239_v21 = vor.u32 %v8710_v10, %v7238_v6  ;;  %v7350_v25 = vld [vmem:[#allocation8 + $0x1a0] sm:$0xf] }
 0x1ec   :  { %v6392_v27 = vld [vmem:[#allocation5 + $0x678] sm:$0xf0]  ;;  %v7430_v6 = vld [vmem:[#allocation8 + $0x240] sm:$0xf]  ;;  %v8758_v10 = vld [vmem:[#allocation8 + $0x24c] sm:$0xf0] }
 0x1ed   :  { %v8559_v61 = vld [vmem:[#allocation5 + $0x85c] sm:$0xf]  ;;  %v6395_v37 = vor.u32 %v8495_v26, %v6392_v27  ;;  %3186 = vmatpush.bf16.msra.mxu1 %v6139_v29  ;;  %v7623_v26 = vor.u32 %v8806_v19, %v7622_v18  ;;  %v8738_v27 = vld [vmem:[#allocation8 + $0x1ac] sm:$0xf0]  ;;  %v7606_v29 = vld [vmem:[#allocation8 + $0x3a0] sm:$0xf] }
 0x1ee   :  { %v6648_v9 = vld [vmem:[#allocation5 + $0x878] sm:$0xf0] }
 0x1ef   :  { %v8623_v32 = vld [vmem:[#allocation5 + $0xa5c] sm:$0xf]  ;;  %v6651_v40 = vor.u32 %v8559_v61, %v6648_v9  ;;  %3199 = vmatpush.bf16.msrb.mxu3 %v6395_v37  ;;  %v7478_v61 = vld [vmem:[#allocation8 + $0x2a0] sm:$0xf]  ;;  %v8802_v9 = vld [vmem:[#allocation8 + $0x3ac] sm:$0xf0] }
 0x1f0   :  { %v6904_v33 = vld [vmem:[#allocation5 + $0xa78] sm:$0xf0]  ;;  %v8734_v37 = vld [vmem:[#allocation8 + $0x18c] sm:$0xf0] }
 0x1f1   :  { %v8423_v34 = vld [vmem:[#allocation5 + $0x41c] sm:$0xf]  ;;  %v6907_v42 = vor.u32 %v8623_v32, %v6904_v33  ;;  %3212 = vmatpush.bf16.msrb.mxu2 %v6651_v40  ;;  %v7223_v32 = vor.u32 %v8706_v24, %v7222_v23  ;;  %v7351_v33 = vor.u32 %v8738_v27, %v7350_v25  ;;  %v9382_v40 = vpop.f32.mrf.mxu1  ;;  %v7286_v23 = vld [vmem:[#allocation8 + $0x120] sm:$0xf]  ;;  %v8722_v25 = vld [vmem:[#allocation8 + $0x12c] sm:$0xf0] }
 0x1f2   :  { %v6104_v36 = vld [vmem:[#allocation5 + $0x438] sm:$0xf0]  ;;  %v8754_v27 = vld [vmem:[#allocation8 + $0x22c] sm:$0xf0] }
 0x1f3   :  { %v8679_v38 = vld [vmem:[#allocation5 + $0xc1c] sm:$0xf]  ;;  %v6107_v7 = vor.u32 %v8423_v34, %v6104_v36  ;;  %3225 = vmatpush.bf16.msrb.mxu0 %v6907_v42  ;;  %v7206_v36 = vld [vmem:[#allocation8 + $0x80] sm:$0xf]  ;;  %v8798_v42 = vld [vmem:[#allocation8 + $0x38c] sm:$0xf0] }
 0x1f4   :  { %v7128_v39 = vld [vmem:[#allocation5 + $0xc38] sm:$0xf0] }
 0x1f5   :  { %v8487_v43 = vld [vmem:[#allocation5 + $0x61c] sm:$0xf]  ;;  %v7131_v50 = vor.u32 %v8679_v38, %v7128_v39  ;;  %3187 = vmatpush.bf16.msra.mxu1 %v6107_v7  ;;  %v7462_v38 = vld [vmem:[#allocation8 + $0x280] sm:$0xf]  ;;  %v8766_v39 = vld [vmem:[#allocation8 + $0x28c] sm:$0xf0] }
 0x1f6   :  { %v6360_v44 = vld [vmem:[#allocation5 + $0x638] sm:$0xf0]  ;;  %v7463_v7 = vor.u32 %v8766_v39, %v7462_v38  ;;  %v7526_v38 = vld [vmem:[#allocation8 + $0x300] sm:$0xf]  ;;  %v8782_v39 = vld [vmem:[#allocation8 + $0x30c] sm:$0xf0] }
 0x1f7   :  { %v8551_v55 = vld [vmem:[#allocation5 + $0x81c] sm:$0xf]  ;;  %v6363_v60 = vor.u32 %v8487_v43, %v6360_v44  ;;  %v9384_v43 = vpop.f32.mrf.mxu0  ;;  %v7207_v44 = vor.u32 %v8702_v56, %v7206_v36  ;;  %v7270_v36 = vld [vmem:[#allocation8 + $0x100] sm:$0xf]  ;;  %v8718_v56 = vld [vmem:[#allocation8 + $0x10c] sm:$0xf0]  ;;  %v7527_v54 = vor.u32 %v8782_v39, %v7526_v38 }
 0x1f8   :  { %v6616_v46 = vld [vmem:[#allocation5 + $0x838] sm:$0xf0]  ;;  %3188 = vmatmul.bf16.vlgmr.msra.gmra.mxu1 %v9267_v51  ;;  %v8770_v51 = vld [vmem:[#allocation8 + $0x2ac] sm:$0xf0]  ;;  %v7830_v38 = vld [vmem:[#allocation8 + $0x560] sm:$0xf] }
 0x1f9   :  { %v8615_v47 = vld [vmem:[#allocation5 + $0xa1c] sm:$0xf]  ;;  %v6619_v1 = vor.u32 %v8551_v55, %v6616_v46  ;;  %3239 = vmatpush.bf16.msrb.mxu1 %v7131_v50  ;;  %3200 = vmatpush.bf16.msrb.mxu3 %v6363_v60  ;;  %v7479_v34 = vor.u32 %v8770_v51, %v7478_v61  ;;  %v7335_v55 = vor.u32 %v8734_v37, %v7334_v14  ;;  %v7190_v46 = vld [vmem:[#allocation8 + $0x60] sm:$0xf]  ;;  %v9386_v60 = vpop.f32.mrf.mxu3  ;;  %v2957_v11 = vpop.f32.mrf.mxu1  ;;  %v8786_v61 = vld [vmem:[#allocation8 + $0x32c] sm:$0xf0] }
 0x1fa   :  { %v6872_v49 = vld [vmem:[#allocation5 + $0xa38] sm:$0xf0]  ;;  %v8750_v37 = vld [vmem:[#allocation8 + $0x20c] sm:$0xf0] }
 0x1fb   :  { %v6875_v3 = vor.u32 %v8615_v47, %v6872_v49  ;;  %3213 = vmatpush.bf16.msrb.mxu2 %v6619_v1  ;;  %v8698_v47 = vld [vmem:[#allocation8 + $0x6c] sm:$0xf0]  ;;  %v7318_v49 = vld [vmem:[#allocation8 + $0x160] sm:$0xf] }
 0x1fc   :  { %3201 = vmatmul.bf16.vlgmr.msrb.gmra.mxu3 %v9271_v57  ;;  %v7607_v57 = vor.u32 %v8802_v9, %v7606_v29  ;;  %v7191_v0 = vor.u32 %v8698_v47, %v7190_v46  ;;  %v7319_v1 = vor.u32 %v8730_v52, %v7318_v49  ;;  %v7142_v9 = vld [vmem:[#allocation8] sm:$0xf]  ;;  %v3245_v46 = vmax.f32 %v9317_v53, 0.0  ;;  %v8858_v39 = vld [vmem:[#allocation8 + $0x56c] sm:$0xf0] }
 0x1fd   :  { %3226 = vmatpush.bf16.msrb.mxu0 %v6875_v3  ;;  %4807 = vmatpush.bf16.msra.mxu3 %v7255_v4  ;;  %v8694_v3 = vld [vmem:[#allocation8 + $0x4c] sm:$0xf0]  ;;  %v7302_v4 = vld [vmem:[#allocation8 + $0x140] sm:$0xf]  ;;  %v7271_v47 = vor.u32 %v8718_v56, %v7270_v36  ;;  %v3247_v52 = vmax.f32 %v9354_v8, 0.0 }
 0x1fe   :  { %4820 = vmatpush.bf16.msra.mxu1 %v7383_v41  ;;  %3214 = vmatmul.bf16.vlgmr.msrb.gmra.mxu2 %v9283_v30  ;;  %v2970_v30 = vpop.f32.mrf.mxu2  ;;  %v7575_v41 = vor.u32 %v8794_v63, %v7574_v62  ;;  %v7175_v18 = vor.u32 %v8694_v3, %v7174_v59  ;;  %v8022_v62 = vld [vmem:[#allocation8 + $0x6e0] sm:$0xf]  ;;  %v8906_v63 = vld [vmem:[#allocation8 + $0x6ec] sm:$0xf0] }
 0x1ff   :  { %4833 = vmatpush.bf16.msra.mxu2 %v7511_v5  ;;  %v8726_v5 = vld [vmem:[#allocation8 + $0x14c] sm:$0xf0]  ;;  %v2983_v12 = vpop.f32.mrf.mxu0  ;;  %v7766_v30 = vld [vmem:[#allocation8 + $0x4e0] sm:$0xf]  ;;  %v9400_v8 = vpack.c.bf16 %v3247_v52, %v3247_v52 }
 0x200   :  { %3227 = vmatmul.bf16.vlgmr.msrb.gmra.mxu0 %v9285_v35  ;;  %v7590_v35 = vld [vmem:[#allocation8 + $0x380] sm:$0xf]  ;;  %v7303_v19 = vor.u32 %v8726_v5, %v7302_v4  ;;  %v8838_v59 = vld [vmem:[#allocation8 + $0x4cc] sm:$0xf0]  ;;  %v9396_v4 = vpack.c.bf16 %v3245_v46, %v3245_v46  ;;  %v9407_v12 = vld [vmem:[#allocation7] sm:$0xff] }
 0x201   :  { %4846 = vmatpush.bf16.msra.mxu0 %v7639_v13  ;;  %4808 = vmatpush.bf16.msra.mxu3 %v7239_v21  ;;  %v7591_v50 = vor.u32 %v8798_v42, %v7590_v35  ;;  %v7558_v13 = vld [vmem:[#allocation8 + $0x340] sm:$0xf]  ;;  %v7431_v21 = vor.u32 %v8758_v10, %v7430_v6  ;;  %v2944_v51 = vpop.f32.mrf.mxu3  ;;  %v8842_v35 = vld [vmem:[#allocation8 + $0x4ec] sm:$0xf0] }
 0x202   :  { %4821 = vmatpush.bf16.msra.mxu1 %v7367_v20  ;;  %v7158_v20 = vld [vmem:[#allocation8 + $0x20] sm:$0xf]  ;;  %v7559_v24 = vor.u32 %v8790_v15, %v7558_v13  ;;  %v7767_v58 = vor.u32 %v8842_v35, %v7766_v30  ;;  %v8870_v3 = vld [vmem:[#allocation8 + $0x5cc] sm:$0xf0]  ;;  %v2943_v35 = vadd.f32 %v9386_v60, %v9374_v28 }
 0x203   :  { %4834 = vmatpush.bf16.msra.mxu2 %v7495_v22  ;;  %v8690_v22 = vld [vmem:[#allocation8 + $0x2c] sm:$0xf0]  ;;  %v7878_v53 = vld [vmem:[#allocation8 + $0x5c0] sm:$0xf] }
 0x204   :  { %v7159_v29 = vor.u32 %v8690_v22, %v7158_v20  ;;  %v8006_v6 = vld [vmem:[#allocation8 + $0x6c0] sm:$0xf]  ;;  %v7879_v11 = vor.u32 %v8870_v3, %v7878_v53  ;;  %v8834_v15 = vld [vmem:[#allocation8 + $0x4ac] sm:$0xf0] }
 0x205   :  { %4847 = vmatpush.bf16.msra.mxu0 %v7623_v26  ;;  %4809 = vmatpush.bf16.msra.mxu3 %v7223_v32  ;;  %v7414_v26 = vld [vmem:[#allocation8 + $0x220] sm:$0xf]  ;;  %v7287_v32 = vor.u32 %v8722_v25, %v7286_v23  ;;  %v8862_v51 = vld [vmem:[#allocation8 + $0x58c] sm:$0xf0] }
 0x206   :  { %4822 = vmatpush.bf16.msra.mxu1 %v7351_v33  ;;  %v9390_v16 = vpop.f32.mrf.mxu2  ;;  %v7415_v33 = vor.u32 %v8754_v27, %v7414_v26  ;;  %v7734_v13 = vld [vmem:[#allocation8 + $0x4a0] sm:$0xf]  ;;  %v8830_v27 = vld [vmem:[#allocation8 + $0x48c] sm:$0xf0] }
 0x207   :  { %4835 = vmatpush.bf16.msra.mxu2 %v7479_v34  ;;  %v8686_v34 = vld [vmem:[#allocation8 + $0xc] sm:$0xf0]  ;;  %v7735_v22 = vor.u32 %v8834_v15, %v7734_v13  ;;  %v7990_v23 = vld [vmem:[#allocation8 + $0x6a0] sm:$0xf] }
 0x208   :  { %7139 = vmatmul.msk.bf16.vlgmr.msrb.gmra.mxu1 %vm2513_vm0, %v9279_v45  ;;  %v7542_v45 = vld [vmem:[#allocation8 + $0x320] sm:$0xf]  ;;  %v8854_v52 = vld [vmem:[#allocation8 + $0x54c] sm:$0xf0] }
 0x209   :  { %4848 = vmatpush.bf16.msra.mxu0 %v7607_v57  ;;  %4810 = vmatpush.bf16.msra.mxu3 %v7207_v44  ;;  %v7543_v14 = vor.u32 %v8786_v61, %v7542_v45  ;;  %v7398_v57 = vld [vmem:[#allocation8 + $0x200] sm:$0xf]  ;;  %v7143_v44 = vor.u32 %v8686_v34, %v7142_v9  ;;  %v8894_v34 = vld [vmem:[#allocation8 + $0x68c] sm:$0xf0] }
 0x20a   :  { %4823 = vmatpush.bf16.msra.mxu1 %v7335_v55  ;;  %v7894_v55 = vld [vmem:[#allocation8 + $0x5e0] sm:$0xf]  ;;  %v7399_v49 = vor.u32 %v8750_v37, %v7398_v57  ;;  %v3020_v57 = vpop.f32.mrf.mxu1  ;;  %v8886_v60 = vld [vmem:[#allocation8 + $0x64c] sm:$0xf0] }
 0x20b   :  { %4836 = vmatpush.bf16.msra.mxu2 %v7463_v7  ;;  %v8874_v7 = vld [vmem:[#allocation8 + $0x5ec] sm:$0xf0]  ;;  %v7718_v26 = vld [vmem:[#allocation8 + $0x480] sm:$0xf] }
 0x20c   :  { %v7846_v61 = vld [vmem:[#allocation8 + $0x580] sm:$0xf]  ;;  %v3007_v30 = vpop.f32.mrf.mxu3  ;;  %v8882_v13 = vld [vmem:[#allocation8 + $0x62c] sm:$0xf0] }
 0x20d   :  { %4849 = vmatpush.bf16.msra.mxu0 %v7591_v50  ;;  %4811 = vmatpush.bf16.msra.mxu3 %v7191_v0  ;;  %v3246_v50 = vmax.f32 %v9334_v48, 0.0  ;;  %v3248_v0 = vmax.f32 %v9367_v31, 0.0  ;;  %v8023_v48 = vor.u32 %v8906_v63, %v8022_v62  ;;  %v8902_v31 = vld [vmem:[#allocation8 + $0x6cc] sm:$0xf0]  ;;  %v7847_v36 = vor.u32 %v8862_v51, %v7846_v61  ;;  %v7702_v56 = vld [vmem:[#allocation8 + $0x460] sm:$0xf] }
 0x20e   :  { %4824 = vmatpush.bf16.msra.mxu1 %v7319_v1  ;;  %v2996_v42 = vpop.f32.mrf.mxu2  ;;  %v7895_v1 = vor.u32 %v8874_v7, %v7894_v55  ;;  %v8007_v20 = vor.u32 %v8902_v31, %v8006_v6  ;;  %v8890_v55 = vld [vmem:[#allocation8 + $0x66c] sm:$0xf0]  ;;  %v7831_v7 = vor.u32 %v8858_v39, %v7830_v38  ;;  %v7686_v46 = vld [vmem:[#allocation8 + $0x440] sm:$0xf]  ;;  %v2956_v62 = vadd.f32 %v9382_v40, %v2943_v35 }
 0x20f   :  { %4837 = vmatpush.bf16.msra.mxu2 %v7447_v2  ;;  %v7750_v2 = vld [vmem:[#allocation8 + $0x4c0] sm:$0xf]  ;;  %v9402_v10 = vpack.c.bf16 %v3248_v0, %v3248_v0  ;;  %v8938_v38 = vld [vmem:[#allocation8 + $0x7ec] sm:$0xf0] }
 0x210   :  { %v7751_v5 = vor.u32 %v8838_v59, %v7750_v2  ;;  %v7942_v28 = vld [vmem:[#allocation8 + $0x640] sm:$0xf]  ;;  %v8818_v2 = vld [vmem:[#allocation8 + $0x42c] sm:$0xf0]  ;;  %v2969_v31 = vadd.f32 %v9376_v17, %v2956_v62 }
 0x211   :  { %4850 = vmatpush.bf16.msra.mxu0 %v7575_v41  ;;  %4812 = vmatpush.bf16.msra.mxu3 %v7175_v18  ;;  %v9398_v41 = vpack.c.bf16 %v3246_v50, %v3246_v50  ;;  %v542_v18 = vperm.slane %v9407_v12, 5  ;;  %v7814_v50 = vld [vmem:[#allocation8 + $0x540] sm:$0xf]  ;;  %v7943_v6 = vor.u32 %v8886_v60, %v7942_v28  ;;  %v8934_v62 = vld [vmem:[#allocation8 + $0x7cc] sm:$0xf0] }
 0x212   :  { %4825 = vmatpush.bf16.msra.mxu1 %v7303_v19  ;;  %v7862_v19 = vld [vmem:[#allocation8 + $0x5a0] sm:$0xf]  ;;  %v7815_v0 = vor.u32 %v8854_v52, %v7814_v50  ;;  %v3022_v59 = vpop.f32.mrf.mxu1  ;;  %v3249_v61 = vmax.f32 %v2969_v31, 0.0  ;;  %v8772_v50 = vld [vmem:[#allocation8 + $0x2c4] sm:$0xf] }
 0x213   :  { %4838 = vmatpush.bf16.msra.mxu2 %v7431_v21  ;;  %v8866_v21 = vld [vmem:[#allocation8 + $0x5ac] sm:$0xf0]  ;;  %v2982_v45 = vadd.f32 %v9384_v43, %v542_v18  ;;  %v7798_v3 = vld [vmem:[#allocation8 + $0x520] sm:$0xf]  ;;  %v7496_v52 = vld [vmem:[#allocation8 + $0x2d0] sm:$0xf0] }
 0x214   :  { %v7863_v25 = vor.u32 %v8866_v21, %v7862_v19  ;;  %v7926_v40 = vld [vmem:[#allocation8 + $0x620] sm:$0xf]  ;;  %v8814_v19 = vld [vmem:[#allocation8 + $0x40c] sm:$0xf0]  ;;  %v7352_v28 = vld [vmem:[#allocation8 + $0x1b0] sm:$0xf0] }
 0x215   :  { %4851 = vmatpush.bf16.msra.mxu0 %v7559_v24  ;;  %4813 = vmatpush.bf16.msra.mxu3 %v7159_v29  ;;  %v8898_v24 = vld [vmem:[#allocation8 + $0x6ac] sm:$0xf0]  ;;  %v3033_v29 = vpop.f32.mrf.mxu0  ;;  %v2995_v37 = vadd.f32 %v9390_v16, %v2982_v45  ;;  %v7654_v18 = vld [vmem:[#allocation8 + $0x400] sm:$0xf]  ;;  %v7927_v45 = vor.u32 %v8882_v13, %v7926_v40  ;;  %v8700_v59 = vld [vmem:[#allocation8 + $0x84] sm:$0xf] }
 0x216   :  { %4826 = vmatpush.bf16.msra.mxu1 %v7287_v32  ;;  %v7991_v9 = vor.u32 %v8898_v24, %v7990_v23  ;;  %v7719_v32 = vor.u32 %v8830_v27, %v7718_v26  ;;  %v3046_v16 = vpop.f32.mrf.mxu2  ;;  %v7782_v21 = vld [vmem:[#allocation8 + $0x500] sm:$0xf]  ;;  %v8712_v23 = vld [vmem:[#allocation8 + $0xe4] sm:$0xf]  ;;  %v7256_v24 = vld [vmem:[#allocation8 + $0xf0] sm:$0xf0]  ;;  %v7655_v17 = vor.u32 %v8814_v19, %v7654_v18 }
 0x217   :  { %4839 = vmatpush.bf16.msra.mxu2 %v7415_v33  ;;  %v7974_v33 = vld [vmem:[#allocation8 + $0x680] sm:$0xf]  ;;  %v8744_v26 = vld [vmem:[#allocation8 + $0x1e4] sm:$0xf]  ;;  %v7384_v27 = vld [vmem:[#allocation8 + $0x1f0] sm:$0xf0] }
 0x218   :  { %v7975_v43 = vor.u32 %v8894_v34, %v7974_v33  ;;  %v7910_v51 = vld [vmem:[#allocation8 + $0x600] sm:$0xf]  ;;  %v7259_v33 = vor.u32 %v8712_v23, %v7256_v24  ;;  %v8708_v34 = vld [vmem:[#allocation8 + $0xc4] sm:$0xf]  ;;  %v8930_v31 = vld [vmem:[#allocation8 + $0x7ac] sm:$0xf0] }
 0x219   :  { %4852 = vmatpush.bf16.msra.mxu0 %v7543_v14  ;;  %4814 = vmatpush.bf16.msra.mxu3 %v7143_v44  ;;  %v8826_v14 = vld [vmem:[#allocation8 + $0x46c] sm:$0xf0]  ;;  %v7958_v44 = vld [vmem:[#allocation8 + $0x660] sm:$0xf]  ;;  %v8732_v13 = vld [vmem:[#allocation8 + $0x184] sm:$0xf] }
 0x21a   :  { %4827 = vmatpush.bf16.msra.mxu1 %v7271_v47  ;;  %v7703_v42 = vor.u32 %v8826_v14, %v7702_v56  ;;  %v8822_v47 = vld [vmem:[#allocation8 + $0x44c] sm:$0xf0]  ;;  %v7512_v56 = vld [vmem:[#allocation8 + $0x2f0] sm:$0xf0]  ;;  %v7387_v14 = vor.u32 %v8744_v26, %v7384_v27  ;;  %v8102_v27 = vld [vmem:[#allocation8 + $0x780] sm:$0xf] }
 0x21b   :  { %4840 = vmatpush.bf16.msra.mxu2 %v7399_v49  ;;  %v3008_v49 = vadd.f32 %v3007_v30, %v2995_v37  ;;  %v7687_v63 = vor.u32 %v8822_v47, %v7686_v46  ;;  %v8150_v37 = vld [vmem:[#allocation8 + $0x7e0] sm:$0xf]  ;;  %v8740_v30 = vld [vmem:[#allocation8 + $0x1c4] sm:$0xf]  ;;  %v9417_v46 = vpack.c.bf16 %v3249_v61, %v3249_v61  ;;  %v7464_v23 = vld [vmem:[#allocation8 + $0x290] sm:$0xf0] }
 0x21c   :  { %4815 = vmatmul.bf16.vlgmr.msra.gmra.mxu3 %v9396_v4  ;;  %v7192_v26 = vld [vmem:[#allocation8 + $0x70] sm:$0xf0]  ;;  %v8728_v61 = vld [vmem:[#allocation8 + $0x164] sm:$0xf] }
 0x21d   :  { %4853 = vmatpush.bf16.msra.mxu0 %v7527_v54  ;;  %4859 = vmatpush.bf16.msrb.mxu3 %v7767_v58  ;;  %v3035_v54 = vpop.f32.mrf.mxu0  ;;  %v7959_v58 = vor.u32 %v8890_v55, %v7958_v44  ;;  %v3021_v53 = vadd.f32 %v3020_v57, %v3008_v49  ;;  %v7240_v57 = vld [vmem:[#allocation8 + $0xd0] sm:$0xf0]  ;;  %v8704_v55 = vld [vmem:[#allocation8 + $0xa4] sm:$0xf] }
 0x21e   :  { %4872 = vmatpush.bf16.msrb.mxu1 %v7895_v1  ;;  %4841 = vmatmul.bf16.vlgmr.msra.gmra.mxu2 %v9400_v8  ;;  %v7670_v1 = vld [vmem:[#allocation8 + $0x420] sm:$0xf]  ;;  %v7243_v47 = vor.u32 %v8708_v34, %v7240_v57  ;;  %v7224_v49 = vld [vmem:[#allocation8 + $0xb0] sm:$0xf0]  ;;  %v8760_v34 = vld [vmem:[#allocation8 + $0x264] sm:$0xf] }
 0x21f   :  { %4828 = vmatmul.bf16.vlgmr.msra.gmra.mxu1 %v9398_v41  ;;  %4885 = vmatpush.bf16.msrb.mxu2 %v8023_v48  ;;  %v8850_v48 = vld [vmem:[#allocation8 + $0x52c] sm:$0xf0] }
 0x220   :  { %4854 = vmatmul.bf16.vlgmr.msra.gmra.mxu0 %v9402_v10  ;;  %v7799_v15 = vor.u32 %v8850_v48, %v7798_v3  ;;  %v7480_v3 = vld [vmem:[#allocation8 + $0x2b0] sm:$0xf0]  ;;  %v8922_v57 = vld [vmem:[#allocation8 + $0x76c] sm:$0xf0] }
 0x221   :  { %4860 = vmatpush.bf16.msrb.mxu3 %v7751_v5  ;;  %v3009_v5 = vpop.f32.mrf.mxu3 }
 0x222   :  { %4873 = vmatpush.bf16.msrb.mxu1 %v7879_v11  ;;  %v7671_v11 = vor.u32 %v8818_v2, %v7670_v1  ;;  %v7499_v1 = vor.u32 %v8772_v50, %v7496_v52  ;;  %v7227_v2 = vor.u32 %v8704_v55, %v7224_v49  ;;  %v7208_v5 = vld [vmem:[#allocation8 + $0x90] sm:$0xf0]  ;;  %v8688_v55 = vld [vmem:[#allocation8 + $0x24] sm:$0xf] }
 0x223   :  { %4886 = vmatpush.bf16.msrb.mxu2 %v8007_v20  ;;  %v3034_v20 = vadd.f32 %v3033_v29, %v3021_v53  ;;  %v8768_v53 = vld [vmem:[#allocation8 + $0x2a4] sm:$0xf]  ;;  %v7160_v50 = vld [vmem:[#allocation8 + $0x30] sm:$0xf0] }
 0x224   :  { %v7483_v19 = vor.u32 %v8768_v53, %v7480_v3  ;;  %v7416_v53 = vld [vmem:[#allocation8 + $0x230] sm:$0xf0] }
 0x225   :  { %4861 = vmatpush.bf16.msrb.mxu3 %v7735_v22  ;;  %v8846_v22 = vld [vmem:[#allocation8 + $0x50c] sm:$0xf0]  ;;  %v3047_v29 = vadd.f32 %v3046_v16, %v3034_v20  ;;  %v8696_v20 = vld [vmem:[#allocation8 + $0x64] sm:$0xf] }
 0x226   :  { %4874 = vmatpush.bf16.msrb.mxu1 %v7863_v25  ;;  %v3048_v25 = vpop.f32.mrf.mxu2 }
 0x227   :  { %4887 = vmatpush.bf16.msrb.mxu2 %v7991_v9  ;;  %v8878_v9 = vld [vmem:[#allocation8 + $0x60c] sm:$0xf0] }
 0x228   :  { %v7911_v35 = vor.u32 %v8878_v9, %v7910_v51  ;;  %v9425_v25 = vpop.f32.mrf.mxu1 }
 0x229   :  { %4862 = vmatpush.bf16.msrb.mxu3 %v7719_v32  ;;  %v7783_v32 = vor.u32 %v8846_v22, %v7782_v21  ;;  %v3059_v39 = vpop.f32.mrf.mxu3  ;;  %v7211_v21 = vor.u32 %v8700_v59, %v7208_v5  ;;  %v8764_v22 = vld [vmem:[#allocation8 + $0x284] sm:$0xf]  ;;  %v8054_v5 = vld [vmem:[#allocation8 + $0x720] sm:$0xf] }
 0x22a   :  { %4875 = vmatpush.bf16.msrb.mxu1 %v7847_v36  ;;  %v8776_v36 = vld [vmem:[#allocation8 + $0x2e4] sm:$0xf]  ;;  %v3060_v44 = vadd.f32 %v3059_v39, %v3047_v29  ;;  %v9423_v40 = vpop.f32.mrf.mxu0  ;;  %v7467_v9 = vor.u32 %v8764_v22, %v7464_v23  ;;  %v7176_v29 = vld [vmem:[#allocation8 + $0x50] sm:$0xf0] }
 0x22b   :  { %4888 = vmatpush.bf16.msrb.mxu2 %v7975_v43  ;;  %v7368_v43 = vld [vmem:[#allocation8 + $0x1d0] sm:$0xf0]  ;;  %v8724_v39 = vld [vmem:[#allocation8 + $0x144] sm:$0xf] }
 0x22c   :  { %v3250_v16 = vmax.f32 %v3060_v44, 0.0  ;;  %v7371_v54 = vor.u32 %v8740_v30, %v7368_v43  ;;  %v7304_v30 = vld [vmem:[#allocation8 + $0x150] sm:$0xf0]  ;;  %v8752_v59 = vld [vmem:[#allocation8 + $0x224] sm:$0xf] }
 0x22d   :  { %4863 = vmatpush.bf16.msrb.mxu3 %v7703_v42  ;;  %v8151_v42 = vor.u32 %v8938_v38, %v8150_v37  ;;  %v7307_v49 = vor.u32 %v8724_v39, %v7304_v30  ;;  %v7419_v23 = vor.u32 %v8752_v59, %v7416_v53  ;;  %v7848_v59 = vld [vmem:[#allocation8 + $0x590] sm:$0xf0] }
 0x22e   :  { %4876 = vmatpush.bf16.msrb.mxu1 %v7831_v7  ;;  %v7515_v7 = vor.u32 %v8776_v36, %v7512_v56  ;;  %v7448_v36 = vld [vmem:[#allocation8 + $0x270] sm:$0xf0] }
 0x22f   :  { %4889 = vmatpush.bf16.msrb.mxu2 %v7959_v58  ;;  %4898 = vmatpush.bf16.msrb.mxu0 %v8151_v42  ;;  %v8134_v58 = vld [vmem:[#allocation8 + $0x7c0] sm:$0xf]  ;;  %v7451_v42 = vor.u32 %v8760_v34, %v7448_v36  ;;  %v7752_v34 = vld [vmem:[#allocation8 + $0x4d0] sm:$0xf0] }
 0x230   :  { %v8135_v60 = vor.u32 %v8934_v62, %v8134_v58  ;;  %v3074_v52 = vpop.f32.mrf.mxu1  ;;  %v8720_v58 = vld [vmem:[#allocation8 + $0x124] sm:$0xf]  ;;  %v7288_v62 = vld [vmem:[#allocation8 + $0x130] sm:$0xf0] }
 0x231   :  { %4864 = vmatpush.bf16.msrb.mxu3 %v7687_v63  ;;  %v8736_v63 = vld [vmem:[#allocation8 + $0x1a4] sm:$0xf]  ;;  %v7291_v3 = vor.u32 %v8720_v58, %v7288_v62  ;;  %v7864_v52 = vld [vmem:[#allocation8 + $0x5b0] sm:$0xf0] }
 0x232   :  { %4877 = vmatpush.bf16.msrb.mxu1 %v7815_v0  ;;  %v9420_v0 = vpack.c.bf16 %v3250_v16, %v3250_v16  ;;  %v7355_v48 = vor.u32 %v8736_v63, %v7352_v28  ;;  %v3100_v38 = vpop.f32.mrf.mxu0  ;;  %v8070_v16 = vld [vmem:[#allocation8 + $0x740] sm:$0xf]  ;;  %v8684_v28 = vld [vmem:[#allocation8 + $0x4] sm:$0xf] }
 0x233   :  { %4890 = vmatpush.bf16.msrb.mxu2 %v7943_v6  ;;  %4899 = vmatpush.bf16.msrb.mxu0 %v8135_v60  ;;  %v8118_v6 = vld [vmem:[#allocation8 + $0x7a0] sm:$0xf]  ;;  %v7640_v38 = vld [vmem:[#allocation8 + $0x3f0] sm:$0xf0]  ;;  %v8828_v58 = vld [vmem:[#allocation8 + $0x484] sm:$0xf] }
 0x234   :  { %v8119_v18 = vor.u32 %v8930_v31, %v8118_v6  ;;  %v8914_v6 = vld [vmem:[#allocation8 + $0x72c] sm:$0xf0]  ;;  %v7272_v31 = vld [vmem:[#allocation8 + $0x110] sm:$0xf0] }
 0x235   :  { %4865 = vmatpush.bf16.msrb.mxu3 %v7671_v11  ;;  %v3061_v11 = vpop.f32.mrf.mxu3 }
 0x236   :  { %4878 = vmatpush.bf16.msrb.mxu1 %v7799_v15  ;;  %v7336_v15 = vld [vmem:[#allocation8 + $0x190] sm:$0xf0]  ;;  %v8840_v11 = vld [vmem:[#allocation8 + $0x4e4] sm:$0xf] }
 0x237   :  { %4891 = vmatpush.bf16.msrb.mxu2 %v7927_v45  ;;  %v7339_v24 = vor.u32 %v8732_v13, %v7336_v15  ;;  %4900 = vmatpush.bf16.msrb.mxu0 %v8119_v18  ;;  %v8926_v45 = vld [vmem:[#allocation8 + $0x78c] sm:$0xf0]  ;;  %v7768_v13 = vld [vmem:[#allocation8 + $0x4f0] sm:$0xf0] }
 0x238   :  { %v8103_v51 = vor.u32 %v8926_v45, %v8102_v27  ;;  %v7400_v27 = vld [vmem:[#allocation8 + $0x210] sm:$0xf0]  ;;  %v543_v45 = vperm.slane %v9407_v12, 6 }
 0x239   :  { %4866 = vmatpush.bf16.msrb.mxu3 %v7655_v17  ;;  %v7320_v17 = vld [vmem:[#allocation8 + $0x170] sm:$0xf0] }
 0x23a   :  { %4879 = vmatpush.bf16.msrb.mxu1 %v7783_v32  ;;  %v7195_v32 = vor.u32 %v8696_v20, %v7192_v26  ;;  %v7323_v56 = vor.u32 %v8728_v61, %v7320_v17  ;;  %v9431_v18 = vpop.f32.mrf.mxu0  ;;  %v7896_v20 = vld [vmem:[#allocation8 + $0x5f0] sm:$0xf0]  ;;  %v8748_v26 = vld [vmem:[#allocation8 + $0x204] sm:$0xf]  ;;  %v7771_v17 = vor.u32 %v8840_v11, %v7768_v13  ;;  %v3073_v30 = vadd.f32 %v9425_v25, %v543_v45 }
 0x23b   :  { %4892 = vmatpush.bf16.msrb.mxu2 %v7911_v35  ;;  %4901 = vmatpush.bf16.msrb.mxu0 %v8103_v51  ;;  %v9429_v35 = vpop.f32.mrf.mxu2  ;;  %v8038_v51 = vld [vmem:[#allocation8 + $0x700] sm:$0xf]  ;;  %v7592_v11 = vld [vmem:[#allocation8 + $0x390] sm:$0xf0]  ;;  %v8856_v13 = vld [vmem:[#allocation8 + $0x564] sm:$0xf] }
 0x23c   :  { %4867 = vmatmul.bf16.vlgmr.msrb.gmra.mxu3 %v9417_v46 }
 0x23d   :  { %4911 = vmatpush.bf16.msra.mxu3 %v7259_v33  ;;  %4880 = vmatmul.bf16.vlgmr.msrb.gmra.mxu1 %v9420_v0  ;;  %v8692_v33 = vld [vmem:[#allocation8 + $0x44] sm:$0xf]  ;;  %v9427_v37 = vpop.f32.mrf.mxu3 }
 0x23e   :  { %4924 = vmatpush.bf16.msra.mxu1 %v7387_v14  ;;  %v8086_v14 = vld [vmem:[#allocation8 + $0x760] sm:$0xf]  ;;  %v7179_v44 = vor.u32 %v8692_v33, %v7176_v29  ;;  %v8836_v33 = vld [vmem:[#allocation8 + $0x4c4] sm:$0xf] }
 0x23f   :  { %4937 = vmatpush.bf16.msra.mxu2 %v7515_v7  ;;  %v8087_v43 = vor.u32 %v8922_v57, %v8086_v14  ;;  %v8756_v7 = vld [vmem:[#allocation8 + $0x244] sm:$0xf]  ;;  %v7880_v14 = vld [vmem:[#allocation8 + $0x5d0] sm:$0xf0]  ;;  %v7403_v57 = vor.u32 %v8748_v26, %v7400_v27 }
 0x240   :  { %v8868_v29 = vld [vmem:[#allocation8 + $0x5c4] sm:$0xf]  ;;  %v7576_v27 = vld [vmem:[#allocation8 + $0x370] sm:$0xf0] }
 0x241   :  { %4912 = vmatpush.bf16.msra.mxu3 %v7243_v47  ;;  %v7432_v47 = vld [vmem:[#allocation8 + $0x250] sm:$0xf0]  ;;  %4902 = vmatpush.bf16.msrb.mxu0 %v8087_v43  ;;  %v7755_v43 = vor.u32 %v8836_v33, %v7752_v34  ;;  %v8792_v26 = vld [vmem:[#allocation8 + $0x364] sm:$0xf] }
 0x242   :  { %4925 = vmatpush.bf16.msra.mxu1 %v7371_v54  ;;  %v8918_v54 = vld [vmem:[#allocation8 + $0x74c] sm:$0xf0]  ;;  %v7435_v60 = vor.u32 %v8756_v7, %v7432_v47  ;;  %v3152_v7 = vpop.f32.mrf.mxu0  ;;  %v8804_v47 = vld [vmem:[#allocation8 + $0x3c4] sm:$0xf] }
 0x243   :  { %4938 = vmatpush.bf16.msra.mxu2 %v7499_v1  ;;  %v8071_v63 = vor.u32 %v8918_v54, %v8070_v16  ;;  %v7163_v1 = vor.u32 %v8688_v55, %v7160_v50  ;;  %v3113_v22 = vpop.f32.mrf.mxu2  ;;  %v7736_v55 = vld [vmem:[#allocation8 + $0x4b0] sm:$0xf0]  ;;  %v8864_v50 = vld [vmem:[#allocation8 + $0x5a4] sm:$0xf]  ;;  %v3086_v16 = vadd.f32 %v9427_v37, %v3073_v30 }
 0x244   :  { %v7867_v62 = vor.u32 %v8864_v50, %v7864_v52  ;;  %v7800_v30 = vld [vmem:[#allocation8 + $0x530] sm:$0xf0]  ;;  %v8844_v52 = vld [vmem:[#allocation8 + $0x504] sm:$0xf] }
 0x245   :  { %4913 = vmatpush.bf16.msra.mxu3 %v7227_v2  ;;  %v7144_v2 = vld [vmem:[#allocation8 + $0x10] sm:$0xf0]  ;;  %4903 = vmatpush.bf16.msrb.mxu0 %v8071_v63  ;;  %v3087_v15 = vpop.f32.mrf.mxu3 }
 0x246   :  { %4926 = vmatpush.bf16.msra.mxu1 %v7355_v48  ;;  %v8716_v48 = vld [vmem:[#allocation8 + $0x104] sm:$0xf]  ;;  %v7720_v63 = vld [vmem:[#allocation8 + $0x490] sm:$0xf0] }
 0x247   :  { %4939 = vmatpush.bf16.msra.mxu2 %v7483_v19  ;;  %v8055_v19 = vor.u32 %v8914_v6, %v8054_v5  ;;  %v7275_v61 = vor.u32 %v8716_v48, %v7272_v31  ;;  %v7723_v48 = vor.u32 %v8828_v58, %v7720_v63  ;;  %v8824_v5 = vld [vmem:[#allocation8 + $0x464] sm:$0xf]  ;;  %v7704_v6 = vld [vmem:[#allocation8 + $0x470] sm:$0xf0] }
 0x248   :  { %v8796_v31 = vld [vmem:[#allocation8 + $0x384] sm:$0xf]  ;;  %v7832_v15 = vld [vmem:[#allocation8 + $0x570] sm:$0xf0]  ;;  %v7707_v22 = vor.u32 %v8824_v5, %v7704_v6 }
 0x249   :  { %4914 = vmatpush.bf16.msra.mxu3 %v7211_v21  ;;  %v8872_v21 = vld [vmem:[#allocation8 + $0x5e4] sm:$0xf]  ;;  %4904 = vmatpush.bf16.msrb.mxu0 %v8055_v19  ;;  %v7656_v50 = vld [vmem:[#allocation8 + $0x410] sm:$0xf0] }
 0x24a   :  { %4927 = vmatpush.bf16.msra.mxu1 %v7339_v24  ;;  %v7147_v24 = vor.u32 %v8684_v28, %v7144_v2  ;;  %v8800_v28 = vld [vmem:[#allocation8 + $0x3a4] sm:$0xf] }
 0x24b   :  { %4940 = vmatpush.bf16.msra.mxu2 %v7467_v9  ;;  %v8910_v9 = vld [vmem:[#allocation8 + $0x70c] sm:$0xf0]  ;;  %v8860_v2 = vld [vmem:[#allocation8 + $0x584] sm:$0xf] }
 0x24c   :  { %v8039_v36 = vor.u32 %v8910_v9, %v8038_v51  ;;  %v7851_v37 = vor.u32 %v8860_v2, %v7848_v59  ;;  %v8784_v58 = vld [vmem:[#allocation8 + $0x324] sm:$0xf]  ;;  %v8008_v59 = vld [vmem:[#allocation8 + $0x6d0] sm:$0xf0] }
 0x24d   :  { %4915 = vmatpush.bf16.msra.mxu3 %v7195_v32  ;;  %v7899_v32 = vor.u32 %v8872_v21, %v7896_v20  ;;  %v7595_v21 = vor.u32 %v8796_v31, %v7592_v11  ;;  %v8900_v2 = vld [vmem:[#allocation8 + $0x6c4] sm:$0xf]  ;;  %v7246_v31 = vld [vmem:[#allocation8 + $0xc8] sm:$0xf] }
 0x24e   :  { %4928 = vmatpush.bf16.msra.mxu1 %v7323_v56  ;;  %v8808_v56 = vld [vmem:[#allocation8 + $0x3e4] sm:$0xf]  ;;  %4905 = vmatpush.bf16.msrb.mxu0 %v8039_v36  ;;  %v9439_v19 = vpop.f32.mrf.mxu0 }
 0x24f   :  { %4941 = vmatpush.bf16.msra.mxu2 %v7451_v42  ;;  %v7643_v39 = vor.u32 %v8808_v56, %v7640_v38  ;;  %v8832_v42 = vld [vmem:[#allocation8 + $0x4a4] sm:$0xf]  ;;  %v7560_v38 = vld [vmem:[#allocation8 + $0x350] sm:$0xf0] }
 0x250   :  { %v7739_v54 = vor.u32 %v8832_v42, %v7736_v55  ;;  %v8816_v36 = vld [vmem:[#allocation8 + $0x424] sm:$0xf]  ;;  %v8024_v42 = vld [vmem:[#allocation8 + $0x6f0] sm:$0xf0] }
 0x251   :  { %4916 = vmatpush.bf16.msra.mxu3 %v7179_v44  ;;  %v7883_v44 = vor.u32 %v8868_v29, %v7880_v14  ;;  %v8848_v14 = vld [vmem:[#allocation8 + $0x524] sm:$0xf] }
 0x252   :  { %4929 = vmatpush.bf16.msra.mxu1 %v7307_v49  ;;  %v7624_v49 = vld [vmem:[#allocation8 + $0x3d0] sm:$0xf0]  ;;  %4950 = vmatpush.bf16.msra.mxu0 %v7643_v39  ;;  %v8812_v55 = vld [vmem:[#allocation8 + $0x404] sm:$0xf] }
 0x253   :  { %4942 = vmatpush.bf16.msra.mxu2 %v7435_v60  ;;  %v7627_v25 = vor.u32 %v8804_v47, %v7624_v49  ;;  %v7608_v60 = vld [vmem:[#allocation8 + $0x3b0] sm:$0xf0]  ;;  %v3137_v9 = vpop.f32.mrf.mxu3  ;;  %v8780_v11 = vld [vmem:[#allocation8 + $0x304] sm:$0xf] }
 0x254   :  { %v7611_v53 = vor.u32 %v8800_v28, %v7608_v60  ;;  %v8715_v28 = vld [vmem:[#allocation8 + $0xf4] sm:$0xf0]  ;;  %v7390_v60 = vld [vmem:[#allocation8 + $0x1e8] sm:$0xf] }
 0x255   :  { %4917 = vmatpush.bf16.msra.mxu3 %v7163_v1  ;;  %v3124_v1 = vpop.f32.mrf.mxu1  ;;  %v9442_v56 = vpop.f32.mrf.mxu2 }
 0x256   :  { %4930 = vmatpush.bf16.msra.mxu1 %v7291_v3  ;;  %4951 = vmatpush.bf16.msra.mxu0 %v7627_v25  ;;  %v3099_v3 = vadd.f32 %v9423_v40, %v3086_v16  ;;  %v7835_v40 = vor.u32 %v8856_v13, %v7832_v15  ;;  %v7803_v25 = vor.u32 %v8848_v14, %v7800_v30  ;;  %v8735_v30 = vld [vmem:[#allocation8 + $0x194] sm:$0xf0] }
 0x257   :  { %4943 = vmatpush.bf16.msra.mxu2 %v7419_v23  ;;  %v8820_v23 = vld [vmem:[#allocation8 + $0x444] sm:$0xf]  ;;  %v8011_v15 = vor.u32 %v8900_v2, %v8008_v59  ;;  %v7310_v2 = vld [vmem:[#allocation8 + $0x148] sm:$0xf]  ;;  %v8727_v59 = vld [vmem:[#allocation8 + $0x154] sm:$0xf0] }
 0x258   :  { %v3112_v20 = vadd.f32 %v9429_v35, %v3099_v3  ;;  %v7672_v35 = vld [vmem:[#allocation8 + $0x430] sm:$0xf0] }
 0x259   :  { %4918 = vmatpush.bf16.msra.mxu3 %v7147_v24  ;;  %v7688_v24 = vld [vmem:[#allocation8 + $0x450] sm:$0xf0]  ;;  %v7675_v49 = vor.u32 %v8816_v36, %v7672_v35  ;;  %v544_v36 = vperm.slane %v9407_v12, 7 }
 0x25a   :  { %4931 = vmatpush.bf16.msra.mxu1 %v7275_v61  ;;  %4952 = vmatpush.bf16.msra.mxu0 %v7611_v53  ;;  %v3125_v45 = vadd.f32 %v3124_v1, %v3112_v20  ;;  %v8852_v61 = vld [vmem:[#allocation8 + $0x544] sm:$0xf]  ;;  %v7691_v34 = vor.u32 %v8820_v23, %v7688_v24  ;;  %v8747_v1 = vld [vmem:[#allocation8 + $0x1f4] sm:$0xf0]  ;;  %v7374_v20 = vld [vmem:[#allocation8 + $0x1c8] sm:$0xf] }
 0x25b   :  { %4944 = vmatpush.bf16.msra.mxu2 %v7403_v57  ;;  %v8788_v57 = vld [vmem:[#allocation8 + $0x344] sm:$0xf]  ;;  %v3139_v53 = vpop.f32.mrf.mxu3  ;;  %v7391_v13 = vor.u32 %v8747_v1, %v7390_v60  ;;  %v8743_v23 = vld [vmem:[#allocation8 + $0x1d4] sm:$0xf0]  ;;  %v7992_v24 = vld [vmem:[#allocation8 + $0x6b0] sm:$0xf0] }
 0x25c   :  { %4919 = vmatmul.bf16.vlgmr.msra.gmra.mxu3 %v9396_v4  ;;  %v3138_v33 = vadd.f32 %v3137_v9, %v3125_v45  ;;  %v7563_v7 = vor.u32 %v8788_v57, %v7560_v38  ;;  %v7375_v45 = vor.u32 %v8743_v23, %v7374_v20  ;;  %v7358_v9 = vld [vmem:[#allocation8 + $0x1a8] sm:$0xf]  ;;  %v8703_v38 = vld [vmem:[#allocation8 + $0x94] sm:$0xf0]  ;;  %v8880_v53 = vld [vmem:[#allocation8 + $0x624] sm:$0xf] }
 0x25d   :  { %4963 = vmatpush.bf16.msrb.mxu3 %v7771_v17  ;;  %4932 = vmatmul.bf16.vlgmr.msra.gmra.mxu1 %v9398_v41  ;;  %v7816_v17 = vld [vmem:[#allocation8 + $0x550] sm:$0xf0]  ;;  %v3126_v51 = vpop.f32.mrf.mxu1  ;;  %v3165_v5 = vpop.f32.mrf.mxu2  ;;  %v7214_v57 = vld [vmem:[#allocation8 + $0x88] sm:$0xf]  ;;  %v8695_v1 = vld [vmem:[#allocation8 + $0x54] sm:$0xf0] }
 0x25e   :  { %4976 = vmatpush.bf16.msrb.mxu1 %v7899_v32  ;;  %4953 = vmatpush.bf16.msra.mxu0 %v7595_v21  ;;  %v7579_v32 = vor.u32 %v8792_v26, %v7576_v27  ;;  %v7819_v29 = vor.u32 %v8852_v61, %v7816_v17  ;;  %v3151_v39 = vadd.f32 %v9431_v18, %v3138_v33  ;;  %v7262_v18 = vld [vmem:[#allocation8 + $0xe8] sm:$0xf]  ;;  %v8711_v21 = vld [vmem:[#allocation8 + $0xd4] sm:$0xf0]  ;;  %v8892_v33 = vld [vmem:[#allocation8 + $0x684] sm:$0xf] }
 0x25f   :  { %v7263_v6 = vor.u32 %v8715_v28, %v7262_v18  ;;  %v7247_v27 = vor.u32 %v8711_v21, %v7246_v31  ;;  %v7230_v17 = vld [vmem:[#allocation8 + $0xa8] sm:$0xf]  ;;  %v8707_v51 = vld [vmem:[#allocation8 + $0xb4] sm:$0xf0]  ;;  %v8876_v23 = vld [vmem:[#allocation8 + $0x604] sm:$0xf] }
 0x260   :  { %v3251_v47 = vmax.f32 %v3151_v39, 0.0  ;;  %v7231_v35 = vor.u32 %v8707_v51, %v7230_v17  ;;  %v7342_v39 = vld [vmem:[#allocation8 + $0x188] sm:$0xf]  ;;  %v8691_v21 = vld [vmem:[#allocation8 + $0x34] sm:$0xf0] }
 0x261   :  { %4964 = vmatpush.bf16.msrb.mxu3 %v7755_v43  ;;  %v8904_v43 = vld [vmem:[#allocation8 + $0x6e4] sm:$0xf]  ;;  %v7343_v12 = vor.u32 %v8735_v30, %v7342_v39  ;;  %v7182_v60 = vld [vmem:[#allocation8 + $0x48] sm:$0xf]  ;;  %v8875_v39 = vld [vmem:[#allocation8 + $0x5f4] sm:$0xf0] }
 0x262   :  { %4977 = vmatpush.bf16.msrb.mxu1 %v7883_v44  ;;  %v3178_v44 = vpop.f32.mrf.mxu0  ;;  %4954 = vmatpush.bf16.msra.mxu0 %v7579_v32  ;;  %v8027_v16 = vor.u32 %v8904_v43, %v8024_v42  ;;  %v9445_v63 = vpack.c.bf16 %v3251_v47, %v3251_v47  ;;  %v8739_v32 = vld [vmem:[#allocation8 + $0x1b4] sm:$0xf0]  ;;  %v8888_v43 = vld [vmem:[#allocation8 + $0x664] sm:$0xf]  ;;  %v7960_v42 = vld [vmem:[#allocation8 + $0x670] sm:$0xf0] }
 0x263   :  { %v3164_v44 = vadd.f32 %v9442_v56, %v544_v36  ;;  %v7963_v47 = vor.u32 %v8888_v43, %v7960_v42  ;;  %v7294_v20 = vld [vmem:[#allocation8 + $0x128] sm:$0xf]  ;;  %v8719_v36 = vld [vmem:[#allocation8 + $0x114] sm:$0xf0] }
 0x264   :  { %4893 = vmatmul.bf16.vlgmr.msrb.gmra.mxu2 %v9445_v63  ;;  %v7150_v17 = vld [vmem:[#allocation8 + $0x8] sm:$0xf]  ;;  %v8775_v43 = vld [vmem:[#allocation8 + $0x2d4] sm:$0xf0] }
 0x265   :  { %4965 = vmatpush.bf16.msrb.mxu3 %v7739_v54  ;;  %v7784_v54 = vld [vmem:[#allocation8 + $0x510] sm:$0xf0]  ;;  %4989 = vmatpush.bf16.msrb.mxu2 %v8027_v16  ;;  %v8884_v16 = vld [vmem:[#allocation8 + $0x644] sm:$0xf]  ;;  %v7502_v30 = vld [vmem:[#allocation8 + $0x2c8] sm:$0xf] }
 0x266   :  { %4978 = vmatpush.bf16.msrb.mxu1 %v7867_v62  ;;  %v7544_v62 = vld [vmem:[#allocation8 + $0x330] sm:$0xf0]  ;;  %4955 = vmatpush.bf16.msra.mxu0 %v7563_v7  ;;  %v7215_v7 = vor.u32 %v8703_v38, %v7214_v57  ;;  %v7902_v57 = vld [vmem:[#allocation8 + $0x5e8] sm:$0xf] }
 0x267   :  { %v7547_v3 = vor.u32 %v8784_v58, %v7544_v62  ;;  %v3177_v58 = vadd.f32 %v9439_v19, %v3164_v44  ;;  %v7183_v19 = vor.u32 %v8695_v1, %v7182_v60 }
 0x269   :  { %4966 = vmatpush.bf16.msrb.mxu3 %v7723_v48  ;;  %v7659_v48 = vor.u32 %v8812_v55, %v7656_v50  ;;  %4990 = vmatpush.bf16.msrb.mxu2 %v8011_v15  ;;  %v8699_v50 = vld [vmem:[#allocation8 + $0x74] sm:$0xf0]  ;;  %v7166_v15 = vld [vmem:[#allocation8 + $0x28] sm:$0xf] }
 0x26a   :  { %4979 = vmatpush.bf16.msrb.mxu1 %v7851_v37  ;;  %v7787_v37 = vor.u32 %v8844_v52, %v7784_v54  ;;  %4956 = vmatpush.bf16.msra.mxu0 %v7547_v3  ;;  %v7326_v52 = vld [vmem:[#allocation8 + $0x168] sm:$0xf]  ;;  %v7944_v54 = vld [vmem:[#allocation8 + $0x650] sm:$0xf0] }
 0x26b   :  { %v7947_v28 = vor.u32 %v8884_v16, %v7944_v54  ;;  %v7928_v3 = vld [vmem:[#allocation8 + $0x630] sm:$0xf0]  ;;  %v7903_v16 = vor.u32 %v8875_v39, %v7902_v57  ;;  %v7503_v54 = vor.u32 %v8775_v43, %v7502_v30  ;;  %v9460_v57 = vld [vmem:[#allocation10] sm:$0xf]  ;;  %v7438_v39 = vld [vmem:[#allocation8 + $0x248] sm:$0xf] }
 0x26c   :  { %v8759_v30 = vld [vmem:[#allocation8 + $0x254] sm:$0xf0] }
 0x26d   :  { %4967 = vmatpush.bf16.msrb.mxu3 %v7707_v22  ;;  %v7528_v22 = vld [vmem:[#allocation8 + $0x310] sm:$0xf0] }
 0x26e   :  { %4980 = vmatpush.bf16.msrb.mxu1 %v7835_v40  ;;  %v8896_v40 = vld [vmem:[#allocation8 + $0x6a4] sm:$0xf]  ;;  %v7531_v26 = vor.u32 %v8780_v11, %v7528_v22  ;;  %v7311_v11 = vor.u32 %v8727_v59, %v7310_v2  ;;  %v8723_v22 = vld [vmem:[#allocation8 + $0x134] sm:$0xf0] }
 0x26f   :  { %v7995_v61 = vor.u32 %v8896_v40, %v7992_v24  ;;  %v7912_v40 = vld [vmem:[#allocation8 + $0x610] sm:$0xf0]  ;;  %v8932_v59 = vld [vmem:[#allocation8 + $0x7c4] sm:$0xf] }
 0x270   :  { %4957 = vmatpush.bf16.msra.mxu0 %v7531_v26 }
 0x271   :  { %4968 = vmatpush.bf16.msrb.mxu3 %v7691_v34  ;;  %v7976_v34 = vld [vmem:[#allocation8 + $0x690] sm:$0xf0]  ;;  %4991 = vmatpush.bf16.msrb.mxu2 %v7995_v61  ;;  %v7167_v61 = vor.u32 %v8691_v21, %v7166_v15 }
 0x272   :  { %4981 = vmatpush.bf16.msrb.mxu1 %v7819_v29  ;;  %v7359_v29 = vor.u32 %v8739_v32, %v7358_v9  ;;  %v7979_v14 = vor.u32 %v8892_v33, %v7976_v34  ;;  %v7295_v9 = vor.u32 %v8723_v22, %v7294_v20  ;;  %v7915_v32 = vor.u32 %v8876_v23, %v7912_v40  ;;  %v8687_v33 = vld [vmem:[#allocation8 + $0x14] sm:$0xf0]  ;;  %v7278_v34 = vld [vmem:[#allocation8 + $0x108] sm:$0xf]  ;;  %v8928_v20 = vld [vmem:[#allocation8 + $0x7a4] sm:$0xf] }
 0x273   :  { %v8120_v22 = vld [vmem:[#allocation8 + $0x7b0] sm:$0xf0] }
 0x274   :  { %4945 = vmatmul.bf16.vlgmr.msra.gmra.mxu2 %v9400_v8 }
 0x275   :  { %4969 = vmatpush.bf16.msrb.mxu3 %v7675_v49  ;;  %v3189_v55 = vpop.f32.mrf.mxu1  ;;  %4992 = vmatpush.bf16.msrb.mxu2 %v7979_v14  ;;  %v7198_v49 = vld [vmem:[#allocation8 + $0x68] sm:$0xf]  ;;  %v8843_v14 = vld [vmem:[#allocation8 + $0x4f4] sm:$0xf0] }
 0x276   :  { %4982 = vmatpush.bf16.msrb.mxu1 %v7803_v25  ;;  %v8731_v25 = vld [vmem:[#allocation8 + $0x174] sm:$0xf0]  ;;  %v7199_v56 = vor.u32 %v8699_v50, %v7198_v49  ;;  %v8936_v49 = vld [vmem:[#allocation8 + $0x7e4] sm:$0xf]  ;;  %v8152_v50 = vld [vmem:[#allocation8 + $0x7f0] sm:$0xf0] }
 0x277   :  { %v7327_v18 = vor.u32 %v8731_v25, %v7326_v52  ;;  %v7758_v52 = vld [vmem:[#allocation8 + $0x4c8] sm:$0xf]  ;;  %v8155_v1 = vor.u32 %v8936_v49, %v8152_v50  ;;  %v7439_v50 = vor.u32 %v8759_v30, %v7438_v39  ;;  %v8903_v39 = vld [vmem:[#allocation8 + $0x6d4] sm:$0xf0] }
 0x279   :  { %4970 = vmatpush.bf16.msrb.mxu3 %v7659_v48  ;;  %4993 = vmatpush.bf16.msrb.mxu2 %v7963_v47  ;;  %v3190_v48 = vadd.f32 %v3189_v55, %v3177_v58  ;;  %v7151_v55 = vor.u32 %v8687_v33, %v7150_v17  ;;  %v8839_v58 = vld [vmem:[#allocation8 + $0x4d4] sm:$0xf0]  ;;  %v8104_v33 = vld [vmem:[#allocation8 + $0x790] sm:$0xf0] }
 0x27a   :  { %4983 = vmatpush.bf16.msrb.mxu1 %v7787_v37  ;;  %v7759_v2 = vor.u32 %v8839_v58, %v7758_v52  ;;  %v8763_v17 = vld [vmem:[#allocation8 + $0x274] sm:$0xf0]  ;;  %v7694_v52 = vld [vmem:[#allocation8 + $0x448] sm:$0xf] }
 0x27b   :  { %v7422_v58 = vld [vmem:[#allocation8 + $0x228] sm:$0xf] }
 0x27c   :  { %4971 = vmatmul.bf16.vlgmr.msrb.gmra.mxu3 %v9417_v46 }
 0x27d   :  { %5015 = vmatpush.bf16.msra.mxu3 %v7263_v6  ;;  %4984 = vmatmul.bf16.vlgmr.msrb.gmra.mxu1 %v9420_v0  ;;  %v3228_v62 = vpop.f32.mrf.mxu0  ;;  %v3191_v5 = vpop.f32.mrf.mxu1 }
 0x27e   :  { %5028 = vmatpush.bf16.msra.mxu1 %v7391_v13  ;;  %4994 = vmatpush.bf16.msrb.mxu2 %v7947_v28  ;;  %v7931_v13 = vor.u32 %v8880_v53, %v7928_v3  ;;  %v8771_v28 = vld [vmem:[#allocation8 + $0x2b4] sm:$0xf0]  ;;  %v8136_v53 = vld [vmem:[#allocation8 + $0x7d0] sm:$0xf0]  ;;  %v7742_v5 = vld [vmem:[#allocation8 + $0x4a8] sm:$0xf] }
 0x27f   :  { %v3202_v37 = vpop.f32.mrf.mxu3  ;;  %v8139_v15 = vor.u32 %v8932_v59, %v8136_v53 }
 0x280   :  { %v3203_v6 = vadd.f32 %v3202_v37, %v3190_v48  ;;  %v8835_v37 = vld [vmem:[#allocation8 + $0x4b4] sm:$0xf0] }
 0x281   :  { %5016 = vmatpush.bf16.msra.mxu3 %v7247_v27  ;;  %v3215_v31 = vpop.f32.mrf.mxu2  ;;  %v7518_v27 = vld [vmem:[#allocation8 + $0x2e8] sm:$0xf]  ;;  %v7743_v21 = vor.u32 %v8835_v37, %v7742_v5  ;;  %v8819_v37 = vld [vmem:[#allocation8 + $0x434] sm:$0xf0] }
 0x282   :  { %5029 = vmatpush.bf16.msra.mxu1 %v7375_v45  ;;  %v3216_v24 = vadd.f32 %v3215_v31, %v3203_v6  ;;  %v8779_v45 = vld [vmem:[#allocation8 + $0x2f4] sm:$0xf0]  ;;  %4995 = vmatpush.bf16.msrb.mxu2 %v7931_v13  ;;  %v7678_v5 = vld [vmem:[#allocation8 + $0x428] sm:$0xf] }
 0x283   :  { %v8867_v31 = vld [vmem:[#allocation8 + $0x5b4] sm:$0xf0] }
 0x284   :  { %v3229_v51 = vadd.f32 %v3228_v62, %v3216_v24  ;;  %v7886_v62 = vld [vmem:[#allocation8 + $0x5c8] sm:$0xf]  ;;  %v8767_v13 = vld [vmem:[#allocation8 + $0x294] sm:$0xf0] }
 0x285   :  { %5017 = vmatpush.bf16.msra.mxu3 %v7231_v35  ;;  %v3230_v26 = vpop.f32.mrf.mxu0  ;;  %v7519_v35 = vor.u32 %v8779_v45, %v7518_v27  ;;  %v3241_v38 = vpop.f32.mrf.mxu1  ;;  %v7726_v24 = vld [vmem:[#allocation8 + $0x488] sm:$0xf]  ;;  %v8863_v45 = vld [vmem:[#allocation8 + $0x594] sm:$0xf0] }
 0x286   :  { %5030 = vmatpush.bf16.msra.mxu1 %v7359_v29  ;;  %v7774_v29 = vld [vmem:[#allocation8 + $0x4e8] sm:$0xf]  ;;  %v3242_v42 = vadd.f32 %v3241_v38, %v3229_v51  ;;  %4996 = vmatpush.bf16.msrb.mxu2 %v7915_v32  ;;  %v8831_v26 = vld [vmem:[#allocation8 + $0x494] sm:$0xf0]  ;;  %v8123_v51 = vor.u32 %v8928_v20, %v8120_v22  ;;  %v8924_v32 = vld [vmem:[#allocation8 + $0x784] sm:$0xf] }
 0x287   :  { %v3204_v44 = vpop.f32.mrf.mxu3  ;;  %v7775_v47 = vor.u32 %v8843_v14, %v7774_v29  ;;  %v7854_v27 = vld [vmem:[#allocation8 + $0x588] sm:$0xf]  ;;  %v8827_v29 = vld [vmem:[#allocation8 + $0x474] sm:$0xf0] }
 0x288   :  { %v3252_v25 = vmax.f32 %v3242_v42, 0.0  ;;  %v7838_v14 = vld [vmem:[#allocation8 + $0x568] sm:$0xf]  ;;  %v8859_v38 = vld [vmem:[#allocation8 + $0x574] sm:$0xf0]  ;;  %v8107_v42 = vor.u32 %v8924_v32, %v8104_v33 }
 0x289   :  { %5018 = vmatpush.bf16.msra.mxu3 %v7215_v7  ;;  %v3217_v7 = vpop.f32.mrf.mxu2  ;;  %4997 = vmatmul.bf16.vlgmr.msrb.gmra.mxu2 %v9445_v63  ;;  %v7839_v49 = vor.u32 %v8859_v38, %v7838_v14  ;;  %v8030_v20 = vld [vmem:[#allocation8 + $0x6e8] sm:$0xf]  ;;  %v8907_v22 = vld [vmem:[#allocation8 + $0x6f4] sm:$0xf0]  ;;  %v7392_v14 = vld [vmem:[#allocation8 + $0x1f8] sm:$0xf0] }
 0x28a   :  { %5031 = vmatpush.bf16.msra.mxu1 %v7343_v12  ;;  %v7279_v12 = vor.u32 %v8719_v36, %v7278_v34  ;;  %5041 = vmatpush.bf16.msra.mxu2 %v7519_v35  ;;  %v9454_v60 = vpack.c.bf16 %v3252_v25, %v3252_v25  ;;  %v7710_v34 = vld [vmem:[#allocation8 + $0x468] sm:$0xf]  ;;  %v7855_v36 = vor.u32 %v8863_v45, %v7854_v27  ;;  %v3519_v7 = vperm.slane %v9460_v57, 0  ;;  %v8823_v25 = vld [vmem:[#allocation8 + $0x454] sm:$0xf0] }
 0x28b   :  { %v7662_v27 = vld [vmem:[#allocation8 + $0x408] sm:$0xf]  ;;  %v8847_v32 = vld [vmem:[#allocation8 + $0x514] sm:$0xf0]  ;;  %v8031_v33 = vor.u32 %v8907_v22, %v8030_v20 }
 0x28c   :  { %4906 = vmatmul.bf16.vlgmr.msrb.gmra.mxu0 %v9454_v60  ;;  %v8014_v38 = vld [vmem:[#allocation8 + $0x6c8] sm:$0xf]  ;;  %v8803_v20 = vld [vmem:[#allocation8 + $0x3b4] sm:$0xf0] }
 0x28d   :  { %5019 = vmatpush.bf16.msra.mxu3 %v7199_v56  ;;  %v8871_v56 = vld [vmem:[#allocation8 + $0x5d4] sm:$0xf0]  ;;  %v3243_v6 = vpop.f32.mrf.mxu1  ;;  %5002 = vmatpush.bf16.msrb.mxu0 %v8155_v1  ;;  %v8916_v1 = vld [vmem:[#allocation8 + $0x744] sm:$0xf] }
 0x28e   :  { %5032 = vmatpush.bf16.msra.mxu1 %v7327_v18  ;;  %v7486_v18 = vld [vmem:[#allocation8 + $0x2a8] sm:$0xf]  ;;  %5042 = vmatpush.bf16.msra.mxu2 %v7503_v54  ;;  %v7887_v3 = vor.u32 %v8871_v56, %v7886_v62  ;;  %v8855_v54 = vld [vmem:[#allocation8 + $0x554] sm:$0xf0] }
 0x28f   :  { %v7487_v48 = vor.u32 %v8771_v28, %v7486_v18  ;;  %v8755_v62 = vld [vmem:[#allocation8 + $0x234] sm:$0xf0]  ;;  %v7695_v28 = vor.u32 %v8823_v25, %v7694_v52 }
 0x290   :  { %v8851_v6 = vld [vmem:[#allocation8 + $0x534] sm:$0xf0] }
 0x291   :  { %5020 = vmatpush.bf16.msra.mxu3 %v7183_v19  ;;  %v7870_v19 = vld [vmem:[#allocation8 + $0x5a8] sm:$0xf]  ;;  %5003 = vmatpush.bf16.msrb.mxu0 %v8139_v15  ;;  %v8811_v52 = vld [vmem:[#allocation8 + $0x3f4] sm:$0xf0] }
 0x292   :  { %5033 = vmatpush.bf16.msra.mxu1 %v7311_v11  ;;  %v7470_v11 = vld [vmem:[#allocation8 + $0x288] sm:$0xf]  ;;  %5043 = vmatpush.bf16.msra.mxu2 %v7487_v48  ;;  %v7871_v23 = vor.u32 %v8867_v31, %v7870_v19  ;;  %v7423_v48 = vor.u32 %v8755_v62, %v7422_v58  ;;  %v7248_v58 = vld [vmem:[#allocation8 + $0xd8] sm:$0xf0]  ;;  %v8741_v62 = vld [vmem:[#allocation8 + $0x1cc] sm:$0xf] }
 0x293   :  { %v7471_v40 = vor.u32 %v8767_v13, %v7470_v11  ;;  %v7806_v19 = vld [vmem:[#allocation8 + $0x528] sm:$0xf]  ;;  %v8751_v11 = vld [vmem:[#allocation8 + $0x214] sm:$0xf0] }
 0x294   :  { %v7406_v31 = vld [vmem:[#allocation8 + $0x208] sm:$0xf] }
 0x295   :  { %5021 = vmatpush.bf16.msra.mxu3 %v7167_v61  ;;  %v7454_v61 = vld [vmem:[#allocation8 + $0x268] sm:$0xf]  ;;  %5004 = vmatpush.bf16.msrb.mxu0 %v8123_v51  ;;  %v8815_v51 = vld [vmem:[#allocation8 + $0x414] sm:$0xf0] }
 0x296   :  { %5034 = vmatpush.bf16.msra.mxu1 %v7295_v9  ;;  %v7727_v9 = vor.u32 %v8831_v26, %v7726_v24  ;;  %5044 = vmatpush.bf16.msra.mxu2 %v7471_v40  ;;  %v7455_v35 = vor.u32 %v8763_v17, %v7454_v61  ;;  %v7679_v40 = vor.u32 %v8819_v37, %v7678_v5  ;;  %v8912_v24 = vld [vmem:[#allocation8 + $0x724] sm:$0xf]  ;;  %v8056_v26 = vld [vmem:[#allocation8 + $0x730] sm:$0xf0]  ;;  %v7232_v5 = vld [vmem:[#allocation8 + $0xb8] sm:$0xf0] }
 0x297   :  { %v7807_v61 = vor.u32 %v8851_v6, %v7806_v19  ;;  %v7407_v17 = vor.u32 %v8751_v11, %v7406_v31  ;;  %v8737_v19 = vld [vmem:[#allocation8 + $0x1ac] sm:$0xf]  ;;  %v7360_v6 = vld [vmem:[#allocation8 + $0x1b8] sm:$0xf0]  ;;  %v7982_v11 = vld [vmem:[#allocation8 + $0x688] sm:$0xf] }
 0x298   :  { %v7363_v22 = vor.u32 %v8737_v19, %v7360_v6  ;;  %v7918_v19 = vld [vmem:[#allocation8 + $0x608] sm:$0xf]  ;;  %v8879_v6 = vld [vmem:[#allocation8 + $0x614] sm:$0xf0] }
 0x299   :  { %5022 = vmatpush.bf16.msra.mxu3 %v7151_v55  ;;  %v7711_v55 = vor.u32 %v8827_v29, %v7710_v34  ;;  %5005 = vmatpush.bf16.msrb.mxu0 %v8107_v42  ;;  %v8713_v34 = vld [vmem:[#allocation8 + $0xec] sm:$0xf]  ;;  %v8059_v29 = vor.u32 %v8912_v24, %v8056_v26  ;;  %v7663_v42 = vor.u32 %v8815_v51, %v7662_v27  ;;  %v7344_v27 = vld [vmem:[#allocation8 + $0x198] sm:$0xf0] }
 0x29a   :  { %5035 = vmatpush.bf16.msra.mxu1 %v7279_v12  ;;  %v8920_v12 = vld [vmem:[#allocation8 + $0x764] sm:$0xf]  ;;  %5045 = vmatpush.bf16.msra.mxu2 %v7455_v35  ;;  %v8745_v35 = vld [vmem:[#allocation8 + $0x1ec] sm:$0xf] }
 0x29b   :  { %v7395_v25 = vor.u32 %v8745_v35, %v7392_v14  ;;  %v8733_v26 = vld [vmem:[#allocation8 + $0x18c] sm:$0xf]  ;;  %v7328_v14 = vld [vmem:[#allocation8 + $0x178] sm:$0xf0] }
 0x29c   :  { %5023 = vmatmul.bf16.vlgmr.msra.gmra.mxu3 %v9396_v4  ;;  %v4829_v43 = vpop.f32.mrf.mxu1  ;;  %4958 = vmatmul.bf16.vlgmr.msra.gmra.mxu0 %v9402_v10 }
 0x29d   :  { %5067 = vmatpush.bf16.msrb.mxu3 %v7775_v47  ;;  %5036 = vmatmul.bf16.vlgmr.msra.gmra.mxu1 %v9398_v41  ;;  %v9462_v44 = vpop.f32.mrf.mxu0  ;;  %v8088_v47 = vld [vmem:[#allocation8 + $0x770] sm:$0xf0] }
 0x29e   :  { %5080 = vmatpush.bf16.msrb.mxu1 %v7903_v16  ;;  %v7822_v16 = vld [vmem:[#allocation8 + $0x548] sm:$0xf]  ;;  %v8091_v56 = vor.u32 %v8920_v12, %v8088_v47  ;;  %5046 = vmatpush.bf16.msra.mxu2 %v7439_v50 }
 0x29f   :  { %v4816_v18 = vpop.f32.mrf.mxu3  ;;  %v7646_v50 = vld [vmem:[#allocation8 + $0x3e8] sm:$0xf] }
 0x2a0   :  { %v4817_v59 = vadd.f32 %v4816_v18, %v3519_v7  ;;  %5006 = vmatpush.bf16.msrb.mxu0 %v8091_v56  ;;  %v8040_v7 = vld [vmem:[#allocation8 + $0x710] sm:$0xf0]  ;;  %v7376_v56 = vld [vmem:[#allocation8 + $0x1d8] sm:$0xf0]  ;;  %v7647_v18 = vor.u32 %v8811_v52, %v7646_v50  ;;  %v8725_v52 = vld [vmem:[#allocation8 + $0x14c] sm:$0xf] }
 0x2a1   :  { %5068 = vmatpush.bf16.msrb.mxu3 %v7759_v2  ;;  %v8072_v2 = vld [vmem:[#allocation8 + $0x750] sm:$0xf0]  ;;  %v4842_v53 = vpop.f32.mrf.mxu2 }
 0x2a2   :  { %5081 = vmatpush.bf16.msrb.mxu1 %v7887_v3  ;;  %v7823_v3 = vor.u32 %v8855_v54, %v7822_v16  ;;  %v4830_v13 = vadd.f32 %v4829_v43, %v4817_v59  ;;  %5047 = vmatpush.bf16.msra.mxu2 %v7423_v48  ;;  %v8015_v16 = vor.u32 %v8903_v39, %v8014_v38  ;;  %v8709_v54 = vld [vmem:[#allocation8 + $0xcc] sm:$0xf]  ;;  %v7630_v59 = vld [vmem:[#allocation8 + $0x3c8] sm:$0xf] }
 0x2a3   :  { %v8705_v48 = vld [vmem:[#allocation8 + $0xac] sm:$0xf]  ;;  %v7950_v39 = vld [vmem:[#allocation8 + $0x648] sm:$0xf] }
 0x2a4   :  { %v4831_v15 = vpop.f32.mrf.mxu1  ;;  %v4843_v45 = vadd.f32 %v4842_v53, %v4830_v13  ;;  %v8807_v53 = vld [vmem:[#allocation8 + $0x3d4] sm:$0xf0] }
 0x2a5   :  { %5069 = vmatpush.bf16.msrb.mxu3 %v7743_v21  ;;  %v8075_v21 = vor.u32 %v8916_v1, %v8072_v2  ;;  %v8899_v1 = vld [vmem:[#allocation8 + $0x6b4] sm:$0xf0]  ;;  %v7251_v2 = vor.u32 %v8709_v54, %v7248_v58  ;;  %v7631_v31 = vor.u32 %v8807_v53, %v7630_v59  ;;  %v7235_v15 = vor.u32 %v8705_v48, %v7232_v5  ;;  %v7934_v58 = vld [vmem:[#allocation8 + $0x628] sm:$0xf]  ;;  %v7168_v59 = vld [vmem:[#allocation8 + $0x38] sm:$0xf0] }
 0x2a6   :  { %5082 = vmatpush.bf16.msrb.mxu1 %v7871_v23  ;;  %v4857_v23 = vpop.f32.mrf.mxu0  ;;  %v9467_v30 = vadd.f32 %v9462_v44, %v4843_v45  ;;  %5048 = vmatpush.bf16.msra.mxu2 %v7407_v17  ;;  %v8895_v13 = vld [vmem:[#allocation8 + $0x694] sm:$0xf0]  ;;  %v8721_v48 = vld [vmem:[#allocation8 + $0x12c] sm:$0xf]  ;;  %v7296_v5 = vld [vmem:[#allocation8 + $0x138] sm:$0xf0] }
 0x2a7   :  { %5007 = vmatpush.bf16.msrb.mxu0 %v8075_v21  ;;  %v4818_v43 = vpop.f32.mrf.mxu3  ;;  %v7614_v21 = vld [vmem:[#allocation8 + $0x3a8] sm:$0xf]  ;;  %v8701_v23 = vld [vmem:[#allocation8 + $0x8c] sm:$0xf]  ;;  %v7983_v24 = vor.u32 %v8895_v13, %v7982_v11  ;;  %v8891_v17 = vld [vmem:[#allocation8 + $0x674] sm:$0xf0] }
 0x2a8   :  { %v7615_v45 = vor.u32 %v8803_v20, %v7614_v21  ;;  %v8887_v43 = vld [vmem:[#allocation8 + $0x654] sm:$0xf0]  ;;  %v8777_v21 = vld [vmem:[#allocation8 + $0x2ec] sm:$0xf]  ;;  %v7520_v20 = vld [vmem:[#allocation8 + $0x2f8] sm:$0xf0] }
 0x2a9   :  { %5070 = vmatpush.bf16.msrb.mxu3 %v7727_v9  ;;  %v7790_v9 = vld [vmem:[#allocation8 + $0x508] sm:$0xf]  ;;  %v4844_v12 = vpop.f32.mrf.mxu2  ;;  %5049 = vmatmul.bf16.vlgmr.msra.gmra.mxu2 %v9400_v8  ;;  %v7951_v50 = vor.u32 %v8887_v43, %v7950_v39  ;;  %v8939_v43 = vld [vmem:[#allocation8 + $0x7f4] sm:$0xf0] }
 0x2aa   :  { %5083 = vmatpush.bf16.msrb.mxu1 %v7855_v36  ;;  %v7264_v36 = vld [vmem:[#allocation8 + $0xf8] sm:$0xf0]  ;;  %v7791_v47 = vor.u32 %v8847_v32, %v7790_v9  ;;  %5093 = vmatpush.bf16.msrb.mxu2 %v8031_v33  ;;  %v7598_v9 = vld [vmem:[#allocation8 + $0x388] sm:$0xf]  ;;  %v8799_v32 = vld [vmem:[#allocation8 + $0x394] sm:$0xf0]  ;;  %v7347_v33 = vor.u32 %v8733_v26, %v7344_v27 }
 0x2ab   :  { %5008 = vmatpush.bf16.msrb.mxu0 %v8059_v29  ;;  %v8729_v29 = vld [vmem:[#allocation8 + $0x16c] sm:$0xf]  ;;  %v7599_v38 = vor.u32 %v8799_v32, %v7598_v9  ;;  %v7280_v26 = vld [vmem:[#allocation8 + $0x118] sm:$0xf0]  ;;  %v8158_v39 = vld [vmem:[#allocation8 + $0x7e8] sm:$0xf] }
 0x2ac   :  { %v7331_v12 = vor.u32 %v8729_v29, %v7328_v14  ;;  %v8841_v27 = vld [vmem:[#allocation8 + $0x4ec] sm:$0xf]  ;;  %v7904_v32 = vld [vmem:[#allocation8 + $0x5f8] sm:$0xf0] }
 0x2ad   :  { %5071 = vmatpush.bf16.msrb.mxu3 %v7711_v55  ;;  %v8908_v55 = vld [vmem:[#allocation8 + $0x704] sm:$0xf]  ;;  %v8873_v9 = vld [vmem:[#allocation8 + $0x5ec] sm:$0xf]  ;;  %v7504_v29 = vld [vmem:[#allocation8 + $0x2d8] sm:$0xf0] }
 0x2ae   :  { %5084 = vmatpush.bf16.msrb.mxu1 %v7839_v49  ;;  %v7267_v49 = vor.u32 %v8713_v34, %v7264_v36  ;;  %v8043_v44 = vor.u32 %v8908_v55, %v8040_v7  ;;  %5094 = vmatpush.bf16.msrb.mxu2 %v8015_v16  ;;  %v8697_v34 = vld [vmem:[#allocation8 + $0x6c] sm:$0xf]  ;;  %v7200_v36 = vld [vmem:[#allocation8 + $0x78] sm:$0xf0]  ;;  %v7582_v55 = vld [vmem:[#allocation8 + $0x368] sm:$0xf] }
 0x2af   :  { %v8795_v7 = vld [vmem:[#allocation8 + $0x374] sm:$0xf0] }
 0x2b0   :  { %5009 = vmatpush.bf16.msrb.mxu0 %v8043_v44  ;;  %v7583_v54 = vor.u32 %v8795_v7, %v7582_v55  ;;  %v8883_v44 = vld [vmem:[#allocation8 + $0x634] sm:$0xf0]  ;;  %v7907_v55 = vor.u32 %v8873_v9, %v7904_v32  ;;  %v8757_v9 = vld [vmem:[#allocation8 + $0x24c] sm:$0xf]  ;;  %v7440_v32 = vld [vmem:[#allocation8 + $0x258] sm:$0xf0] }
 0x2b1   :  { %5072 = vmatpush.bf16.msrb.mxu3 %v7695_v28  ;;  %v7998_v28 = vld [vmem:[#allocation8 + $0x6a8] sm:$0xf] }
 0x2b2   :  { %5085 = vmatpush.bf16.msrb.mxu1 %v7823_v3  ;;  %v7379_v3 = vor.u32 %v8741_v62, %v7376_v56  ;;  %v7999_v37 = vor.u32 %v8899_v1, %v7998_v28  ;;  %v7566_v56 = vld [vmem:[#allocation8 + $0x348] sm:$0xf] }
 0x2b3   :  { %5010 = vmatmul.bf16.vlgmr.msrb.gmra.mxu0 %v9454_v60 }
 0x2b4   :  { %5054 = vmatpush.bf16.msra.mxu0 %v7647_v18  ;;  %5095 = vmatpush.bf16.msrb.mxu2 %v7999_v37  ;;  %v8791_v18 = vld [vmem:[#allocation8 + $0x354] sm:$0xf0] }
 0x2b5   :  { %5073 = vmatpush.bf16.msrb.mxu3 %v7679_v40  ;;  %v7216_v40 = vld [vmem:[#allocation8 + $0x98] sm:$0xf0]  ;;  %v7567_v37 = vor.u32 %v8791_v18, %v7566_v56 }
 0x2b6   :  { %5086 = vmatpush.bf16.msrb.mxu1 %v7807_v61  ;;  %v7966_v61 = vld [vmem:[#allocation8 + $0x668] sm:$0xf]  ;;  %v7219_v51 = vor.u32 %v8701_v23, %v7216_v40  ;;  %v8685_v23 = vld [vmem:[#allocation8 + $0xc] sm:$0xf] }
 0x2b7   :  { %v7967_v35 = vor.u32 %v8891_v17, %v7966_v61  ;;  %v8717_v40 = vld [vmem:[#allocation8 + $0x10c] sm:$0xf] }
 0x2b8   :  { %5055 = vmatpush.bf16.msra.mxu0 %v7631_v31  ;;  %5096 = vmatpush.bf16.msrb.mxu2 %v7983_v24  ;;  %v7550_v31 = vld [vmem:[#allocation8 + $0x328] sm:$0xf]  ;;  %v7919_v24 = vor.u32 %v8879_v6, %v7918_v19 }
 0x2b9   :  { %5074 = vmatpush.bf16.msrb.mxu3 %v7663_v42  ;;  %v7203_v42 = vor.u32 %v8697_v34, %v7200_v36  ;;  %v8783_v36 = vld [vmem:[#allocation8 + $0x314] sm:$0xf0] }
 0x2ba   :  { %5087 = vmatpush.bf16.msrb.mxu1 %v7791_v47  ;;  %v8693_v47 = vld [vmem:[#allocation8 + $0x4c] sm:$0xf]  ;;  %v4881_v16 = vpop.f32.mrf.mxu1 }
 0x2bc   :  { %5075 = vmatmul.bf16.vlgmr.msrb.gmra.mxu3 %v9417_v46  ;;  %5056 = vmatpush.bf16.msra.mxu0 %v7615_v45  ;;  %v7776_v45 = vld [vmem:[#allocation8 + $0x4f8] sm:$0xf0] }
 0x2bd   :  { %5119 = vmatpush.bf16.msra.mxu3 %v7267_v49  ;;  %5088 = vmatmul.bf16.vlgmr.msrb.gmra.mxu1 %v9420_v0  ;;  %v7184_v49 = vld [vmem:[#allocation8 + $0x58] sm:$0xf0] }
 0x2be   :  { %5132 = vmatpush.bf16.msra.mxu1 %v7395_v25  ;;  %5097 = vmatpush.bf16.msrb.mxu2 %v7967_v35  ;;  %v7312_v25 = vld [vmem:[#allocation8 + $0x158] sm:$0xf0]  ;;  %v7187_v62 = vor.u32 %v8693_v47, %v7184_v49  ;;  %v8773_v35 = vld [vmem:[#allocation8 + $0x2cc] sm:$0xf] }
 0x2bf   :  { %v4868_v28 = vpop.f32.mrf.mxu3  ;;  %v7315_v1 = vor.u32 %v8725_v52, %v7312_v25  ;;  %v8837_v47 = vld [vmem:[#allocation8 + $0x4cc] sm:$0xf]  ;;  %v7760_v49 = vld [vmem:[#allocation8 + $0x4d8] sm:$0xf0]  ;;  %v8159_v52 = vor.u32 %v8939_v43, %v8158_v39 }
 0x2c0   :  { %5057 = vmatpush.bf16.msra.mxu0 %v7599_v38  ;;  %v4869_v53 = vadd.f32 %v4868_v28, %v9467_v30  ;;  %v7152_v30 = vld [vmem:[#allocation8 + $0x18] sm:$0xf0]  ;;  %v7283_v38 = vor.u32 %v8717_v40, %v7280_v26  ;;  %v8833_v28 = vld [vmem:[#allocation8 + $0x4ac] sm:$0xf] }
 0x2c1   :  { %5120 = vmatpush.bf16.msra.mxu3 %v7251_v2  ;;  %v8689_v2 = vld [vmem:[#allocation8 + $0x2c] sm:$0xf]  ;;  %v7155_v34 = vor.u32 %v8685_v23, %v7152_v30  ;;  %v7888_v25 = vld [vmem:[#allocation8 + $0x5d8] sm:$0xf0]  ;;  %v8110_v30 = vld [vmem:[#allocation8 + $0x788] sm:$0xf] }
 0x2c2   :  { %5133 = vmatpush.bf16.msra.mxu1 %v7379_v3  ;;  %5098 = vmatpush.bf16.msrb.mxu2 %v7951_v50  ;;  %v7935_v3 = vor.u32 %v8883_v44, %v7934_v58  ;;  %v9474_v11 = vadd.f32 %v4881_v16, %v4869_v53  ;;  %v7171_v13 = vor.u32 %v8689_v2, %v7168_v59  ;;  %v4883_v61 = vpop.f32.mrf.mxu1  ;;  %v8869_v50 = vld [vmem:[#allocation8 + $0x5cc] sm:$0xf]  ;;  %v8142_v58 = vld [vmem:[#allocation8 + $0x7c8] sm:$0xf]  ;;  %v8935_v44 = vld [vmem:[#allocation8 + $0x7d4] sm:$0xf0] }
 0x2c3   :  { %v8769_v16 = vld [vmem:[#allocation8 + $0x2ac] sm:$0xf]  ;;  %v7891_v56 = vor.u32 %v8869_v50, %v7888_v25  ;;  %v8143_v59 = vor.u32 %v8935_v44, %v8142_v58  ;;  %v7872_v53 = vld [vmem:[#allocation8 + $0x5b8] sm:$0xf0]  ;;  %v8919_v50 = vld [vmem:[#allocation8 + $0x754] sm:$0xf0] }
 0x2c4   :  { %5058 = vmatpush.bf16.msra.mxu0 %v7583_v54  ;;  %v7488_v54 = vld [vmem:[#allocation8 + $0x2b8] sm:$0xf0]  ;;  %v8865_v2 = vld [vmem:[#allocation8 + $0x5ac] sm:$0xf] }
 0x2c5   :  { %5121 = vmatpush.bf16.msra.mxu3 %v7235_v15  ;;  %v8787_v15 = vld [vmem:[#allocation8 + $0x334] sm:$0xf0]  ;;  %v7491_v18 = vor.u32 %v8769_v16, %v7488_v54  ;;  %v7875_v6 = vor.u32 %v8865_v2, %v7872_v53  ;;  %v7456_v23 = vld [vmem:[#allocation8 + $0x278] sm:$0xf0]  ;;  %v8857_v61 = vld [vmem:[#allocation8 + $0x56c] sm:$0xf] }
 0x2c6   :  { %5134 = vmatpush.bf16.msra.mxu1 %v7363_v22  ;;  %v7299_v22 = vor.u32 %v8721_v48, %v7296_v5  ;;  %5099 = vmatpush.bf16.msrb.mxu2 %v7935_v3  ;;  %v7551_v17 = vor.u32 %v8787_v15, %v7550_v31  ;;  %v8765_v3 = vld [vmem:[#allocation8 + $0x28c] sm:$0xf]  ;;  %v7472_v48 = vld [vmem:[#allocation8 + $0x298] sm:$0xf0]  ;;  %v8126_v5 = vld [vmem:[#allocation8 + $0x7a8] sm:$0xf] }
 0x2c7   :  { %v4870_v14 = vpop.f32.mrf.mxu3  ;;  %v7475_v31 = vor.u32 %v8765_v3, %v7472_v48  ;;  %v7728_v15 = vld [vmem:[#allocation8 + $0x498] sm:$0xf0]  ;;  %v8821_v39 = vld [vmem:[#allocation8 + $0x44c] sm:$0xf]  ;;  %v8915_v3 = vld [vmem:[#allocation8 + $0x734] sm:$0xf0] }
 0x2c8   :  { %5059 = vmatpush.bf16.msra.mxu0 %v7567_v37  ;;  %v8931_v37 = vld [vmem:[#allocation8 + $0x7b4] sm:$0xf0]  ;;  %v7696_v43 = vld [vmem:[#allocation8 + $0x458] sm:$0xf0]  ;;  %v8817_v16 = vld [vmem:[#allocation8 + $0x42c] sm:$0xf] }
 0x2c9   :  { %5122 = vmatpush.bf16.msra.mxu3 %v7219_v51  ;;  %v7523_v51 = vor.u32 %v8777_v21, %v7520_v20  ;;  %v8861_v21 = vld [vmem:[#allocation8 + $0x58c] sm:$0xf]  ;;  %v7856_v20 = vld [vmem:[#allocation8 + $0x598] sm:$0xf0]  ;;  %v7699_v25 = vor.u32 %v8821_v39, %v7696_v43 }
 0x2ca   :  { %5135 = vmatpush.bf16.msra.mxu1 %v7347_v33  ;;  %v7534_v33 = vld [vmem:[#allocation8 + $0x308] sm:$0xf]  ;;  %5100 = vmatpush.bf16.msrb.mxu2 %v7919_v24  ;;  %v7859_v24 = vor.u32 %v8861_v21, %v7856_v20  ;;  %v7408_v2 = vld [vmem:[#allocation8 + $0x218] sm:$0xf0]  ;;  %v8905_v48 = vld [vmem:[#allocation8 + $0x6ec] sm:$0xf] }
 0x2cb   :  { %v7535_v7 = vor.u32 %v8783_v36, %v7534_v33  ;;  %v8923_v36 = vld [vmem:[#allocation8 + $0x774] sm:$0xf0]  ;;  %v8845_v20 = vld [vmem:[#allocation8 + $0x50c] sm:$0xf]  ;;  %v7984_v43 = vld [vmem:[#allocation8 + $0x698] sm:$0xf0] }
 0x2cc   :  { %5060 = vmatpush.bf16.msra.mxu0 %v7551_v17  ;;  %v8893_v39 = vld [vmem:[#allocation8 + $0x68c] sm:$0xf] }
 0x2cd   :  { %5123 = vmatpush.bf16.msra.mxu3 %v7203_v42  ;;  %v7779_v42 = vor.u32 %v8841_v27, %v7776_v45  ;;  %5101 = vmatmul.bf16.vlgmr.msrb.gmra.mxu2 %v9445_v63  ;;  %v8825_v27 = vld [vmem:[#allocation8 + $0x46c] sm:$0xf]  ;;  %v7712_v45 = vld [vmem:[#allocation8 + $0x478] sm:$0xf0] }
 0x2ce   :  { %5136 = vmatpush.bf16.msra.mxu1 %v7331_v12  ;;  %5145 = vmatpush.bf16.msra.mxu2 %v7523_v51  ;;  %v7507_v12 = vor.u32 %v8773_v35, %v7504_v29  ;;  %v7840_v51 = vld [vmem:[#allocation8 + $0x578] sm:$0xf0]  ;;  %v7715_v35 = vor.u32 %v8825_v27, %v7712_v45  ;;  %v3520_v29 = vperm.slane %v9460_v57, 1  ;;  %v8809_v27 = vld [vmem:[#allocation8 + $0x3ec] sm:$0xf] }
 0x2cf   :  { %v7843_v14 = vor.u32 %v8857_v61, %v7840_v51  ;;  %v7648_v45 = vld [vmem:[#allocation8 + $0x3f8] sm:$0xf0] }
 0x2d0   :  { %5061 = vmatpush.bf16.msra.mxu0 %v7535_v7  ;;  %v7824_v7 = vld [vmem:[#allocation8 + $0x558] sm:$0xf0] }
 0x2d1   :  { %5124 = vmatpush.bf16.msra.mxu3 %v7187_v62  ;;  %v7763_v62 = vor.u32 %v8837_v47, %v7760_v49  ;;  %v7424_v47 = vld [vmem:[#allocation8 + $0x238] sm:$0xf0]  ;;  %v8078_v49 = vld [vmem:[#allocation8 + $0x748] sm:$0xf] }
 0x2d2   :  { %5137 = vmatpush.bf16.msra.mxu1 %v7315_v1  ;;  %5146 = vmatpush.bf16.msra.mxu2 %v7507_v12  ;;  %v7744_v1 = vld [vmem:[#allocation8 + $0x4b8] sm:$0xf0]  ;;  %v8753_v12 = vld [vmem:[#allocation8 + $0x22c] sm:$0xf] }
 0x2d3   :  { %5062 = vmatmul.bf16.vlgmr.msra.gmra.mxu0 %v9402_v10  ;;  %v7747_v19 = vor.u32 %v8833_v28, %v7744_v1  ;;  %v7427_v44 = vor.u32 %v8753_v12, %v7424_v47  ;;  %v8079_v28 = vor.u32 %v8919_v50, %v8078_v49  ;;  %v8749_v1 = vld [vmem:[#allocation8 + $0x20c] sm:$0xf]  ;;  %v7968_v49 = vld [vmem:[#allocation8 + $0x678] sm:$0xf0] }
 0x2d4   :  { %5106 = vmatpush.bf16.msrb.mxu0 %v8159_v52  ;;  %v8889_v47 = vld [vmem:[#allocation8 + $0x66c] sm:$0xf] }
 0x2d5   :  { %5125 = vmatpush.bf16.msra.mxu3 %v7171_v13  ;;  %v8829_v13 = vld [vmem:[#allocation8 + $0x48c] sm:$0xf] }
 0x2d6   :  { %5138 = vmatpush.bf16.msra.mxu1 %v7299_v22  ;;  %5147 = vmatpush.bf16.msra.mxu2 %v7491_v18  ;;  %v8761_v22 = vld [vmem:[#allocation8 + $0x26c] sm:$0xf]  ;;  %v7731_v40 = vor.u32 %v8829_v13, %v7728_v15  ;;  %v7808_v18 = vld [vmem:[#allocation8 + $0x538] sm:$0xf0] }
 0x2d7   :  { %v7459_v26 = vor.u32 %v8761_v22, %v7456_v23  ;;  %v8813_v13 = vld [vmem:[#allocation8 + $0x40c] sm:$0xf]  ;;  %v7664_v15 = vld [vmem:[#allocation8 + $0x418] sm:$0xf0]  ;;  %v8046_v23 = vld [vmem:[#allocation8 + $0x708] sm:$0xf] }
 0x2d8   :  { %5107 = vmatpush.bf16.msrb.mxu0 %v8143_v59  ;;  %v8062_v59 = vld [vmem:[#allocation8 + $0x728] sm:$0xf]  ;;  %v7792_v22 = vld [vmem:[#allocation8 + $0x518] sm:$0xf0]  ;;  %v8797_v50 = vld [vmem:[#allocation8 + $0x38c] sm:$0xf] }
 0x2d9   :  { %5126 = vmatpush.bf16.msra.mxu3 %v7155_v34  ;;  %v8094_v34 = vld [vmem:[#allocation8 + $0x768] sm:$0xf]  ;;  %v8063_v21 = vor.u32 %v8915_v3, %v8062_v59  ;;  %v7795_v61 = vor.u32 %v8845_v20, %v7792_v22  ;;  %v7936_v59 = vld [vmem:[#allocation8 + $0x638] sm:$0xf0]  ;;  %v8785_v20 = vld [vmem:[#allocation8 + $0x32c] sm:$0xf] }
 0x2da   :  { %5139 = vmatpush.bf16.msra.mxu1 %v7283_v38  ;;  %5148 = vmatpush.bf16.msra.mxu2 %v7475_v31  ;;  %v4933_v33 = vpop.f32.mrf.mxu1  ;;  %v7443_v38 = vor.u32 %v8757_v9, %v7440_v32  ;;  %v7411_v31 = vor.u32 %v8749_v1, %v7408_v2  ;;  %v7651_v32 = vor.u32 %v8809_v27, %v7648_v45  ;;  %v8881_v2 = vld [vmem:[#allocation8 + $0x62c] sm:$0xf]  ;;  %v7568_v3 = vld [vmem:[#allocation8 + $0x358] sm:$0xf0] }
 0x2db   :  { %v7552_v22 = vld [vmem:[#allocation8 + $0x338] sm:$0xf0]  ;;  %v8953_v27 = vld [vmem:[#allocation11 + $0x68] sm:$0xff] }
 0x2dc   :  { %5127 = vmatmul.bf16.vlgmr.msra.gmra.mxu3 %v9396_v4  ;;  %v8127_v4 = vor.u32 %v8931_v37, %v8126_v5  ;;  %v8032_v5 = vld [vmem:[#allocation8 + $0x6f8] sm:$0xf0] }
 0x2dd   :  { %5171 = vmatpush.bf16.msrb.mxu3 %v7779_v42  ;;  %5140 = vmatmul.bf16.vlgmr.msra.gmra.mxu1 %v9398_v41  ;;  %v8927_v41 = vld [vmem:[#allocation8 + $0x794] sm:$0xf0]  ;;  %v8853_v42 = vld [vmem:[#allocation8 + $0x54c] sm:$0xf] }
 0x2de   :  { %5184 = vmatpush.bf16.msrb.mxu1 %v7907_v55  ;;  %5108 = vmatpush.bf16.msrb.mxu0 %v8127_v4  ;;  %v8111_v17 = vor.u32 %v8927_v41, %v8110_v30  ;;  %v8095_v55 = vor.u32 %v8923_v36, %v8094_v34  ;;  %v7827_v58 = vor.u32 %v8853_v42, %v7824_v7  ;;  %v8911_v30 = vld [vmem:[#allocation8 + $0x714] sm:$0xf0]  ;;  %v8901_v41 = vld [vmem:[#allocation8 + $0x6cc] sm:$0xf]  ;;  %v8000_v34 = vld [vmem:[#allocation8 + $0x6b8] sm:$0xf0] }
 0x2df   :  { %5149 = vmatpush.bf16.msra.mxu2 %v7459_v26  ;;  %v4920_v52 = vpop.f32.mrf.mxu3  ;;  %v8035_v4 = vor.u32 %v8905_v48, %v8032_v5  ;;  %v7667_v26 = vor.u32 %v8813_v13, %v7664_v15  ;;  %v8047_v51 = vor.u32 %v8911_v30, %v8046_v23  ;;  %v8805_v36 = vld [vmem:[#allocation8 + $0x3cc] sm:$0xf]  ;;  %v7987_v7 = vor.u32 %v8893_v39, %v7984_v43  ;;  %v8955_v48 = vld [vmem:[#allocation11 + $0x78] sm:$0xff]  ;;  %v8954_v23 = vld [vmem:[#allocation11 + $0x70] sm:$0xff] }
 0x2e0   :  { %v4921_v54 = vadd.f32 %v4920_v52, %v3520_v29  ;;  %v8946_v29 = vld [vmem:[#allocation11 + $0x30] sm:$0xff]  ;;  %v8801_v42 = vld [vmem:[#allocation8 + $0x3ac] sm:$0xf]  ;;  %v7600_v52 = vld [vmem:[#allocation8 + $0x398] sm:$0xf0] }
 0x2e1   :  { %5172 = vmatpush.bf16.msrb.mxu3 %v7763_v62  ;;  %v7680_v62 = vld [vmem:[#allocation8 + $0x438] sm:$0xf0]  ;;  %v8877_v15 = vld [vmem:[#allocation8 + $0x60c] sm:$0xf] }
 0x2e2   :  { %5185 = vmatpush.bf16.msrb.mxu1 %v7891_v56  ;;  %5109 = vmatpush.bf16.msrb.mxu0 %v8111_v17  ;;  %v8849_v56 = vld [vmem:[#allocation8 + $0x52c] sm:$0xf]  ;;  %v4935_v53 = vpop.f32.mrf.mxu1  ;;  %v9481_v37 = vadd.f32 %v4933_v33, %v4921_v54  ;;  %v8947_v17 = vld [vmem:[#allocation11 + $0x38] sm:$0xff] }
 0x2e3   :  { %5150 = vmatpush.bf16.msra.mxu2 %v7443_v38  ;;  %v8897_v33 = vld [vmem:[#allocation8 + $0x6ac] sm:$0xf]  ;;  %v8128_v39 = vld [vmem:[#allocation8 + $0x7b8] sm:$0xf0] }
 0x2e4   :  { %v8885_v54 = vld [vmem:[#allocation8 + $0x64c] sm:$0xf] }
 0x2e5   :  { %5173 = vmatpush.bf16.msrb.mxu3 %v7747_v19  ;;  %v7683_v19 = vor.u32 %v8817_v16, %v7680_v62  ;;  %v7603_v16 = vor.u32 %v8797_v50, %v7600_v52  ;;  %v8793_v62 = vld [vmem:[#allocation8 + $0x36c] sm:$0xf] }
 0x2e6   :  { %5186 = vmatpush.bf16.msrb.mxu1 %v7875_v6  ;;  %5110 = vmatpush.bf16.msrb.mxu0 %v8095_v55  ;;  %v7811_v6 = vor.u32 %v8849_v56, %v7808_v18  ;;  %v7616_v55 = vld [vmem:[#allocation8 + $0x3b8] sm:$0xf0]  ;;  %v8789_v53 = vld [vmem:[#allocation8 + $0x34c] sm:$0xf] }
 0x2e7   :  { %5151 = vmatpush.bf16.msra.mxu2 %v7427_v44  ;;  %v7619_v12 = vor.u32 %v8801_v42, %v7616_v55  ;;  %v7584_v56 = vld [vmem:[#allocation8 + $0x378] sm:$0xf0]  ;;  %v7571_v13 = vor.u32 %v8789_v53, %v7568_v3  ;;  %v8941_v30 = vld [vmem:[#allocation11 + $0x8] sm:$0xff]  ;;  %v8950_v42 = vld [vmem:[#allocation11 + $0x50] sm:$0xff] }
 0x2e8   :  { %v8943_v18 = vld [vmem:[#allocation11 + $0x18] sm:$0xff]  ;;  %v7587_v1 = vor.u32 %v8793_v62, %v7584_v56  ;;  %v8948_v62 = vld [vmem:[#allocation11 + $0x40] sm:$0xff]  ;;  %v8913_v53 = vld [vmem:[#allocation8 + $0x72c] sm:$0xf] }
 0x2e9   :  { %5174 = vmatpush.bf16.msrb.mxu3 %v7731_v40  ;;  %v8016_v40 = vld [vmem:[#allocation8 + $0x6d8] sm:$0xf0] }
 0x2ea   :  { %5187 = vmatpush.bf16.msrb.mxu1 %v7859_v24  ;;  %5111 = vmatpush.bf16.msrb.mxu0 %v8079_v28  ;;  %v4922_v24 = vpop.f32.mrf.mxu3  ;;  %v8019_v9 = vor.u32 %v8901_v41, %v8016_v40  ;;  %v7555_v40 = vor.u32 %v8785_v20, %v7552_v22  ;;  %v8064_v3 = vld [vmem:[#allocation8 + $0x738] sm:$0xf0] }
 0x2eb   :  { %5152 = vmatpush.bf16.msra.mxu2 %v7411_v31  ;;  %v7939_v31 = vor.u32 %v8881_v2, %v7936_v59  ;;  %v8781_v24 = vld [vmem:[#allocation8 + $0x30c] sm:$0xf] }
 0x2ed   :  { %5175 = vmatpush.bf16.msrb.mxu3 %v7715_v35  ;;  %v7632_v35 = vld [vmem:[#allocation8 + $0x3d8] sm:$0xf0] }
 0x2ee   :  { %5188 = vmatpush.bf16.msrb.mxu1 %v7843_v14  ;;  %5112 = vmatpush.bf16.msrb.mxu0 %v8063_v21  ;;  %v8003_v14 = vor.u32 %v8897_v33, %v8000_v34  ;;  %v7635_v38 = vor.u32 %v8805_v36, %v7632_v35  ;;  %v7920_v21 = vld [vmem:[#allocation8 + $0x618] sm:$0xf0]  ;;  %v8952_v34 = vld [vmem:[#allocation11 + $0x60] sm:$0xff]  ;;  %v8933_v36 = vld [vmem:[#allocation8 + $0x7cc] sm:$0xf] }
 0x2ef   :  { %5197 = vmatpush.bf16.msrb.mxu2 %v8035_v4  ;;  %v7923_v41 = vor.u32 %v8877_v15, %v7920_v21  ;;  %v8144_v35 = vld [vmem:[#allocation8 + $0x7d8] sm:$0xf0] }
 0x2f0   :  { %5153 = vmatmul.bf16.vlgmr.msra.gmra.mxu2 %v9400_v8  ;;  %v8945_v8 = vld [vmem:[#allocation11 + $0x28] sm:$0xff] }
 0x2f1   :  { %5176 = vmatpush.bf16.msrb.mxu3 %v7699_v25  ;;  %v9487_v25 = vpop.f32.mrf.mxu2 }
 0x2f2   :  { %5189 = vmatpush.bf16.msrb.mxu1 %v7827_v58  ;;  %5113 = vmatpush.bf16.msrb.mxu0 %v8047_v51  ;;  %v7952_v58 = vld [vmem:[#allocation8 + $0x658] sm:$0xf0]  ;;  %v8940_v51 = vld [vmem:[#allocation11] sm:$0xff] }
 0x2f3   :  { %5198 = vmatpush.bf16.msrb.mxu2 %v8019_v9  ;;  %v7955_v28 = vor.u32 %v8885_v54, %v7952_v58  ;;  %v3521_v54 = vperm.slane %v9460_v57, 2  ;;  %v8067_v57 = vor.u32 %v8913_v53, %v8064_v3  ;;  %v8968_v3 = vld [vmem:[#allocation11 + $0xe0] sm:$0xff] }
 0x2f5   :  { %5177 = vmatpush.bf16.msrb.mxu3 %v7683_v19  ;;  %5114 = vmatmul.bf16.vlgmr.msrb.gmra.mxu0 %v9454_v60  ;;  %v8942_v19 = vld [vmem:[#allocation11 + $0x10] sm:$0xff] }
 0x2f6   :  { %5190 = vmatpush.bf16.msrb.mxu1 %v7811_v6  ;;  %5158 = vmatpush.bf16.msra.mxu0 %v7651_v32 }
 0x2f7   :  { %5199 = vmatpush.bf16.msrb.mxu2 %v8003_v14  ;;  %v8951_v14 = vld [vmem:[#allocation11 + $0x58] sm:$0xff] }
 0x2f9   :  { %5178 = vmatpush.bf16.msrb.mxu3 %v7667_v26  ;;  %v4896_v6 = vpop.f32.mrf.mxu2  ;;  %v7536_v26 = vld [vmem:[#allocation8 + $0x318] sm:$0xf0] }
 0x2fa   :  { %5191 = vmatpush.bf16.msrb.mxu1 %v7795_v61  ;;  %5159 = vmatpush.bf16.msra.mxu0 %v7635_v38  ;;  %v9489_v44 = vpop.f32.mrf.mxu1  ;;  %v8937_v61 = vld [vmem:[#allocation8 + $0x7ec] sm:$0xf]  ;;  %v7539_v32 = vor.u32 %v8781_v24, %v7536_v26 }
 0x2fb   :  { %5200 = vmatpush.bf16.msrb.mxu2 %v7987_v7  ;;  %v8929_v38 = vld [vmem:[#allocation8 + $0x7ac] sm:$0xf]  ;;  %v8112_v7 = vld [vmem:[#allocation8 + $0x798] sm:$0xf0] }
 0x2fc   :  { %5179 = vmatmul.bf16.vlgmr.msrb.gmra.mxu3 %v9417_v46  ;;  %v8944_v46 = vld [vmem:[#allocation11 + $0x20] sm:$0xff]  ;;  %v8131_v55 = vor.u32 %v8929_v38, %v8128_v39  ;;  %v8909_v6 = vld [vmem:[#allocation8 + $0x70c] sm:$0xf] }
 0x2fd   :  { %5491 = vmatpush.bf16.msra.mxu3 %v8947_v17  ;;  %5192 = vmatmul.bf16.vlgmr.msrb.gmra.mxu1 %v9420_v0  ;;  %v7971_v0 = vor.u32 %v8889_v47, %v7968_v49  ;;  %v8160_v17 = vld [vmem:[#allocation8 + $0x7f8] sm:$0xf0]  ;;  %v8949_v49 = vld [vmem:[#allocation11 + $0x48] sm:$0xff]  ;;  %v8956_v38 = vld [vmem:[#allocation11 + $0x80] sm:$0xff] }
 0x2fe   :  { %5160 = vmatpush.bf16.msra.mxu0 %v7619_v12  ;;  %5504 = vmatpush.bf16.msra.mxu1 %v8955_v48  ;;  %v8163_v33 = vor.u32 %v8937_v61, %v8160_v17 }
 0x2ff   :  { %5201 = vmatpush.bf16.msrb.mxu2 %v7971_v0  ;;  %v9491_v5 = vpop.f32.mrf.mxu3  ;;  %v8096_v0 = vld [vmem:[#allocation8 + $0x778] sm:$0xf0] }
 0x301   :  { %5492 = vmatpush.bf16.msra.mxu3 %v8946_v29  ;;  %v9493_v9 = vpop.f32.mrf.mxu2  ;;  %v8147_v29 = vor.u32 %v8933_v36, %v8144_v35  ;;  %v8958_v36 = vld [vmem:[#allocation11 + $0x90] sm:$0xff]  ;;  %v8957_v35 = vld [vmem:[#allocation11 + $0x88] sm:$0xff] }
 0x302   :  { %5161 = vmatpush.bf16.msra.mxu0 %v7603_v16  ;;  %v4987_v4 = vpop.f32.mrf.mxu1  ;;  %5505 = vmatpush.bf16.msra.mxu1 %v8954_v23 }
 0x303   :  { %5202 = vmatpush.bf16.msrb.mxu2 %v7955_v28  ;;  %v8080_v28 = vld [vmem:[#allocation8 + $0x758] sm:$0xf0]  ;;  %v4947_v4 = vadd.f32 %v9493_v9, %v9481_v37  ;;  %v8962_v37 = vld [vmem:[#allocation11 + $0xb0] sm:$0xff] }
 0x305   :  { %5493 = vmatpush.bf16.msra.mxu3 %v8945_v8  ;;  %v8925_v8 = vld [vmem:[#allocation8 + $0x78c] sm:$0xf] }
 0x306   :  { %5162 = vmatpush.bf16.msra.mxu0 %v7587_v1  ;;  %5506 = vmatpush.bf16.msra.mxu1 %v8953_v27  ;;  %v8115_v47 = vor.u32 %v8925_v8, %v8112_v7 }
 0x307   :  { %5203 = vmatpush.bf16.msrb.mxu2 %v7939_v31  ;;  %v4974_v45 = vpop.f32.mrf.mxu3  ;;  %v8048_v31 = vld [vmem:[#allocation8 + $0x718] sm:$0xf0] }
 0x308   :  { %v8051_v21 = vor.u32 %v8909_v6, %v8048_v31  ;;  %v8963_v45 = vld [vmem:[#allocation11 + $0xb8] sm:$0xff]  ;;  %v8965_v6 = vld [vmem:[#allocation11 + $0xc8] sm:$0xff] }
 0x309   :  { %5494 = vmatpush.bf16.msra.mxu3 %v8944_v46  ;;  %v4948_v43 = vpop.f32.mrf.mxu2  ;;  %v4907_v12 = vpop.f32.mrf.mxu0  ;;  %v8921_v46 = vld [vmem:[#allocation8 + $0x76c] sm:$0xf] }
 0x30a   :  { %5163 = vmatpush.bf16.msra.mxu0 %v7571_v13  ;;  %5507 = vmatpush.bf16.msra.mxu1 %v8952_v34  ;;  %v8099_v58 = vor.u32 %v8921_v46, %v8096_v0  ;;  %v8959_v34 = vld [vmem:[#allocation11 + $0x98] sm:$0xff] }
 0x30b   :  { %5204 = vmatpush.bf16.msrb.mxu2 %v7923_v41  ;;  %v8989_v43 = vld [vmem:[#allocation10] sm:$0xf] }
 0x30d   :  { %5495 = vmatpush.bf16.msra.mxu3 %v8943_v18  ;;  %v8917_v18 = vld [vmem:[#allocation8 + $0x74c] sm:$0xf] }
 0x30e   :  { %5164 = vmatpush.bf16.msra.mxu0 %v7555_v40  ;;  %5205 = vmatmul.bf16.vlgmr.msrb.gmra.mxu2 %v9445_v63  ;;  %v4895_v63 = vadd.f32 %v9487_v25, %v9474_v11  ;;  %v8083_v2 = vor.u32 %v8917_v18, %v8080_v28 }
 0x30f   :  { %5508 = vmatpush.bf16.msra.mxu1 %v8951_v14  ;;  %5517 = vmatpush.bf16.msra.mxu2 %v8963_v45 }
 0x310   :  { %v4908_v50 = vadd.f32 %v4907_v12, %v4895_v63 }
 0x311   :  { %5496 = vmatpush.bf16.msra.mxu3 %v8942_v19  ;;  %v4998_v16 = vpop.f32.mrf.mxu2  ;;  %v4909_v1 = vpop.f32.mrf.mxu0 }
 0x312   :  { %5165 = vmatpush.bf16.msra.mxu0 %v7539_v32 }
 0x313   :  { %5509 = vmatpush.bf16.msra.mxu1 %v8950_v42  ;;  %5518 = vmatpush.bf16.msra.mxu2 %v8962_v37  ;;  %v3522_v42 = vperm.slane %v8989_v43, 3 }
 0x315   :  { %5497 = vmatpush.bf16.msra.mxu3 %v8941_v30  ;;  %5166 = vmatmul.bf16.vlgmr.msra.gmra.mxu0 %v9402_v10  ;;  %v5223_v10 = vmax.f32 %v4908_v50, 0.0 }
 0x316   :  { %5210 = vmatpush.bf16.msrb.mxu0 %v8163_v33 }
 0x317   :  { %5510 = vmatpush.bf16.msra.mxu1 %v8949_v49  ;;  %v5227_v56 = vpack.c.bf16 %v5223_v10, %v5223_v10 }
 0x319   :  { %5498 = vmatpush.bf16.msra.mxu3 %v8940_v51  ;;  %v5000_v19 = vpop.f32.mrf.mxu2  ;;  %v4959_v15 = vpop.f32.mrf.mxu0 }
 0x31a   :  { %5211 = vmatpush.bf16.msrb.mxu0 %v8147_v29  ;;  %v5037_v52 = vpop.f32.mrf.mxu1  ;;  %v4960_v20 = vadd.f32 %v4959_v15, %v4947_v4  ;;  %v8967_v19 = vld [vmem:[#allocation11 + $0xd8] sm:$0xff] }
 0x31b   :  { %5511 = vmatpush.bf16.msra.mxu1 %v8948_v62 }
 0x31c   :  { %5499 = vmatmul.bf16.vlgmr.msra.gmra.mxu3 %v5227_v56  ;;  %v4973_v22 = vadd.f32 %v9491_v5, %v4960_v20  ;;  %v8971_v56 = vld [vmem:[#allocation11 + $0xf8] sm:$0xff] }
 0x31e   :  { %5212 = vmatpush.bf16.msrb.mxu0 %v8131_v55  ;;  %v4986_v30 = vadd.f32 %v9489_v44, %v4973_v22  ;;  %v8960_v44 = vld [vmem:[#allocation11 + $0xa0] sm:$0xff] }
 0x31f   :  { %v5024_v11 = vpop.f32.mrf.mxu3 }
 0x320   :  { %v5025_v25 = vadd.f32 %v5024_v11, %v3521_v54  ;;  %v4999_v40 = vadd.f32 %v4998_v16, %v4986_v30 }
 0x321   :  { %v4961_v23 = vpop.f32.mrf.mxu0 }
 0x322   :  { %5213 = vmatpush.bf16.msrb.mxu0 %v8115_v47  ;;  %v5039_v59 = vpop.f32.mrf.mxu1  ;;  %v5038_v48 = vadd.f32 %v5037_v52, %v5025_v25  ;;  %v8970_v25 = vld [vmem:[#allocation11 + $0xf0] sm:$0xff] }
 0x326   :  { %5214 = vmatpush.bf16.msrb.mxu0 %v8099_v58 }
 0x327   :  { %v5026_v13 = vpop.f32.mrf.mxu3 }
 0x328   :  { %v8964_v13 = vld [vmem:[#allocation11 + $0xc0] sm:$0xff] }
 0x32a   :  { %5215 = vmatpush.bf16.msrb.mxu0 %v8083_v2  ;;  %v8969_v2 = vld [vmem:[#allocation11 + $0xe8] sm:$0xff] }
 0x32c   :  { %v5050_v26 = vpop.f32.mrf.mxu2 }
 0x32d   :  { %v5051_v50 = vadd.f32 %v5050_v26, %v5038_v48 }
 0x32e   :  { %5216 = vmatpush.bf16.msrb.mxu0 %v8067_v57  ;;  %v8966_v57 = vld [vmem:[#allocation11 + $0xd0] sm:$0xff] }
 0x330   :  { %v5011_v24 = vpop.f32.mrf.mxu0 }
 0x331   :  { %v5012_v27 = vadd.f32 %v5011_v24, %v4999_v40 }
 0x332   :  { %5217 = vmatpush.bf16.msrb.mxu0 %v8051_v21 }
 0x333   :  { %v5224_v61 = vmax.f32 %v5012_v27, 0.0 }
 0x334   :  { %v5052_v32 = vpop.f32.mrf.mxu2 }
 0x335   :  { %5218 = vmatmul.bf16.vlgmr.msrb.gmra.mxu0 %v9454_v60  ;;  %v5228_v51 = vpack.c.bf16 %v5224_v61, %v5224_v61  ;;  %v8961_v60 = vld [vmem:[#allocation11 + $0xa8] sm:$0xff] }
 0x336   :  { %5519 = vmatpush.bf16.msra.mxu2 %v8961_v60  ;;  %5530 = vmatpush.bf16.msra.mxu0 %v8971_v56 }
 0x337   :  { %5512 = vmatmul.bf16.vlgmr.msra.gmra.mxu1 %v5228_v51  ;;  %v8986_v51 = vld [vmem:[#allocation13] ss:$0 sm:$0xff] }
 0x338   :  { %v5013_v5 = vpop.f32.mrf.mxu0 }
 0x33a   :  { %v5089_v41 = vpop.f32.mrf.mxu1  ;;  %5520 = vmatpush.bf16.msra.mxu2 %v8960_v44  ;;  %5531 = vmatpush.bf16.msra.mxu0 %v8970_v25 }
 0x33e   :  { %5521 = vmatpush.bf16.msra.mxu2 %v8959_v34  ;;  %5532 = vmatpush.bf16.msra.mxu0 %v8969_v2 }
 0x33f   :  { %v5076_v17 = vpop.f32.mrf.mxu3 }
 0x342   :  { %v5091_v9 = vpop.f32.mrf.mxu1  ;;  %5522 = vmatpush.bf16.msra.mxu2 %v8958_v36  ;;  %5533 = vmatpush.bf16.msra.mxu0 %v8968_v3 }
 0x346   :  { %5523 = vmatpush.bf16.msra.mxu2 %v8957_v35  ;;  %5534 = vmatpush.bf16.msra.mxu0 %v8967_v19 }
 0x347   :  { %v5078_v33 = vpop.f32.mrf.mxu3 }
 0x34a   :  { %5524 = vmatpush.bf16.msra.mxu2 %v8956_v38  ;;  %5535 = vmatpush.bf16.msra.mxu0 %v8966_v57 }
 0x34e   :  { %5536 = vmatpush.bf16.msra.mxu0 %v8965_v6 }
 0x350   :  { %v5063_v14 = vpop.f32.mrf.mxu0  ;;  %v5102_v39 = vpop.f32.mrf.mxu2 }
 0x351   :  { %v5064_v52 = vadd.f32 %v5063_v14, %v5051_v50 }
 0x352   :  { %5537 = vmatpush.bf16.msra.mxu0 %v8964_v13 }
 0x353   :  { %v5077_v46 = vadd.f32 %v5076_v17, %v5064_v52 }
 0x355   :  { %v5090_v0 = vadd.f32 %v5089_v41, %v5077_v46 }
 0x357   :  { %v5103_v10 = vadd.f32 %v5102_v39, %v5090_v0 }
 0x358   :  { %v5065_v12 = vpop.f32.mrf.mxu0  ;;  %v5104_v47 = vpop.f32.mrf.mxu2 }
 0x35a   :  { %v5141_v29 = vpop.f32.mrf.mxu1 }
 0x35f   :  { %v5128_v55 = vpop.f32.mrf.mxu3 }
 0x360   :  { %v5129_v8 = vadd.f32 %v5128_v55, %v3522_v42 }
 0x362   :  { %v5143_v7 = vpop.f32.mrf.mxu1  ;;  %v5142_v63 = vadd.f32 %v5141_v29, %v5129_v8 }
 0x367   :  { %v5130_v49 = vpop.f32.mrf.mxu3 }
 0x372   :  { %v5115_v54 = vpop.f32.mrf.mxu0 }
 0x373   :  { %v5116_v58 = vadd.f32 %v5115_v54, %v5103_v10  ;;  %v5154_v62 = vpop.f32.mrf.mxu2 }
 0x374   :  { %v5155_v20 = vadd.f32 %v5154_v62, %v5142_v63 }
 0x375   :  { %v5225_v18 = vmax.f32 %v5116_v58, 0.0 }
 0x377   :  { %v5229_v11 = vpack.c.bf16 %v5225_v18, %v5225_v18 }
 0x379   :  { %5525 = vmatmul.bf16.vlgmr.msra.gmra.mxu2 %v5229_v11 }
 0x37a   :  { %v5193_v16 = vpop.f32.mrf.mxu1  ;;  %v5117_v59 = vpop.f32.mrf.mxu0 }
 0x37b   :  { %v5156_v53 = vpop.f32.mrf.mxu2 }
 0x37f   :  { %v5180_v28 = vpop.f32.mrf.mxu3 }
 0x382   :  { %v5195_v1 = vpop.f32.mrf.mxu1 }
 0x387   :  { %v5182_v48 = vpop.f32.mrf.mxu3 }
 0x391   :  { %v5206_v15 = vpop.f32.mrf.mxu2 }
 0x392   :  { %v5167_v31 = vpop.f32.mrf.mxu0 }
 0x393   :  { %v5168_v22 = vadd.f32 %v5167_v31, %v5155_v20 }
 0x395   :  { %v5181_v30 = vadd.f32 %v5180_v28, %v5168_v22 }
 0x397   :  { %v5194_v41 = vadd.f32 %v5193_v16, %v5181_v30 }
 0x399   :  { %v5208_v4 = vpop.f32.mrf.mxu2  ;;  %v5207_v24 = vadd.f32 %v5206_v15, %v5194_v41 }
 0x39a   :  { %v5169_v21 = vpop.f32.mrf.mxu0 }
 0x39f   :  { %v5500_v23 = vpop.f32.mrf.mxu3 }
 0x3a0   :  { %v5501_v37 = vadd.f32 %v8986_v51, %v5500_v23 }
 0x3a7   :  { %v5502_v40 = vpop.f32.mrf.mxu3 }
 0x3b2   :  { %v5219_v26 = vpop.f32.mrf.mxu0 }
 0x3b3   :  { %v5220_v27 = vadd.f32 %v5219_v26, %v5207_v24 }
 0x3b4   :  { %v5513_v9 = vpop.f32.mrf.mxu1 }
 0x3b5   :  { %v5226_v45 = vmax.f32 %v5220_v27, 0.0  ;;  %v5514_v5 = vadd.f32 %v5513_v9, %v5501_v37 }
 0x3b7   :  { %v5230_v61 = vpack.c.bf16 %v5226_v45, %v5226_v45 }
 0x3b9   :  { %5538 = vmatmul.bf16.vlgmr.msra.gmra.mxu0 %v5230_v61 }
 0x3ba   :  { %v5221_v17 = vpop.f32.mrf.mxu0 }
 0x3bc   :  { %v5515_v32 = vpop.f32.mrf.mxu1 }
 0x3fc   :  { %v5526_v60 = vpop.f32.mrf.mxu2 }
 0x3fd   :  { %v5527_v44 = vadd.f32 %v5526_v60, %v5514_v5 }
 0x404   :  { %v5528_v33 = vpop.f32.mrf.mxu2 }
 0x436   :  { %v5539_v34 = vpop.f32.mrf.mxu0 }
 0x437   :  { %v5540_v36 = vadd.f32 %v5539_v34, %v5527_v44 }
 0x439   :  { %5543 = vst [vmem:[#allocation14] sm:$0xff] %v5540_v36 }
 0x43a   :  { %5554 = dma.vmem_to_hbm [thread:$0]  %s5550_s6, 128, %s5552_s15, [#allocation4]  }
 0x43e   :  { %v5541_v35 = vpop.f32.mrf.mxu0 }
 0x43f   :  { %9190 = dma.done.wait [#allocation4], 128  }
 0x440   :  { %9191 = vsyncadd [#allocation4], 4294967168 }
 0x441   :  { %5559 = vsyncpa [#allocation3], 1 }
 0x442   :  { %5560 = vsyncpa [#allocation6], 1 }
 0x443   :  { %5561 = vsyncpa [#allocation9], 1 }
 0x444   :  { %5562 = vsyncpa [#allocation12], 1 }
 0x445   :  { %5563 = vsyncpa [#allocation4], 1 }

</bundles_post_ra>
